<compile_context>
chip_gen: v7x
topology: tpu7x:2x2x1
jax: 0.10.0
libtpu: 0.0.40
codegen_flags: <defaults>
</compile_context>

<pallas_src>
import numpy as np
import jax
import jax.numpy as jnp
from jax import lax
from jax.experimental import pallas as pl
from jax.experimental.pallas import tpu as pltpu


# Scoped-VMEM ceiling: above the 16/32 MiB defaults, safely below v7x's 64 MiB physical.
_VMEM_LIMIT_BYTES = 48 * 1024 * 1024


def _pick_row_tile(m, max_tile=256):
    """Row tile for the 1x1-conv matmul: big enough to stream the MXU, and >=2 tiles
    whenever possible so the parallel grid axis can shard across TensorCores (v7x)."""
    for t in (max_tile, 128, 64, 32, 16, 8):
        if m % t == 0 and m // t >= 2:
            return t
    return m


def _pick_h_tile(h, w, c3, budget_bytes=4 * 1024 * 1024):
    """Row tile for the depthwise conv: largest divisor of H whose padded window fits
    the per-buffer budget; prefer >=2 tiles for megacore sharding."""
    best = 1
    for t in range(1, h + 1):
        if h % t == 0 and (t + 2) * (w + 2) * c3 * 4 <= budget_bytes:
            best = t
    if best == h and h % 2 == 0:
        best = h // 2
    return best


# ----------------------------- 1x1 conv (matmul) -----------------------------

def _pointwise_kernel(x_ref, w_ref, o_ref):
    # x_ref: (tm, Cin) f32, w_ref: (Cin, Cout) bf16, o_ref: (tm, Cout) f32
    o_ref[...] = jnp.dot(x_ref[...].astype(jnp.bfloat16), w_ref[...],
                         preferred_element_type=jnp.float32).astype(o_ref.dtype)


def pointwise_conv(x2d, w_bf16):
    """1x1 conv (no bias) as a single row-tiled matmul: (M, Cin) @ (Cin, Cout)."""
    m, k = x2d.shape
    n = w_bf16.shape[1]
    tm = _pick_row_tile(m)
    return pl.pallas_call(
        _pointwise_kernel,
        out_shape=jax.ShapeDtypeStruct((m, n), jnp.float32),
        grid=(m // tm,),
        in_specs=[pl.BlockSpec((tm, k), lambda i: (i, 0)),
                  pl.BlockSpec((k, n), lambda i: (0, 0))],
        out_specs=pl.BlockSpec((tm, n), lambda i: (i, 0)),
        compiler_params=pltpu.CompilerParams(
            dimension_semantics=("parallel",),
            vmem_limit_bytes=_VMEM_LIMIT_BYTES),
    )(x2d, w_bf16)


# --------------------------- depthwise 3x3 conv ------------------------------

def _dwconv_kernel(x_ref, top_ref, bot_ref, w_ref, o_ref, pad_ref):
    # x_ref:   (1, tH, W, C3)   current row tile
    # top_ref: (1, 1,  W, C3)   row above the tile (clamped at the border)
    # bot_ref: (1, 1,  W, C3)   row below the tile (clamped at the border)
    # w_ref:   (3, 3, C3)       depthwise taps
    # o_ref:   (1, tH, W, C3)
    # pad_ref: (tH+2, W+2, C3)  VMEM scratch holding the zero-padded window
    t = pl.program_id(1)
    nt = pl.num_programs(1)
    th, wd, c3 = o_ref.shape[1], o_ref.shape[2], o_ref.shape[3]

    # Assemble the zero-padded window fully in VMEM (no HBM pad pass).
    zcol = jnp.zeros((th + 2, 1, c3), jnp.float32)
    pad_ref[:, 0:1, :] = zcol
    pad_ref[:, wd + 1:wd + 2, :] = zcol
    pad_ref[0:1, 1:wd + 1, :] = jnp.where(t == 0, 0.0, top_ref[0])
    pad_ref[th + 1:th + 2, 1:wd + 1, :] = jnp.where(t == nt - 1, 0.0, bot_ref[0])
    pad_ref[1:th + 1, 1:wd + 1, :] = x_ref[0]

    xp = pad_ref[...]
    acc = jnp.zeros((th, wd, c3), jnp.float32)
    for di in range(3):
        for dj in range(3):
            acc = acc + xp[di:di + th, dj:dj + wd, :] * w_ref[di, dj, :]
    o_ref[0] = acc.astype(o_ref.dtype)


def depthwise_conv3x3(x_img, w_dw):
    """Depthwise 3x3 conv, padding=1, no bias. x_img: (B, H, W, C3), w_dw: (3, 3, C3)."""
    b, h, w, c3 = x_img.shape
    th = _pick_h_tile(h, w, c3)

    def x_map(i, t):
        return (i, t, 0, 0)

    def top_map(i, t):                       # row above the tile, clamped at row 0
        return (i, jnp.maximum(t * th - 1, 0), 0, 0)

    def bot_map(i, t):                       # row below the tile, clamped at row H-1
        return (i, jnp.minimum((t + 1) * th, h - 1), 0, 0)

    return pl.pallas_call(
        _dwconv_kernel,
        out_shape=jax.ShapeDtypeStruct((b, h, w, c3), jnp.float32),
        grid=(b, h // th),
        in_specs=[pl.BlockSpec((1, th, w, c3), x_map),
                  pl.BlockSpec((1, 1, w, c3), top_map),
                  pl.BlockSpec((1, 1, w, c3), bot_map),
                  pl.BlockSpec((3, 3, c3), lambda i, t: (0, 0, 0))],
        out_specs=pl.BlockSpec((1, th, w, c3), x_map),
        scratch_shapes=[pltpu.VMEM((th + 2, w + 2, c3), jnp.float32)],
        compiler_params=pltpu.CompilerParams(
            dimension_semantics=("parallel", "parallel"),
            vmem_limit_bytes=_VMEM_LIMIT_BYTES),
    )(x_img, x_img, x_img, w_dw)


# ----------------- fused attention (+rel-bias, softmax) + project_out --------

def _attn_proj_kernel(qkv_ref, bias_ref, wproj_ref, temp_ref, o_ref):
    # qkv_ref:  (1, HW, 3C) f32   channels-last, [q | k | v], head-major within each
    # bias_ref: (heads, d, d) f32
    # wproj_ref:(heads, d, C) bf16  project_out weight grouped by input-channel head
    # temp_ref: (heads,) f32  in SMEM
    # o_ref:    (1, HW, C) f32
    nh, d = bias_ref.shape[0], bias_ref.shape[1]
    c = nh * d

    x = qkv_ref[0]                 # (HW, 3C) f32
    acc = jnp.zeros((x.shape[0], c), jnp.float32)

    for h in range(nh):            # small static head count -> unrolled
        q = x[:, h * d:(h + 1) * d]                       # (HW, d)
        k = x[:, c + h * d:c + (h + 1) * d]
        v = x[:, 2 * c + h * d:2 * c + (h + 1) * d]

        # F.normalize(., dim=-1) == per-channel L2 over the spatial axis (rows here),
        # eps-clamped, kept in f32; rsqrt runs on the EUP.
        qn = q * lax.rsqrt(jnp.maximum(jnp.sum(q * q, axis=0, keepdims=True), 1e-24))
        kn = k * lax.rsqrt(jnp.maximum(jnp.sum(k * k, axis=0, keepdims=True), 1e-24))

        # channel attention (d, d) = qn^T @ kn ; bf16 MXU operands, f32 accumulation
        attn = lax.dot_general(qn.astype(jnp.bfloat16), kn.astype(jnp.bfloat16),
                               (((0,), (0,)), ((), ())),
                               preferred_element_type=jnp.float32)
        attn = (attn + bias_ref[h]) * temp_ref[h]

        # softmax over the last axis, in f32
        attn = attn - jnp.max(attn, axis=-1, keepdims=True)
        p = jnp.exp(attn)
        p = p * pl.reciprocal(jnp.sum(p, axis=-1, keepdims=True), approx=True)

        # (HW, d) = v @ p^T   (channels-last form of  attn @ v)
        oh = lax.dot_general(v.astype(jnp.bfloat16), p.astype(jnp.bfloat16),
                             (((1,), (1,)), ((), ())),
                             preferred_element_type=jnp.float32)

        # fused project_out contribution of this head: (HW, d) @ (d, C)
        acc = acc + lax.dot_general(oh.astype(jnp.bfloat16), wproj_ref[h],
                                    (((1,), (0,)), ((), ())),
                                    preferred_element_type=jnp.float32)

    o_ref[0] = acc.astype(o_ref.dtype)


def mdta_attention_proj(qkv_flat, rel_bias, temp_vec, w_proj_heads, num_heads):
    """qkv_flat: (B, HW, 3C); rel_bias: (heads, d, d); temp_vec: (heads,);
    w_proj_heads: (heads, d, C) bf16. Returns (B, HW, C)."""
    b, hw, c3 = qkv_flat.shape
    c = c3 // 3
    d = c // num_heads
    return pl.pallas_call(
        _attn_proj_kernel,
        out_shape=jax.ShapeDtypeStruct((b, hw, c), jnp.float32),
        grid=(b,),
        in_specs=[pl.BlockSpec((1, hw, c3), lambda i: (i, 0, 0)),
                  pl.BlockSpec((num_heads, d, d), lambda i: (0, 0, 0)),
                  pl.BlockSpec((num_heads, d, c), lambda i: (0, 0, 0)),
                  pl.BlockSpec(memory_space=pltpu.MemorySpace.SMEM)],
        out_specs=pl.BlockSpec((1, hw, c), lambda i: (i, 0, 0)),
        compiler_params=pltpu.CompilerParams(
            dimension_semantics=("parallel",),
            vmem_limit_bytes=_VMEM_LIMIT_BYTES),
    )(qkv_flat, rel_bias, w_proj_heads, temp_vec)


# ----------------------------- Module wrapper ------------------------------

def make_relative_position_index(window=7):
    coords = np.stack(np.meshgrid(np.arange(window), np.arange(window), indexing="ij"))
    coords_flatten = coords.reshape(2, -1)                         # (2, 49)
    rel = coords_flatten[:, :, None] - coords_flatten[:, None, :]  # (2, 49, 49)
    rel = rel.transpose(1, 2, 0).astype(np.int64)                  # (49, 49, 2)
    rel[:, :, 0] += window - 1
    rel[:, :, 1] += window - 1
    rel[:, :, 0] *= 2 * window - 1
    return rel.sum(-1)                                             # (49, 49)


def mdta_forward(x, w_qkv_oihw, w_dw_oihw, w_proj_oihw,
                 temperature, bias_table, rel_index, num_heads):
    b, c, h, w = x.shape
    hw = h * w
    d = c // num_heads
    assert d * num_heads == c and d == rel_index.shape[0]  # module needs C/heads == 49

    # parameter re-layout (tiny, one-time glue)
    w_qkv_mat = jnp.transpose(w_qkv_oihw[:, :, 0, 0]).astype(jnp.bfloat16)    # (C, 3C)
    w_dw = jnp.transpose(w_dw_oihw[:, 0], (1, 2, 0))                          # (3, 3, 3C)
    w_proj_heads = jnp.transpose(w_proj_oihw[:, :, 0, 0]).reshape(
        num_heads, d, c).astype(jnp.bfloat16)                                 # (heads, d, C)
    rel_bias = bias_table[rel_index.reshape(-1)].reshape(d, d, num_heads)
    rel_bias = jnp.transpose(rel_bias, (2, 0, 1))                             # (heads, d, d)
    temp_vec = temperature.reshape(num_heads).astype(jnp.float32)             # (heads,)

    # channels-last once at the module boundary (the only layout transposes)
    x_ls = jnp.transpose(x, (0, 2, 3, 1)).reshape(b * hw, c)

    # 1) qkv 1x1 conv as one row-tiled matmul
    qkv = pointwise_conv(x_ls, w_qkv_mat)                     # (B*HW, 3C) f32
    qkv_img = qkv.reshape(b, h, w, 3 * c)                     # free reshape

    # 2) depthwise 3x3 conv, H-tiled with in-kernel zero border
    qkv_dw = depthwise_conv3x3(qkv_img, w_dw)                 # (B, H, W, 3C) f32

    # 3) per-batch fused attention (+rel bias, softmax) + project_out
    out_ls = mdta_attention_proj(qkv_dw.reshape(b, hw, 3 * c),
                                 rel_bias, temp_vec, w_proj_heads, num_heads)  # (B, HW, C)

    return jnp.transpose(out_ls.reshape(b, h, w, c), (0, 3, 1, 2))  # NCHW out


# ----------------------------- Pure-JAX reference --------------------------

def reference_mdta(x, w_qkv, w_dw, w_proj, temperature, bias_table, rel_index, num_heads):
    b, c, h, w = x.shape
    dn = ("NCHW", "OIHW", "NCHW")
    hp = lax.Precision.HIGHEST
    qkv = lax.conv_general_dilated(x, w_qkv, (1, 1), "VALID",
                                   dimension_numbers=dn, precision=hp)
    qkv = lax.conv_general_dilated(qkv, w_dw, (1, 1), ((1, 1), (1, 1)),
                                   dimension_numbers=dn,
                                   feature_group_count=3 * c, precision=hp)
    q, k, v = jnp.split(qkv, 3, axis=1)
    d = c // num_heads
    q = q.reshape(b, num_heads, d, h * w)
    k = k.reshape(b, num_heads, d, h * w)
    v = v.reshape(b, num_heads, d, h * w)
    q = q / jnp.maximum(jnp.sqrt(jnp.sum(q * q, -1, keepdims=True)), 1e-12)
    k = k / jnp.maximum(jnp.sqrt(jnp.sum(k * k, -1, keepdims=True)), 1e-12)
    attn = jnp.einsum("bhdn,bhen->bhde", q, k, precision=hp)
    rel_bias = bias_table[rel_index.reshape(-1)].reshape(d, d, num_heads)
    rel_bias = jnp.transpose(rel_bias, (2, 0, 1))[None]
    attn = jax.nn.softmax((attn + rel_bias) * temperature, axis=-1)
    out = jnp.einsum("bhde,bhen->bhdn", attn, v, precision=hp)
    out = out.reshape(b, c, h, w)
    return lax.conv_general_dilated(out, w_proj, (1, 1), "VALID",
                                    dimension_numbers=dn, precision=hp)


# ----------------------------------- Main -----------------------------------

if __name__ == "__main__":
    num_heads = 2
    channels = 49 * num_heads   # head dim must be 49 for the relative-position bias add
    b, h, w = 2, 8, 8

    key = jax.random.PRNGKey(0)
    kx, k1, k2, k3, k4 = jax.random.split(key, 5)
    x = jax.random.normal(kx, (b, channels, h, w), jnp.float32)

    # deterministic synthetic parameters (same shapes as the nn.Module's)
    w_qkv = 0.1 * jax.random.normal(k1, (3 * channels, channels, 1, 1), jnp.float32)
    w_dw = 0.1 * jax.random.normal(k2, (3 * channels, 1, 3, 3), jnp.float32)
    w_proj = 0.1 * jax.random.normal(k3, (channels, channels, 1, 1), jnp.float32)
    bias_table = 0.02 * jax.random.normal(k4, ((2 * 7 - 1) * (2 * 7 - 1), num_heads),
                                          jnp.float32)
    temperature = jnp.ones((1, num_heads, 1, 1), jnp.float32)
    rel_index = jnp.asarray(make_relative_position_index(7), jnp.int32)

    fwd = jax.jit(mdta_forward, static_argnums=(7,))
    out = fwd(x, w_qkv, w_dw, w_proj, temperature, bias_table, rel_index, num_heads)
    out = jax.block_until_ready(out)

    ref = reference_mdta(x, w_qkv, w_dw, w_proj, temperature, bias_table,
                         rel_index, num_heads)
    ref = jax.block_until_ready(ref)

    assert out.shape == (b, channels, h, w)
    np.testing.assert_allclose(np.asarray(out), np.asarray(ref), rtol=2e-2, atol=2e-2)
    print("KERNEL_OK")
</pallas_src>

<mosaic_0001>
module attributes {stable_mosaic.version = 11 : i64} {
  func.func @_pointwise_kernel(%arg0: i32, %arg1: memref<64x98xf32, #tpu.memory_space<vmem>>, %arg2: memref<98x294xbf16, #tpu.memory_space<vmem>>, %arg3: memref<64x294xf32, #tpu.memory_space<vmem>>) attributes {dimension_semantics = [#tpu.dimension_semantics<parallel>], iteration_bounds = array<i64: 2>, scalar_prefetch = 0 : i64, scratch_operands = 0 : i64, tpu.core_type = #tpu.core_type<tc>, window_params = [{transform_indices = @transform_0, window_bounds = array<i64: 64, 98>}, {pipeline_mode = #tpu.pipeline_mode<synchronous>, transform_indices = @transform_1, window_bounds = array<i64: 98, 294>}, {transform_indices = @transform_2, window_bounds = array<i64: 64, 294>}]} {
    %c0 = arith.constant 0 : index
    %c0_0 = arith.constant 0 : index
    %0 = vector.load %arg1[%c0, %c0_0] : memref<64x98xf32, #tpu.memory_space<vmem>>, vector<64x98xf32>
    %1 = arith.truncf %0 : vector<64x98xf32> to vector<64x98xbf16>
    %c0_1 = arith.constant 0 : index
    %c0_2 = arith.constant 0 : index
    %2 = vector.load %arg2[%c0_1, %c0_2] : memref<98x294xbf16, #tpu.memory_space<vmem>>, vector<98x294xbf16>
    %cst = arith.constant dense<0.000000e+00> : vector<64x294xf32>
    %3 = tpu.matmul %1, %2, %cst {dimension_numbers = #tpu.dot_dimension_numbers<[1], [0], [0], [1], [0, 0, 1, 1], [], []>} : vector<64x98xbf16>, vector<98x294xbf16>, vector<64x294xf32> -> vector<64x294xf32>
    %c0_3 = arith.constant 0 : index
    %c0_4 = arith.constant 0 : index
    %4 = vector.load %arg3[%c0_3, %c0_4] : memref<64x294xf32, #tpu.memory_space<vmem>>, vector<64x294xf32>
    tpu.vector_store %arg3[%c0_3, %c0_4], %3 {strides = array<i32>} : memref<64x294xf32, #tpu.memory_space<vmem>>, vector<64x294xf32>,
    return
  }
  func.func @transform_0(%arg0: i32) -> (i32, i32) {
    %c0_i32 = arith.constant 0 : i32
    %c0_i32_0 = arith.constant 0 : i32
    return %arg0, %c0_i32 : i32, i32
  }
  func.func @transform_1(%arg0: i32) -> (i32, i32) {
    %c0_i32 = arith.constant 0 : i32
    %c0_i32_0 = arith.constant 0 : i32
    %c0_i32_1 = arith.constant 0 : i32
    return %c0_i32, %c0_i32_0 : i32, i32
  }
  func.func @transform_2(%arg0: i32) -> (i32, i32) {
    %c0_i32 = arith.constant 0 : i32
    %c0_i32_0 = arith.constant 0 : i32
    return %arg0, %c0_i32 : i32, i32
  }
}

module attributes {stable_mosaic.version = 11 : i64} {
  func.func @_dwconv_kernel(%arg0: i32, %arg1: i32, %arg2: memref<1x4x8x294xf32, #tpu.memory_space<vmem>>, %arg3: memref<1x1x8x294xf32, #tpu.memory_space<vmem>>, %arg4: memref<1x1x8x294xf32, #tpu.memory_space<vmem>>, %arg5: memref<3x3x294xf32, #tpu.memory_space<vmem>>, %arg6: memref<1x4x8x294xf32, #tpu.memory_space<vmem>>, %arg7: memref<6x10x294xf32, #tpu.memory_space<vmem>>) attributes {dimension_semantics = [#tpu.dimension_semantics<parallel>, #tpu.dimension_semantics<parallel>], iteration_bounds = array<i64: 2, 2>, scalar_prefetch = 0 : i64, scratch_operands = 1 : i64, tpu.core_type = #tpu.core_type<tc>, window_params = [{transform_indices = @transform_0, window_bounds = array<i64: 1, 4, 8, 294>}, {transform_indices = @transform_1, window_bounds = array<i64: 1, 1, 8, 294>}, {transform_indices = @transform_2, window_bounds = array<i64: 1, 1, 8, 294>}, {pipeline_mode = #tpu.pipeline_mode<synchronous>, transform_indices = @transform_3, window_bounds = array<i64: 3, 3, 294>}, {transform_indices = @transform_4, window_bounds = array<i64: 1, 4, 8, 294>}]} {
    %cst = arith.constant 0.000000e+00 : f32
    %0 = vector.broadcast %cst : f32 to vector<6x1x294xf32>
    %c0 = arith.constant 0 : index
    %c0_0 = arith.constant 0 : index
    %c0_1 = arith.constant 0 : index
    %1 = vector.load %arg7[%c0, %c0_0, %c0_1] : memref<6x10x294xf32, #tpu.memory_space<vmem>>, vector<6x1x294xf32>
    tpu.vector_store %arg7[%c0, %c0_0, %c0_1], %0 {strides = array<i32>} : memref<6x10x294xf32, #tpu.memory_space<vmem>>, vector<6x1x294xf32>,
    %c0_2 = arith.constant 0 : index
    %c9 = arith.constant 9 : index
    %c0_3 = arith.constant 0 : index
    %2 = vector.load %arg7[%c0_2, %c9, %c0_3] : memref<6x10x294xf32, #tpu.memory_space<vmem>>, vector<6x1x294xf32>
    tpu.vector_store %arg7[%c0_2, %c9, %c0_3], %0 {strides = array<i32>} : memref<6x10x294xf32, #tpu.memory_space<vmem>>, vector<6x1x294xf32>,
    %c0_i32 = arith.constant 0 : i32
    %3 = arith.cmpi eq, %arg1, %c0_i32 : i32
    %c0_4 = arith.constant 0 : index
    %c0_5 = arith.constant 0 : index
    %c0_6 = arith.constant 0 : index
    %c0_7 = arith.constant 0 : index
    %4 = vector.load %arg3[%c0_4, %c0_5, %c0_6, %c0_7] : memref<1x1x8x294xf32, #tpu.memory_space<vmem>>, vector<1x1x8x294xf32>
    %5 = vector.shape_cast %4 : vector<1x1x8x294xf32> to vector<1x8x294xf32>
    %cst_8 = arith.constant 0.000000e+00 : f32
    %6 = vector.broadcast %cst_8 : f32 to vector<1x8x294xf32>
    %7 = arith.select %3, %6, %5 : vector<1x8x294xf32>
    %c0_9 = arith.constant 0 : index
    %c1 = arith.constant 1 : index
    %c0_10 = arith.constant 0 : index
    %8 = vector.load %arg7[%c0_9, %c1, %c0_10] : memref<6x10x294xf32, #tpu.memory_space<vmem>>, vector<1x8x294xf32>
    tpu.vector_store %arg7[%c0_9, %c1, %c0_10], %7 {strides = array<i32>} : memref<6x10x294xf32, #tpu.memory_space<vmem>>, vector<1x8x294xf32>,
    %c1_i32 = arith.constant 1 : i32
    %9 = arith.cmpi eq, %arg1, %c1_i32 : i32
    %c0_11 = arith.constant 0 : index
    %c0_12 = arith.constant 0 : index
    %c0_13 = arith.constant 0 : index
    %c0_14 = arith.constant 0 : index
    %10 = vector.load %arg4[%c0_11, %c0_12, %c0_13, %c0_14] : memref<1x1x8x294xf32, #tpu.memory_space<vmem>>, vector<1x1x8x294xf32>
    %11 = vector.shape_cast %10 : vector<1x1x8x294xf32> to vector<1x8x294xf32>
    %cst_15 = arith.constant 0.000000e+00 : f32
    %12 = vector.broadcast %cst_15 : f32 to vector<1x8x294xf32>
    %13 = arith.select %9, %12, %11 : vector<1x8x294xf32>
    %c5 = arith.constant 5 : index
    %c1_16 = arith.constant 1 : index
    %c0_17 = arith.constant 0 : index
    %14 = vector.load %arg7[%c5, %c1_16, %c0_17] : memref<6x10x294xf32, #tpu.memory_space<vmem>>, vector<1x8x294xf32>
    tpu.vector_store %arg7[%c5, %c1_16, %c0_17], %13 {strides = array<i32>} : memref<6x10x294xf32, #tpu.memory_space<vmem>>, vector<1x8x294xf32>,
    %c0_18 = arith.constant 0 : index
    %c0_19 = arith.constant 0 : index
    %c0_20 = arith.constant 0 : index
    %c0_21 = arith.constant 0 : index
    %15 = vector.load %arg2[%c0_18, %c0_19, %c0_20, %c0_21] : memref<1x4x8x294xf32, #tpu.memory_space<vmem>>, vector<1x4x8x294xf32>
    %16 = vector.shape_cast %15 : vector<1x4x8x294xf32> to vector<4x8x294xf32>
    %c1_22 = arith.constant 1 : index
    %c1_23 = arith.constant 1 : index
    %c0_24 = arith.constant 0 : index
    %17 = vector.load %arg7[%c1_22, %c1_23, %c0_24] : memref<6x10x294xf32, #tpu.memory_space<vmem>>, vector<4x8x294xf32>
    tpu.vector_store %arg7[%c1_22, %c1_23, %c0_24], %16 {strides = array<i32>} : memref<6x10x294xf32, #tpu.memory_space<vmem>>, vector<4x8x294xf32>,
    %c0_25 = arith.constant 0 : index
    %c0_26 = arith.constant 0 : index
    %c0_27 = arith.constant 0 : index
    %18 = vector.load %arg7[%c0_25, %c0_26, %c0_27] : memref<6x10x294xf32, #tpu.memory_space<vmem>>, vector<6x10x294xf32>
    %cst_28 = arith.constant 0.000000e+00 : f32
    %19 = vector.broadcast %cst_28 : f32 to vector<4x8x294xf32>
    %20 = vector.extract_strided_slice %18 {offsets = [0, 0, 0], sizes = [4, 8, 294], strides = [1, 1, 1]} : vector<6x10x294xf32> to vector<4x8x294xf32>
    %c0_29 = arith.constant 0 : index
    %c0_30 = arith.constant 0 : index
    %c0_31 = arith.constant 0 : index
    %21 = vector.load %arg5[%c0_29, %c0_30, %c0_31] : memref<3x3x294xf32, #tpu.memory_space<vmem>>, vector<1x1x294xf32>
    %22 = vector.shape_cast %21 : vector<1x1x294xf32> to vector<294xf32>
    %23 = vector.shape_cast %22 : vector<294xf32> to vector<1x1x294xf32>
    %24 = vector.broadcast %23 : vector<1x1x294xf32> to vector<4x8x294xf32>
    %25 = arith.mulf %20, %24 : vector<4x8x294xf32>
    %26 = arith.addf %19, %25 : vector<4x8x294xf32>
    %27 = vector.extract_strided_slice %18 {offsets = [0, 1, 0], sizes = [4, 8, 294], strides = [1, 1, 1]} : vector<6x10x294xf32> to vector<4x8x294xf32>
    %c0_32 = arith.constant 0 : index
    %c1_33 = arith.constant 1 : index
    %c0_34 = arith.constant 0 : index
    %28 = vector.load %arg5[%c0_32, %c1_33, %c0_34] : memref<3x3x294xf32, #tpu.memory_space<vmem>>, vector<1x1x294xf32>
    %29 = vector.shape_cast %28 : vector<1x1x294xf32> to vector<294xf32>
    %30 = vector.shape_cast %29 : vector<294xf32> to vector<1x1x294xf32>
    %31 = vector.broadcast %30 : vector<1x1x294xf32> to vector<4x8x294xf32>
    %32 = arith.mulf %27, %31 : vector<4x8x294xf32>
    %33 = arith.addf %26, %32 : vector<4x8x294xf32>
    %34 = vector.extract_strided_slice %18 {offsets = [0, 2, 0], sizes = [4, 8, 294], strides = [1, 1, 1]} : vector<6x10x294xf32> to vector<4x8x294xf32>
    %c0_35 = arith.constant 0 : index
    %c2 = arith.constant 2 : index
    %c0_36 = arith.constant 0 : index
    %35 = vector.load %arg5[%c0_35, %c2, %c0_36] : memref<3x3x294xf32, #tpu.memory_space<vmem>>, vector<1x1x294xf32>
    %36 = vector.shape_cast %35 : vector<1x1x294xf32> to vector<294xf32>
    %37 = vector.shape_cast %36 : vector<294xf32> to vector<1x1x294xf32>
    %38 = vector.broadcast %37 : vector<1x1x294xf32> to vector<4x8x294xf32>
    %39 = arith.mulf %34, %38 : vector<4x8x294xf32>
    %40 = arith.addf %33, %39 : vector<4x8x294xf32>
    %41 = vector.extract_strided_slice %18 {offsets = [1, 0, 0], sizes = [4, 8, 294], strides = [1, 1, 1]} : vector<6x10x294xf32> to vector<4x8x294xf32>
    %c1_37 = arith.constant 1 : index
    %c0_38 = arith.constant 0 : index
    %c0_39 = arith.constant 0 : index
    %42 = vector.load %arg5[%c1_37, %c0_38, %c0_39] : memref<3x3x294xf32, #tpu.memory_space<vmem>>, vector<1x1x294xf32>
    %43 = vector.shape_cast %42 : vector<1x1x294xf32> to vector<294xf32>
    %44 = vector.shape_cast %43 : vector<294xf32> to vector<1x1x294xf32>
    %45 = vector.broadcast %44 : vector<1x1x294xf32> to vector<4x8x294xf32>
    %46 = arith.mulf %41, %45 : vector<4x8x294xf32>
    %47 = arith.addf %40, %46 : vector<4x8x294xf32>
    %48 = vector.extract_strided_slice %18 {offsets = [1, 1, 0], sizes = [4, 8, 294], strides = [1, 1, 1]} : vector<6x10x294xf32> to vector<4x8x294xf32>
    %c1_40 = arith.constant 1 : index
    %c1_41 = arith.constant 1 : index
    %c0_42 = arith.constant 0 : index
    %49 = vector.load %arg5[%c1_40, %c1_41, %c0_42] : memref<3x3x294xf32, #tpu.memory_space<vmem>>, vector<1x1x294xf32>
    %50 = vector.shape_cast %49 : vector<1x1x294xf32> to vector<294xf32>
    %51 = vector.shape_cast %50 : vector<294xf32> to vector<1x1x294xf32>
    %52 = vector.broadcast %51 : vector<1x1x294xf32> to vector<4x8x294xf32>
    %53 = arith.mulf %48, %52 : vector<4x8x294xf32>
    %54 = arith.addf %47, %53 : vector<4x8x294xf32>
    %55 = vector.extract_strided_slice %18 {offsets = [1, 2, 0], sizes = [4, 8, 294], strides = [1, 1, 1]} : vector<6x10x294xf32> to vector<4x8x294xf32>
    %c1_43 = arith.constant 1 : index
    %c2_44 = arith.constant 2 : index
    %c0_45 = arith.constant 0 : index
    %56 = vector.load %arg5[%c1_43, %c2_44, %c0_45] : memref<3x3x294xf32, #tpu.memory_space<vmem>>, vector<1x1x294xf32>
    %57 = vector.shape_cast %56 : vector<1x1x294xf32> to vector<294xf32>
    %58 = vector.shape_cast %57 : vector<294xf32> to vector<1x1x294xf32>
    %59 = vector.broadcast %58 : vector<1x1x294xf32> to vector<4x8x294xf32>
    %60 = arith.mulf %55, %59 : vector<4x8x294xf32>
    %61 = arith.addf %54, %60 : vector<4x8x294xf32>
    %62 = vector.extract_strided_slice %18 {offsets = [2, 0, 0], sizes = [4, 8, 294], strides = [1, 1, 1]} : vector<6x10x294xf32> to vector<4x8x294xf32>
    %c2_46 = arith.constant 2 : index
    %c0_47 = arith.constant 0 : index
    %c0_48 = arith.constant 0 : index
    %63 = vector.load %arg5[%c2_46, %c0_47, %c0_48] : memref<3x3x294xf32, #tpu.memory_space<vmem>>, vector<1x1x294xf32>
    %64 = vector.shape_cast %63 : vector<1x1x294xf32> to vector<294xf32>
    %65 = vector.shape_cast %64 : vector<294xf32> to vector<1x1x294xf32>
    %66 = vector.broadcast %65 : vector<1x1x294xf32> to vector<4x8x294xf32>
    %67 = arith.mulf %62, %66 : vector<4x8x294xf32>
    %68 = arith.addf %61, %67 : vector<4x8x294xf32>
    %69 = vector.extract_strided_slice %18 {offsets = [2, 1, 0], sizes = [4, 8, 294], strides = [1, 1, 1]} : vector<6x10x294xf32> to vector<4x8x294xf32>
    %c2_49 = arith.constant 2 : index
    %c1_50 = arith.constant 1 : index
    %c0_51 = arith.constant 0 : index
    %70 = vector.load %arg5[%c2_49, %c1_50, %c0_51] : memref<3x3x294xf32, #tpu.memory_space<vmem>>, vector<1x1x294xf32>
    %71 = vector.shape_cast %70 : vector<1x1x294xf32> to vector<294xf32>
    %72 = vector.shape_cast %71 : vector<294xf32> to vector<1x1x294xf32>
    %73 = vector.broadcast %72 : vector<1x1x294xf32> to vector<4x8x294xf32>
    %74 = arith.mulf %69, %73 : vector<4x8x294xf32>
    %75 = arith.addf %68, %74 : vector<4x8x294xf32>
    %76 = vector.extract_strided_slice %18 {offsets = [2, 2, 0], sizes = [4, 8, 294], strides = [1, 1, 1]} : vector<6x10x294xf32> to vector<4x8x294xf32>
    %c2_52 = arith.constant 2 : index
    %c2_53 = arith.constant 2 : index
    %c0_54 = arith.constant 0 : index
    %77 = vector.load %arg5[%c2_52, %c2_53, %c0_54] : memref<3x3x294xf32, #tpu.memory_space<vmem>>, vector<1x1x294xf32>
    %78 = vector.shape_cast %77 : vector<1x1x294xf32> to vector<294xf32>
    %79 = vector.shape_cast %78 : vector<294xf32> to vector<1x1x294xf32>
    %80 = vector.broadcast %79 : vector<1x1x294xf32> to vector<4x8x294xf32>
    %81 = arith.mulf %76, %80 : vector<4x8x294xf32>
    %82 = arith.addf %75, %81 : vector<4x8x294xf32>
    %c0_55 = arith.constant 0 : index
    %c0_56 = arith.constant 0 : index
    %c0_57 = arith.constant 0 : index
    %c0_58 = arith.constant 0 : index
    %83 = vector.load %arg6[%c0_55, %c0_56, %c0_57, %c0_58] : memref<1x4x8x294xf32, #tpu.memory_space<vmem>>, vector<1x4x8x294xf32>
    %84 = vector.shape_cast %83 : vector<1x4x8x294xf32> to vector<4x8x294xf32>
    %85 = vector.shape_cast %82 : vector<4x8x294xf32> to vector<1x4x8x294xf32>
    tpu.vector_store %arg6[%c0_55, %c0_56, %c0_57, %c0_58], %85 {strides = array<i32>} : memref<1x4x8x294xf32, #tpu.memory_space<vmem>>, vector<1x4x8x294xf32>,
    return
  }
  func.func @transform_0(%arg0: i32, %arg1: i32) -> (i32, i32, i32, i32) {
    %c0_i32 = arith.constant 0 : i32
    %c0_i32_0 = arith.constant 0 : i32
    %c0_i32_1 = arith.constant 0 : i32
    return %arg0, %arg1, %c0_i32, %c0_i32_0 : i32, i32, i32, i32
  }
  func.func @transform_1(%arg0: i32, %arg1: i32) -> (i32, i32, i32, i32) {
    %c4_i32 = arith.constant 4 : i32
    %0 = arith.muli %arg1, %c4_i32 : i32
    %c1_i32 = arith.constant 1 : i32
    %1 = arith.subi %0, %c1_i32 : i32
    %c0_i32 = arith.constant 0 : i32
    %2 = arith.maxsi %1, %c0_i32 : i32
    %c0_i32_0 = arith.constant 0 : i32
    %c0_i32_1 = arith.constant 0 : i32
    %c0_i32_2 = arith.constant 0 : i32
    return %arg0, %2, %c0_i32_0, %c0_i32_1 : i32, i32, i32, i32
  }
  func.func @transform_2(%arg0: i32, %arg1: i32) -> (i32, i32, i32, i32) {
    %c1_i32 = arith.constant 1 : i32
    %0 = arith.addi %arg1, %c1_i32 : i32
    %c4_i32 = arith.constant 4 : i32
    %1 = arith.muli %0, %c4_i32 : i32
    %c7_i32 = arith.constant 7 : i32
    %2 = arith.minsi %1, %c7_i32 : i32
    %c0_i32 = arith.constant 0 : i32
    %c0_i32_0 = arith.constant 0 : i32
    %c0_i32_1 = arith.constant 0 : i32
    return %arg0, %2, %c0_i32, %c0_i32_0 : i32, i32, i32, i32
  }
  func.func @transform_3(%arg0: i32, %arg1: i32) -> (i32, i32, i32) {
    %c0_i32 = arith.constant 0 : i32
    %c0_i32_0 = arith.constant 0 : i32
    %c0_i32_1 = arith.constant 0 : i32
    %c0_i32_2 = arith.constant 0 : i32
    return %c0_i32, %c0_i32_0, %c0_i32_1 : i32, i32, i32
  }
  func.func @transform_4(%arg0: i32, %arg1: i32) -> (i32, i32, i32, i32) {
    %c0_i32 = arith.constant 0 : i32
    %c0_i32_0 = arith.constant 0 : i32
    %c0_i32_1 = arith.constant 0 : i32
    return %arg0, %arg1, %c0_i32, %c0_i32_0 : i32, i32, i32, i32
  }
}

module attributes {stable_mosaic.version = 11 : i64} {
  func.func @_attn_proj_kernel(%arg0: i32, %arg1: memref<1x64x294xf32, #tpu.memory_space<vmem>>, %arg2: memref<2x49x49xf32, #tpu.memory_space<vmem>>, %arg3: memref<2x49x98xbf16, #tpu.memory_space<vmem>>, %arg4: memref<2xf32, #tpu.memory_space<smem>>, %arg5: memref<1x64x98xf32, #tpu.memory_space<vmem>>) attributes {dimension_semantics = [#tpu.dimension_semantics<parallel>], iteration_bounds = array<i64: 2>, scalar_prefetch = 0 : i64, scratch_operands = 0 : i64, tpu.core_type = #tpu.core_type<tc>, window_params = [{transform_indices = @transform_0, window_bounds = array<i64: 1, 64, 294>}, {pipeline_mode = #tpu.pipeline_mode<synchronous>, transform_indices = @transform_1, window_bounds = array<i64: 2, 49, 49>}, {pipeline_mode = #tpu.pipeline_mode<synchronous>, transform_indices = @transform_2, window_bounds = array<i64: 2, 49, 98>}, {transform_indices = @transform_3, window_bounds = array<i64: 2>}, {transform_indices = @transform_4, window_bounds = array<i64: 1, 64, 98>}]} {
    %c0 = arith.constant 0 : index
    %c0_0 = arith.constant 0 : index
    %c0_1 = arith.constant 0 : index
    %0 = vector.load %arg1[%c0, %c0_0, %c0_1] : memref<1x64x294xf32, #tpu.memory_space<vmem>>, vector<1x64x294xf32>
    %1 = vector.shape_cast %0 : vector<1x64x294xf32> to vector<64x294xf32>
    %cst = arith.constant 0.000000e+00 : f32
    %2 = vector.broadcast %cst : f32 to vector<64x98xf32>
    %3 = vector.extract_strided_slice %1 {offsets = [0, 0], sizes = [64, 49], strides = [1, 1]} : vector<64x294xf32> to vector<64x49xf32>
    %4 = vector.extract_strided_slice %1 {offsets = [0, 98], sizes = [64, 49], strides = [1, 1]} : vector<64x294xf32> to vector<64x49xf32>
    %5 = vector.extract_strided_slice %1 {offsets = [0, 196], sizes = [64, 49], strides = [1, 1]} : vector<64x294xf32> to vector<64x49xf32>
    %6 = arith.mulf %3, %3 : vector<64x49xf32>
    %cst_2 = arith.constant dense<0.000000e+00> : vector<49xf32>
    %7 = vector.multi_reduction <add>, %6, %cst_2 [0] : vector<64x49xf32> to vector<49xf32>
    %8 = vector.shape_cast %7 : vector<49xf32> to vector<1x49xf32>
    %cst_3 = arith.constant 1.000000e-24 : f32
    %9 = vector.broadcast %cst_3 : f32 to vector<1x49xf32>
    %10 = arith.maximumf %8, %9 : vector<1x49xf32>
    %11 = math.rsqrt %10 : vector<1x49xf32>
    %12 = vector.broadcast %11 : vector<1x49xf32> to vector<64x49xf32>
    %13 = arith.mulf %3, %12 : vector<64x49xf32>
    %14 = arith.mulf %4, %4 : vector<64x49xf32>
    %cst_4 = arith.constant dense<0.000000e+00> : vector<49xf32>
    %15 = vector.multi_reduction <add>, %14, %cst_4 [0] : vector<64x49xf32> to vector<49xf32>
    %16 = vector.shape_cast %15 : vector<49xf32> to vector<1x49xf32>
    %cst_5 = arith.constant 1.000000e-24 : f32
    %17 = vector.broadcast %cst_5 : f32 to vector<1x49xf32>
    %18 = arith.maximumf %16, %17 : vector<1x49xf32>
    %19 = math.rsqrt %18 : vector<1x49xf32>
    %20 = vector.broadcast %19 : vector<1x49xf32> to vector<64x49xf32>
    %21 = arith.mulf %4, %20 : vector<64x49xf32>
    %22 = arith.truncf %13 : vector<64x49xf32> to vector<64x49xbf16>
    %23 = arith.truncf %21 : vector<64x49xf32> to vector<64x49xbf16>
    %cst_6 = arith.constant dense<0.000000e+00> : vector<49x49xf32>
    %24 = tpu.matmul %22, %23, %cst_6 {dimension_numbers = #tpu.dot_dimension_numbers<[0], [0], [1], [1], [0, 1, 1, 1], [], []>} : vector<64x49xbf16>, vector<64x49xbf16>, vector<49x49xf32> -> vector<49x49xf32>
    %c0_7 = arith.constant 0 : index
    %c0_8 = arith.constant 0 : index
    %c0_9 = arith.constant 0 : index
    %25 = vector.load %arg2[%c0_7, %c0_8, %c0_9] : memref<2x49x49xf32, #tpu.memory_space<vmem>>, vector<1x49x49xf32>
    %26 = vector.shape_cast %25 : vector<1x49x49xf32> to vector<49x49xf32>
    %27 = arith.addf %24, %26 : vector<49x49xf32>
    %c0_10 = arith.constant 0 : index
    %28 = memref.load %arg4[%c0_10] : memref<2xf32, #tpu.memory_space<smem>>
    %29 = vector.broadcast %28 : f32 to vector<49x49xf32>
    %30 = arith.mulf %27, %29 : vector<49x49xf32>
    %cst_11 = arith.constant dense<0xFF800000> : vector<49xf32>
    %31 = vector.multi_reduction <maximumf>, %30, %cst_11 [1] : vector<49x49xf32> to vector<49xf32>
    %32 = vector.shape_cast %31 : vector<49xf32> to vector<49x1xf32>
    %33 = vector.broadcast %32 : vector<49x1xf32> to vector<49x49xf32>
    %34 = arith.subf %30, %33 : vector<49x49xf32>
    %35 = math.exp %34 : vector<49x49xf32>
    %cst_12 = arith.constant dense<0.000000e+00> : vector<49xf32>
    %36 = vector.multi_reduction <add>, %35, %cst_12 [1] : vector<49x49xf32> to vector<49xf32>
    %37 = vector.shape_cast %36 : vector<49xf32> to vector<49x1xf32>
    %38 = tpu.reciprocal %37 {approx = true} : vector<49x1xf32> -> vector<49x1xf32>
    %39 = vector.broadcast %38 : vector<49x1xf32> to vector<49x49xf32>
    %40 = arith.mulf %35, %39 : vector<49x49xf32>
    %41 = arith.truncf %5 : vector<64x49xf32> to vector<64x49xbf16>
    %42 = arith.truncf %40 : vector<49x49xf32> to vector<49x49xbf16>
    %cst_13 = arith.constant dense<0.000000e+00> : vector<64x49xf32>
    %43 = tpu.matmul %41, %42, %cst_13 {dimension_numbers = #tpu.dot_dimension_numbers<[1], [1], [0], [0], [0, 0, 1, 0], [], []>} : vector<64x49xbf16>, vector<49x49xbf16>, vector<64x49xf32> -> vector<64x49xf32>
    %44 = arith.truncf %43 : vector<64x49xf32> to vector<64x49xbf16>
    %c0_14 = arith.constant 0 : index
    %c0_15 = arith.constant 0 : index
    %c0_16 = arith.constant 0 : index
    %45 = vector.load %arg3[%c0_14, %c0_15, %c0_16] : memref<2x49x98xbf16, #tpu.memory_space<vmem>>, vector<1x49x98xbf16>
    %46 = vector.shape_cast %45 : vector<1x49x98xbf16> to vector<49x98xbf16>
    %cst_17 = arith.constant dense<0.000000e+00> : vector<64x98xf32>
    %47 = tpu.matmul %44, %46, %cst_17 {dimension_numbers = #tpu.dot_dimension_numbers<[1], [0], [0], [1], [0, 0, 1, 1], [], []>} : vector<64x49xbf16>, vector<49x98xbf16>, vector<64x98xf32> -> vector<64x98xf32>
    %48 = arith.addf %2, %47 : vector<64x98xf32>
    %49 = vector.extract_strided_slice %1 {offsets = [0, 49], sizes = [64, 49], strides = [1, 1]} : vector<64x294xf32> to vector<64x49xf32>
    %50 = vector.extract_strided_slice %1 {offsets = [0, 147], sizes = [64, 49], strides = [1, 1]} : vector<64x294xf32> to vector<64x49xf32>
    %51 = vector.extract_strided_slice %1 {offsets = [0, 245], sizes = [64, 49], strides = [1, 1]} : vector<64x294xf32> to vector<64x49xf32>
    %52 = arith.mulf %49, %49 : vector<64x49xf32>
    %cst_18 = arith.constant dense<0.000000e+00> : vector<49xf32>
    %53 = vector.multi_reduction <add>, %52, %cst_18 [0] : vector<64x49xf32> to vector<49xf32>
    %54 = vector.shape_cast %53 : vector<49xf32> to vector<1x49xf32>
    %cst_19 = arith.constant 1.000000e-24 : f32
    %55 = vector.broadcast %cst_19 : f32 to vector<1x49xf32>
    %56 = arith.maximumf %54, %55 : vector<1x49xf32>
    %57 = math.rsqrt %56 : vector<1x49xf32>
    %58 = vector.broadcast %57 : vector<1x49xf32> to vector<64x49xf32>
    %59 = arith.mulf %49, %58 : vector<64x49xf32>
    %60 = arith.mulf %50, %50 : vector<64x49xf32>
    %cst_20 = arith.constant dense<0.000000e+00> : vector<49xf32>
    %61 = vector.multi_reduction <add>, %60, %cst_20 [0] : vector<64x49xf32> to vector<49xf32>
    %62 = vector.shape_cast %61 : vector<49xf32> to vector<1x49xf32>
    %cst_21 = arith.constant 1.000000e-24 : f32
    %63 = vector.broadcast %cst_21 : f32 to vector<1x49xf32>
    %64 = arith.maximumf %62, %63 : vector<1x49xf32>
    %65 = math.rsqrt %64 : vector<1x49xf32>
    %66 = vector.broadcast %65 : vector<1x49xf32> to vector<64x49xf32>
    %67 = arith.mulf %50, %66 : vector<64x49xf32>
    %68 = arith.truncf %59 : vector<64x49xf32> to vector<64x49xbf16>
    %69 = arith.truncf %67 : vector<64x49xf32> to vector<64x49xbf16>
    %cst_22 = arith.constant dense<0.000000e+00> : vector<49x49xf32>
    %70 = tpu.matmul %68, %69, %cst_22 {dimension_numbers = #tpu.dot_dimension_numbers<[0], [0], [1], [1], [0, 1, 1, 1], [], []>} : vector<64x49xbf16>, vector<64x49xbf16>, vector<49x49xf32> -> vector<49x49xf32>
    %c1 = arith.constant 1 : index
    %c0_23 = arith.constant 0 : index
    %c0_24 = arith.constant 0 : index
    %71 = vector.load %arg2[%c1, %c0_23, %c0_24] : memref<2x49x49xf32, #tpu.memory_space<vmem>>, vector<1x49x49xf32>
    %72 = vector.shape_cast %71 : vector<1x49x49xf32> to vector<49x49xf32>
    %73 = arith.addf %70, %72 : vector<49x49xf32>
    %c1_25 = arith.constant 1 : index
    %74 = memref.load %arg4[%c1_25] : memref<2xf32, #tpu.memory_space<smem>>
    %75 = vector.broadcast %74 : f32 to vector<49x49xf32>
    %76 = arith.mulf %73, %75 : vector<49x49xf32>
    %cst_26 = arith.constant dense<0xFF800000> : vector<49xf32>
    %77 = vector.multi_reduction <maximumf>, %76, %cst_26 [1] : vector<49x49xf32> to vector<49xf32>
    %78 = vector.shape_cast %77 : vector<49xf32> to vector<49x1xf32>
    %79 = vector.broadcast %78 : vector<49x1xf32> to vector<49x49xf32>
    %80 = arith.subf %76, %79 : vector<49x49xf32>
    %81 = math.exp %80 : vector<49x49xf32>
    %cst_27 = arith.constant dense<0.000000e+00> : vector<49xf32>
    %82 = vector.multi_reduction <add>, %81, %cst_27 [1] : vector<49x49xf32> to vector<49xf32>
    %83 = vector.shape_cast %82 : vector<49xf32> to vector<49x1xf32>
    %84 = tpu.reciprocal %83 {approx = true} : vector<49x1xf32> -> vector<49x1xf32>
    %85 = vector.broadcast %84 : vector<49x1xf32> to vector<49x49xf32>
    %86 = arith.mulf %81, %85 : vector<49x49xf32>
    %87 = arith.truncf %51 : vector<64x49xf32> to vector<64x49xbf16>
    %88 = arith.truncf %86 : vector<49x49xf32> to vector<49x49xbf16>
    %cst_28 = arith.constant dense<0.000000e+00> : vector<64x49xf32>
    %89 = tpu.matmul %87, %88, %cst_28 {dimension_numbers = #tpu.dot_dimension_numbers<[1], [1], [0], [0], [0, 0, 1, 0], [], []>} : vector<64x49xbf16>, vector<49x49xbf16>, vector<64x49xf32> -> vector<64x49xf32>
    %90 = arith.truncf %89 : vector<64x49xf32> to vector<64x49xbf16>
    %c1_29 = arith.constant 1 : index
    %c0_30 = arith.constant 0 : index
    %c0_31 = arith.constant 0 : index
    %91 = vector.load %arg3[%c1_29, %c0_30, %c0_31] : memref<2x49x98xbf16, #tpu.memory_space<vmem>>, vector<1x49x98xbf16>
    %92 = vector.shape_cast %91 : vector<1x49x98xbf16> to vector<49x98xbf16>
    %cst_32 = arith.constant dense<0.000000e+00> : vector<64x98xf32>
    %93 = tpu.matmul %90, %92, %cst_32 {dimension_numbers = #tpu.dot_dimension_numbers<[1], [0], [0], [1], [0, 0, 1, 1], [], []>} : vector<64x49xbf16>, vector<49x98xbf16>, vector<64x98xf32> -> vector<64x98xf32>
    %94 = arith.addf %48, %93 : vector<64x98xf32>
    %c0_33 = arith.constant 0 : index
    %c0_34 = arith.constant 0 : index
    %c0_35 = arith.constant 0 : index
    %95 = vector.load %arg5[%c0_33, %c0_34, %c0_35] : memref<1x64x98xf32, #tpu.memory_space<vmem>>, vector<1x64x98xf32>
    %96 = vector.shape_cast %95 : vector<1x64x98xf32> to vector<64x98xf32>
    %97 = vector.shape_cast %94 : vector<64x98xf32> to vector<1x64x98xf32>
    tpu.vector_store %arg5[%c0_33, %c0_34, %c0_35], %97 {strides = array<i32>} : memref<1x64x98xf32, #tpu.memory_space<vmem>>, vector<1x64x98xf32>,
    return
  }
  func.func @transform_0(%arg0: i32) -> (i32, i32, i32) {
    %c0_i32 = arith.constant 0 : i32
    %c0_i32_0 = arith.constant 0 : i32
    %c0_i32_1 = arith.constant 0 : i32
    return %arg0, %c0_i32, %c0_i32_0 : i32, i32, i32
  }
  func.func @transform_1(%arg0: i32) -> (i32, i32, i32) {
    %c0_i32 = arith.constant 0 : i32
    %c0_i32_0 = arith.constant 0 : i32
    %c0_i32_1 = arith.constant 0 : i32
    %c0_i32_2 = arith.constant 0 : i32
    return %c0_i32, %c0_i32_0, %c0_i32_1 : i32, i32, i32
  }
  func.func @transform_2(%arg0: i32) -> (i32, i32, i32) {
    %c0_i32 = arith.constant 0 : i32
    %c0_i32_0 = arith.constant 0 : i32
    %c0_i32_1 = arith.constant 0 : i32
    %c0_i32_2 = arith.constant 0 : i32
    return %c0_i32, %c0_i32_0, %c0_i32_1 : i32, i32, i32
  }
  func.func @transform_3(%arg0: i32) -> i32 {
    %c0_i32 = arith.constant 0 : i32
    %c0_i32_0 = arith.constant 0 : i32
    return %c0_i32 : i32
  }
  func.func @transform_4(%arg0: i32) -> (i32, i32, i32) {
    %c0_i32 = arith.constant 0 : i32
    %c0_i32_0 = arith.constant 0 : i32
    %c0_i32_1 = arith.constant 0 : i32
    return %arg0, %c0_i32, %c0_i32_0 : i32, i32, i32
  }
}

</mosaic_0001>

<bundles_post_ra>
// kernel: mdta_forward.3
= control target key start
LH: loop header
LB: loop body
LE: loop exit
PB: predicated region body
PF: predicated region fallthrough
CT: control target
= control target key end

     0   :  { %s672_s9 = smov 0   ;;  %s809_s0 = inlined_call_operand.vmem [shape: f32[128,98], index: 0, kind: input, shape index: {}]   ;;  %s810_s1 = inlined_call_operand.vmem [shape: bf16[98,294], index: 1, kind: input, shape index: {}]   ;;  %s811_s2 = inlined_call_operand.vmem [shape: f32[128,294], index: 2, kind: output, shape index: {}]  }
   0x1 LB: > { %s536_s10 = sadd.s32 4294967295, %s654_s9   ;;  %p540_p0 = scmp.ge.s32.totalorder %s654_s9, 1  ;;  %s654_s9 = sphi %s672_s9, %s12_s9  }
   0x2   : > { %p113_p1 = scmp.lt.s32.totalorder %s654_s9, 3 }
   0x4   : > { %p114_p2 = pnand %p540_p0, %p113_p1 }
   0x5   : > { %v621_v0 = vld [vmem:[%s810_s1 + $0x4] ss:$12 sps:$4 sm:$0xff] (!%p114_p2)   ;;  %v623_v1 = vld [vmem:[%s810_s1] ss:$12 sps:$4 sm:$0xff] (!%p114_p2)   ;;  %v656_v2 = vmov (!%p114_p2), 0   ;;  %s541_s15 = sshll.u32 (!%p114_p2), %s536_s10, 3 }
   0x6   : > { %117 = sbr.rel (%p114_p2) target bundleno = 274 (0x112), region = 28  ;;  %347 = vmatprep.mubr.bf16.mxu0 (!%p114_p2), %v656_v2  ;;  %315 = vmatprep.subr.bf16.mxu0 (!%p114_p2), %v621_v0  ;;  %v624_v3 = vld [vmem:[%s810_s1 + $0x1c] ss:$12 sps:$4 sm:$0xff] (!%p114_p2)   ;;  %p137_p3 = scmp.lt.s32.totalorder (!%p114_p2), %s541_s15, 15  ;;  %v626_v4 = vld [vmem:[%s810_s1 + $0x18] ss:$12 sps:$4 sm:$0xff] (!%p114_p2)  }
   0x7   : > { %316 = vmatpush1.bf16.msra.mxu0 (!%p114_p2), %v623_v1  ;;  %v627_v5 = vld [vmem:[%s810_s1 + $0x34] ss:$12 sps:$4 sm:$0xff] (!%p114_p2)   ;;  %v629_v7 = vld [vmem:[%s810_s1 + $0x30] ss:$12 sps:$4 sm:$0xff] (!%p114_p2)   ;;  %v630_v8 = vld [vmem:[%s810_s1 + $0x4c] ss:$12 sps:$4 sm:$0xff] (!%p114_p2)  }
   0x8   : > { %317 = vmatprep.subr.bf16.mxu0 (!%p114_p2), %v624_v3  ;;  %v633_v6 = vld [vmem:[%s810_s1 + $0x8] ss:$12 sps:$4 sm:$0xff] (!%p114_p2)   ;;  %v637_v9 = vld [vmem:[%s810_s1 + $0x20] ss:$12 sps:$4 sm:$0xff] (!%p114_p2)   ;;  %v641_v10 = vld [vmem:[%s810_s1 + $0x38] ss:$12 sps:$4 sm:$0xff] (!%p114_p2)  }
   0x9   : > { %588 = vmatprep.subr.bf16.mxu1 (!%p114_p2), %v633_v6  ;;  %v632_v11 = vld [vmem:[%s810_s1 + $0x48] ss:$12 sps:$4 sm:$0xff] (!%p114_p2)   ;;  %v634_v12 = vld [vmem:[%s810_s1 + $0x64] ss:$12 sps:$4 sm:$0xff] (!%p114_p2)   ;;  %vm292_vm0 = vcmask (!%p114_p2), 801792   ;;  %vm305_vm1 = vcmask (!%p114_p2), 1040384  }
   0xa   : > { %589 = vmatpush3.bf16.msra.mxu1 (!%p114_p2), %v633_v6  ;;  %v644_v16 = vld [vmem:[%s810_s1 + $0x50] ss:$12 sps:$4 sm:$0xff] (!%p114_p2)   ;;  %v636_v17 = vld [vmem:[%s810_s1 + $0x60] ss:$12 sps:$4 sm:$0xff] (!%p114_p2)   ;;  %v645_v20 = vld [vmem:[%s810_s1 + $0x68] ss:$12 sps:$4 sm:$0xff] (!%p114_p2)  }
   0xb   : > { %318 = vmatpush1.bf16.msra.mxu0 (!%p114_p2), %v626_v4  ;;  %590 = vmatprep.subr.bf16.mxu1 (!%p114_p2), %v637_v9  ;;  %v638_v18 = vld [vmem:[%s810_s1 + $0x7c] ss:$12 sps:$4 sm:$0xff] (!%p114_p2)   ;;  %v186_v19 = vld [vmem:[%s810_s1 + $0x90] sm:$0x11] (!%p114_p2)  ;;  %v640_v21 = vld [vmem:[%s810_s1 + $0x78] ss:$12 sps:$4 sm:$0xff] (!%p114_p2)  }
   0xc   : > { %319 = vmatprep.subr.bf16.mxu0 (!%p114_p2), %v627_v5  ;;  %v564_v22 = vcombine.high (!%p114_p2), %v186_v19, %v186_v19  ;;  %v563_v23 = vcombine.low (!%p114_p2), %v186_v19, %v186_v19  ;;  %v646_v24 = vld [vmem:[%s810_s1 + $0x80] ss:$12 sps:$4 sm:$0xff] (!%p114_p2)   ;;  %v647_v26 = vld [vmem:[%s810_s1 + $0x98] ss:$0 sps:$4 sm:$0x11] (!%p114_p2)   ;;  %vm455_vm2 = vcmask (!%p114_p2), 310272  }
   0xd   : > { %s813_s15 = smov (!%p137_p3, %s541_s15), 15  ;;  %v313_v27 = vsel %vm305_vm1, %v647_v26, 0 }
   0xe   : > { %s542_s24 = sshll.u32 %s813_s15, 3  ;;  %591 = vmatpush3.bf16.msra.mxu1 %v637_v9  ;;  %v307_v25 = vsel %vm305_vm1, %v563_v23, 0  ;;  %s611_s30 = smul.u32 24, %s813_s15 }
   0xf   : > { %s714_s5 = scalar_lea.vmem %s809_s0, %s542_s24  ;;  %320 = vmatpush1.bf16.msra.mxu0 %v629_v7  ;;  %592 = vmatprep.subr.bf16.mxu1 %v641_v10 }
  0x10   : > { %321 = vmatprep.subr.bf16.mxu0 %v630_v8  ;;  %v150_v13 = vld [vmem:[%s714_s5] sm:$0xff]  ;;  %v151_v14 = vld [vmem:[%s714_s5 + $0x8] sm:$0xff]  ;;  %v152_v28 = vld [vmem:[%s714_s5 + $0x10] sm:$0xff]  ;;  %s772_s6 = scalar_lea.vmem %s811_s2, %s611_s30 }
  0x11   : > { %v158_v15 = vpack.c.bf16 %v151_v14, %v150_v13  ;;  %v153_v29 = vld [vmem:[%s714_s5 + $0x18] sm:$0xff]  ;;  %v154_v30 = vld [vmem:[%s714_s5 + $0x20] sm:$0xff]  ;;  %v155_v31 = vld [vmem:[%s714_s5 + $0x28] sm:$0xff] }
  0x12   : > { %593 = vmatpush3.bf16.msra.mxu1 %v641_v10  ;;  %v159_v32 = vpack.c.bf16 %v153_v29, %v152_v28  ;;  %v160_v33 = vpack.c.bf16 %v155_v31, %v154_v30  ;;  %v156_v34 = vld [vmem:[%s714_s5 + $0x30] sm:$0xff]  ;;  %v157_v35 = vld [vmem:[%s714_s5 + $0x38] sm:$0xff] }
  0x13   : > { %322 = vmatpush1.bf16.msra.mxu0 %v632_v11  ;;  %602 = vmatprep.mubr.msk.bf16.mxu1 %vm292_vm0, %v158_v15  ;;  %v161_v36 = vpack.c.bf16 %v157_v35, %v156_v34 }
  0x14   : > { %323 = vmatprep.subr.bf16.mxu0 %v634_v12  ;;  %594 = vmatprep.subr.bf16.mxu1 %v644_v16 }
  0x16   : > { %595 = vmatpush3.bf16.msra.mxu1 %v644_v16 }
  0x17   : > { %324 = vmatpush1.bf16.msra.mxu0 %v636_v17  ;;  %596 = vmatprep.subr.bf16.mxu1 %v645_v20 }
  0x18   : > { %325 = vmatprep.subr.bf16.mxu0 %v638_v18 }
  0x1a   : > { %597 = vmatpush3.bf16.msra.mxu1 %v645_v20 }
  0x1b   : > { %326 = vmatpush1.bf16.msra.mxu0 %v640_v21  ;;  %598 = vmatprep.subr.bf16.mxu1 %v646_v24 }
  0x1c   : > { %566 = vmatprep.subr.msk.bf16.mxu0 %vm305_vm1, %v564_v22 }
  0x1e   : > { %599 = vmatpush3.bf16.msra.mxu1 %v646_v24 }
  0x1f   : > { %328 = vmatpush1.bf16.msra.mxu0 %v307_v25  ;;  %610 = vmatprep.subr.msk.bf16.mxu1 %vm305_vm1, %v647_v26 }
  0x22   : > { %567 = vmatmul.mubr.msk.bf16.vlgmr.msra.gmra.mrb[0].mxu0 %vm292_vm0, %v158_v15  ;;  %601 = vmatpush3.bf16.msra.mxu1 %v313_v27 }
  0x23   : > { %357 = vmatprep.mubr.bf16.mxu0 %v656_v2 }
  0x25   : > { %603 = vmatmul.mubr.msk.bf16.vlgmr.msra.gmra.mrb[0].mxu1 %vm292_vm0, %v159_v32 }
  0x26   : > { %606 = vmatprep.mubr.msk.bf16.mxu1 %vm292_vm0, %v160_v33 }
  0x2a   : > { %568 = vmatmul.mubr.msk.bf16.gmra.mrb[4].mxu0 %vm292_vm0, %v159_v32 }
  0x2b   : > { %367 = vmatprep.mubr.bf16.mxu0 %v656_v2 }
  0x2d   : > { %607 = vmatmul.mubr.msk.bf16.gmra.mrb[4].mxu1 %vm292_vm0, %v161_v36 }
  0x32   : > { %569 = vmatmul.mubr.msk.bf16.gmra.mrb[8].mxu0 %vm292_vm0, %v160_v33 }
  0x33   : > { %377 = vmatprep.mubr.bf16.mxu0 %v656_v2 }
  0x3a   : > { %570 = vmatmul.mubr.msk.bf16.gmra.mrb[12].mxu0 %vm292_vm0, %v161_v36 }
  0xf5   : > { %v349_v37 = vpop.f32.mrb[0].mxu0 }
  0xf6   : > { %453 = vst [vmem:[%s772_s6] sm:$0xff] %v349_v37  ;;  %v351_v38 = vpop.f32.mrb[1].mxu0 }
  0xf7   : > { %454 = vst [vmem:[%s772_s6 + $0x8] sm:$0xff] %v351_v38  ;;  %v353_v39 = vpop.f32.mrb[2].mxu0 }
  0xf8   : > { %457 = vst [vmem:[%s772_s6 + $0x18] sm:$0xff] %v353_v39  ;;  %v355_v40 = vpop.f32.mrb[3].mxu0  ;;  %v604_v41 = vpop.f32.mrb[0].mxu1 }
  0xf9   : > { %458 = vst [vmem:[%s772_s6 + $0x20] sm:$0xff] %v355_v40  ;;  %462 = vst.msk [vmem:[%s772_s6 + $0x40] sm:$0xff] %vm455_vm2, %v604_v41  ;;  %v422_v42 = vpop.f32.mrb[1].mxu1 }
  0xfa   : > { %456 = vst.msk [vmem:[%s772_s6 + $0x10] sm:$0xff] %vm455_vm2, %v422_v42  ;;  %v605_v44 = vpop.f32.mrb[2].mxu1 }
  0xfb   : > { %465 = vst.msk [vmem:[%s772_s6 + $0x58] sm:$0xff] %vm455_vm2, %v605_v44  ;;  %v425_v46 = vpop.f32.mrb[3].mxu1 }
  0xfc   : > { %459 = vst.msk [vmem:[%s772_s6 + $0x28] sm:$0xff] %vm455_vm2, %v425_v46 }
  0xfd   : > { %v359_v43 = vpop.f32.mrb[4].mxu0 }
  0xfe   : > { %460 = vst [vmem:[%s772_s6 + $0x30] sm:$0xff] %v359_v43  ;;  %v361_v45 = vpop.f32.mrb[5].mxu0 }
  0xff   : > { %461 = vst [vmem:[%s772_s6 + $0x38] sm:$0xff] %v361_v45  ;;  %v363_v47 = vpop.f32.mrb[6].mxu0 }
 0x100   : > { %463 = vst [vmem:[%s772_s6 + $0x48] sm:$0xff] %v363_v47  ;;  %v365_v48 = vpop.f32.mrb[7].mxu0  ;;  %v608_v49 = vpop.f32.mrb[4].mxu1 }
 0x101   : > { %464 = vst [vmem:[%s772_s6 + $0x50] sm:$0xff] %v365_v48  ;;  %474 = vst.msk [vmem:[%s772_s6 + $0xa0] sm:$0xff] %vm455_vm2, %v608_v49  ;;  %v438_v50 = vpop.f32.mrb[5].mxu1 }
 0x102   : > { %468 = vst.msk [vmem:[%s772_s6 + $0x70] sm:$0xff] %vm455_vm2, %v438_v50  ;;  %v609_v52 = vpop.f32.mrb[6].mxu1 }
 0x103   : > { %477 = vst.msk [vmem:[%s772_s6 + $0xb8] sm:$0xff] %vm455_vm2, %v609_v52  ;;  %v441_v54 = vpop.f32.mrb[7].mxu1 }
 0x104   : > { %471 = vst.msk [vmem:[%s772_s6 + $0x88] sm:$0xff] %vm455_vm2, %v441_v54 }
 0x105   : > { %v369_v51 = vpop.f32.mrb[8].mxu0 }
 0x106   : > { %466 = vst [vmem:[%s772_s6 + $0x60] sm:$0xff] %v369_v51  ;;  %v371_v53 = vpop.f32.mrb[9].mxu0 }
 0x107   : > { %467 = vst [vmem:[%s772_s6 + $0x68] sm:$0xff] %v371_v53  ;;  %v373_v55 = vpop.f32.mrb[10].mxu0 }
 0x108   : > { %469 = vst [vmem:[%s772_s6 + $0x78] sm:$0xff] %v373_v55  ;;  %v375_v56 = vpop.f32.mrb[11].mxu0 }
 0x109   : > { %470 = vst [vmem:[%s772_s6 + $0x80] sm:$0xff] %v375_v56 }
 0x10d   : > { %v379_v57 = vpop.f32.mrb[12].mxu0 }
 0x10e   : > { %472 = vst [vmem:[%s772_s6 + $0x90] sm:$0xff] %v379_v57  ;;  %v381_v58 = vpop.f32.mrb[13].mxu0 }
 0x10f   : > { %473 = vst [vmem:[%s772_s6 + $0x98] sm:$0xff] %v381_v58  ;;  %v383_v59 = vpop.f32.mrb[14].mxu0 }
 0x110   : > { %475 = vst [vmem:[%s772_s6 + $0xa8] sm:$0xff] %v383_v59  ;;  %v385_v60 = vpop.f32.mrb[15].mxu0 }
 0x111   : > { %476 = vst [vmem:[%s772_s6 + $0xb0] sm:$0xff] %v385_v60 }
 0x112 PF: > { %s12_s9 = sadd.s32 1, %s654_s9  }
 0x113   : > { %p9_p4 = scmp.ge.s32.totalorder %s12_s9, 4  }
 0x115   :  { %11 = sbr.rel (!%p9_p4) target bundleno = 1 (0x1), region = 58 }

// kernel: mdta_forward.4
= control target key start
LH: loop header
LB: loop body
LE: loop exit
PB: predicated region body
PF: predicated region fallthrough
CT: control target
= control target key end

     0   :  { %s1783_s15 = smov 0   ;;  %s1785_s16 = smov 0   ;;  %s2544_s0 = inlined_call_operand.vmem [shape: f32[2,8,8,294], index: 0, kind: input, shape index: {}, may-alias: {0,1,2}]   ;;  %s2545_s1 = inlined_call_operand.vmem [shape: f32[2,8,8,294], index: 1, kind: input, shape index: {}, may-alias: {0,1,2}]   ;;  %s2546_s2 = inlined_call_operand.vmem [shape: f32[2,8,8,294], index: 2, kind: input, shape index: {}, may-alias: {0,1,2}]   ;;  %s2547_s3 = inlined_call_operand.vmem [shape: f32[3,3,294], index: 3, kind: input, shape index: {}]   ;;  %s2548_s4 = inlined_call_operand.vmem [shape: f32[2,8,8,294], index: 4, kind: output, shape index: {}]  }
   0x1   :  { %s1787_s17 = smov 0   ;;  %s1789_s18 = smov 0  }
   0x2   :  { %s1791_s19 = smov 0  }
   0x3 LB: > { %s23_s20 = sadd.s32 1, %s1747_s17  ;;  %s26_s21 = sadd.s32 1, %s1751_s18  ;;  %s1755_s19 = sphi %s1791_s19, %s14_s19   ;;  %s1751_s18 = sphi %s1789_s18, %s2601_s18   ;;  %s1747_s17 = sphi %s1787_s17, %s2600_s17   ;;  %s1743_s16 = sphi %s1785_s16, %s2599_s16   ;;  %s1739_s15 = sphi %s1783_s15, %s2598_s15  }
   0x4   : > { %p24_p0 = scmp.ge.s32.totalorder %s23_s20, 2  ;;  %p1618_p1 = scmp.ge.s32.totalorder %s1755_s19, 1 }
   0x5   : > { %p248_p2 = scmp.lt.s32.totalorder %s1755_s19, 5 }
   0x6   : > { %s2603_s20 = smov (%p24_p0, %s23_s20), 0  ;;  %s2605_s21 = smov (!%p24_p0, %s26_s21), %s1751_s18 }
   0x7   : > { %p249_p3 = pnand %p1618_p1, %p248_p2  ;;  %p28_p4 = scmp.ge.s32.totalorder %s2605_s21, 2 }
   0x9   : > { %s2607_s21 = smov (%p28_p4, %s2605_s21), 0  ;;  %252 = sbr.rel (%p249_p3) target bundleno = 180 (0xb4), region = 36 }
  0x10   : > { %v366_v0 = vlaneseq  ;;  %s1816_s22 = sshll.u32 %s1739_s15, 2  ;;  %p311_p5 = scmp.lt.s32.totalorder %s1743_s16, 1  ;;  %v1757_v1 = vmov 0.0   ;;  %v1836_v3 = vld [vmem:[%s2547_s3] ss:$4 sm:$0x7] }
  0x11   : > { %p313_p6 = scmp.lt.s32.totalorder %s1816_s22, 7  ;;  %s1820_s23 = sadd.s32 4294967295, %s1816_s22  ;;  %v1841_v4 = vld [vmem:[%s2547_s3 + $0x1] ss:$4 sm:$0x7]  ;;  %vm426_vm1 = vcmask 310273  }
  0x12   : > { %vm368_vm0 = vcmp.lt.s32.totalorder %v366_v0, 294  ;;  %s2609_s16 = smov (!%p311_p5, %s1743_s16), 1  ;;  %v570_v2 = vshrl.u32 %v366_v0, 7  ;;  %p323_p7 = scmp.gt.s32.totalorder %s1820_s23, 0  ;;  %vm430_vm2 = vcmask 303104   ;;  %vm674_vm3 = vcmask 1046528  }
  0x13   : > { %373 = vst.msk [vmem:[#allocation2 + $0x30] ss:$8 sm:$0x7] %vm368_vm0, %v1757_v1  ;;  %370 = vst.msk [vmem:[#allocation2] ss:$8 sm:$0x7] %vm368_vm0, %v1757_v1 }
  0x14   : > { %376 = vst.msk [vmem:[#allocation2 + $0x60] ss:$8 sm:$0x7] %vm368_vm0, %v1757_v1  ;;  %379 = vst.msk [vmem:[#allocation2 + $0x90] ss:$8 sm:$0x7] %vm368_vm0, %v1757_v1 }
  0x15   : > { %382 = vst.msk [vmem:[#allocation2 + $0xc0] ss:$8 sm:$0x7] %vm368_vm0, %v1757_v1  ;;  %385 = vst.msk [vmem:[#allocation2 + $0xf0] ss:$8 sm:$0x7] %vm368_vm0, %v1757_v1 }
  0x16   : > { %388 = vst.msk [vmem:[#allocation2 + $0x19] ss:$8 sm:$0x7] %vm368_vm0, %v1757_v1  ;;  %391 = vst.msk [vmem:[#allocation2 + $0x49] ss:$8 sm:$0x7] %vm368_vm0, %v1757_v1 }
  0x17   : > { %394 = vst.msk [vmem:[#allocation2 + $0x79] ss:$8 sm:$0x7] %vm368_vm0, %v1757_v1  ;;  %397 = vst.msk [vmem:[#allocation2 + $0xa9] ss:$8 sm:$0x7] %vm368_vm0, %v1757_v1 }
  0x18   : > { %400 = vst.msk [vmem:[#allocation2 + $0xd9] ss:$8 sm:$0x7] %vm368_vm0, %v1757_v1  ;;  %403 = vst.msk [vmem:[#allocation2 + $0x109] ss:$8 sm:$0x7] %vm368_vm0, %v1757_v1 }
  0x19   : > { %s314_s24 = scalar_select %p313_p6, %s1816_s22, 7  ;;  %v1843_v5 = vsub.s32 0, %v570_v2  ;;  %v1850_v6 = vld [vmem:[%s2547_s3 + $0x2] ss:$4 sm:$0x7]  ;;  %v1870_v9 = vsub.s32 1, %v570_v2 }
  0x1a   : > { %s1825_s25 = smul.u32 24, %s2609_s16  ;;  %p1623_p8 = scmp.lt.s32.totalorder %s1820_s23, 7  ;;  %v1863_v7 = vld [vmem:[%s2547_s3 + $0xc] ss:$4 sm:$0x7]  ;;  %v1872_v10 = vsub.s32 2, %v570_v2 }
  0x1b   : > { %s1654_s26 = smul.u32 3, %s314_s24  ;;  %p405_p9 = scmp.eq.s32.totalorder %s1739_s15, 0  ;;  %v1868_v8 = vld [vmem:[%s2547_s3 + $0xd] ss:$4 sm:$0x7]  ;;  %v1886_v20 = vrot.slane %v1836_v3, %v1843_v5  ;;  %v1898_v28 = vrot.slane %v1841_v4, %v1843_v5  ;;  %v1912_v35 = vrot.slane %v1850_v6, %v1843_v5  ;;  %v1919_v39 = vrot.slane %v1863_v7, %v1843_v5 }
  0x1c   : > { %s324_s27 = scalar_select %p323_p7, %s1820_s23, 0  ;;  %v1891_v21 = vld [vmem:[%s2547_s3 + $0xe] ss:$4 sm:$0x7]  ;;  %v1923_v40 = vrot.slane %v1868_v8, %v1843_v5  ;;  %vm801_vm4 = vcmask 1045504   ;;  %v1939_v43 = vrot.slane %v1836_v3, %v1870_v9  ;;  %v1943_v44 = vrot.slane %v1841_v4, %v1870_v9 }
  0x1d   : > { %s1831_s28 = sadd.s32 %s1825_s25, %s1654_s26  ;;  %s1653_s13 = sadd.s32 4, %s1816_s22  ;;  %v1903_v29 = vld [vmem:[%s2547_s3 + $0x18] ss:$4 sm:$0x7]  ;;  %v1947_v45 = vrot.slane %v1850_v6, %v1870_v9  ;;  %v1951_v46 = vrot.slane %v1891_v21, %v1843_v5  ;;  %v1955_v47 = vrot.slane %v1863_v7, %v1870_v9  ;;  %v1959_v48 = vrot.slane %v1868_v8, %v1870_v9 }
  0x1e   : > { %s1620_s7 = sshll.u32 %s1831_s28, 3  ;;  %s2611_s27 = smov (!%p1623_p8, %s324_s27), 7  ;;  %2573 = vst [vmem:[#allocation3_spill] sm:$0xff] %v1923_v40  ;;  %v1642_v42 = vld [vmem:[%s2547_s3 + $0x19] ss:$4 sm:$0x7]  ;;  %v1970_v49 = vrot.slane %v1903_v29, %v1843_v5  ;;  %v1977_v51 = vrot.slane %v1891_v21, %v1870_v9  ;;  %v1981_v52 = vrot.slane %v1903_v29, %v1870_v9  ;;  %v1995_v55 = vrot.slane %v1836_v3, %v1872_v10 }
  0x1f   : > { %s1857_s12 = scalar_lea.vmem %s2544_s0, %s1620_s7  ;;  %s1656_s6 = smul.u32 3, %s2611_s27  ;;  %v1643_v50 = vld [vmem:[%s2547_s3 + $0x1a] ss:$4 sm:$0x7]  ;;  %v1988_v53 = vrot.slane %v1642_v42, %v1843_v5  ;;  %v1991_v54 = vrot.slane %v1642_v42, %v1870_v9  ;;  %v1999_v56 = vrot.slane %v1841_v4, %v1872_v10  ;;  %v2003_v57 = vrot.slane %v1850_v6, %v1872_v10 }
  0x20   : > { %v458_v11 = vld [vmem:[%s1857_s12] sm:$0xff]  ;;  %v459_v12 = vld [vmem:[%s1857_s12 + $0x8] sm:$0xff]  ;;  %v460_v13 = vld [vmem:[%s1857_s12 + $0x10] sm:$0xff]  ;;  %p1930_p10 = scmp.lt.s32.totalorder %s1653_s13, 7  ;;  %v2007_v58 = vrot.slane %v1863_v7, %v1872_v10  ;;  %v2011_v59 = vrot.slane %v1868_v8, %v1872_v10  ;;  %v2015_v60 = vrot.slane %v1891_v21, %v1872_v10  ;;  %p432_p11 = scmp.eq.s32.totalorder %s1739_s15, 1  ;;  %v2025_v0 = vrot.slane %v1643_v50, %v1843_v5 }
  0x21   : > { %v482_v14 = vrot.slane %v458_v11, 7  ;;  %v483_v15 = vrot.slane %v459_v12, 7  ;;  %v484_v16 = vrot.slane %v460_v13, 7  ;;  %v461_v17 = vld [vmem:[%s1857_s12 + $0x18] sm:$0xff]  ;;  %v462_v18 = vld [vmem:[%s1857_s12 + $0x20] sm:$0xff]  ;;  %v463_v19 = vld [vmem:[%s1857_s12 + $0x28] sm:$0xff]  ;;  %s331_s27 = sadd.s32 %s1656_s6, %s1825_s25  ;;  %v2028_v1 = vrot.slane %v1643_v50, %v1870_v9  ;;  %s2147_s8 = scalar_lea.vmem %s2548_s4, %s1620_s7 }
  0x22   : > { %v485_v22 = vrot.slane %v461_v17, 7  ;;  %v486_v23 = vrot.slane %v462_v18, 7  ;;  %v487_v24 = vrot.slane %v463_v19, 7  ;;  %v464_v25 = vld [vmem:[%s1857_s12 + $0x30] sm:$0xff]  ;;  %v465_v26 = vld [vmem:[%s1857_s12 + $0x38] sm:$0xff]  ;;  %v466_v27 = vld [vmem:[%s1857_s12 + $0x40] sm:$0xff]  ;;  %v2032_v2 = vrot.slane %v1903_v29, %v1872_v10 }
  0x23   : > { %507 = vst [vmem:[#allocation2 + $0x30] sm:$0xfe] %v482_v14  ;;  %510 = vst [vmem:[#allocation2 + $0x48] sm:$0x1] %v482_v14  ;;  %v488_v30 = vrot.slane %v464_v25, 7  ;;  %v489_v31 = vrot.slane %v465_v26, 7  ;;  %v2035_v3 = vrot.slane %v1642_v42, %v1872_v10  ;;  %v2048_v8 = vrot.slane %v1643_v50, %v1872_v10 }
  0x24   : > { %508 = vst [vmem:[#allocation2 + $0x38] sm:$0xfe] %v483_v15  ;;  %511 = vst [vmem:[#allocation2 + $0x50] sm:$0x1] %v483_v15  ;;  %v490_v32 = vrot.slane %v466_v27, 7  ;;  %v467_v33 = vld [vmem:[%s1857_s12 + $0x48] sm:$0xff] }
  0x25   : > { %509 = vst.msk [vmem:[#allocation2 + $0x40] sm:$0xfe] %vm426_vm1, %v484_v16  ;;  %v468_v34 = vld [vmem:[%s1857_s12 + $0x50] sm:$0xff]  ;;  %513 = vst [vmem:[#allocation2 + $0x60] sm:$0xfe] %v485_v22  ;;  %v491_v36 = vrot.slane %v467_v33, 7 }
  0x26   : > { %512 = vst.msk [vmem:[#allocation2 + $0x58] sm:$0x1] %vm430_vm2, %v484_v16  ;;  %516 = vst [vmem:[#allocation2 + $0x78] sm:$0x1] %v485_v22  ;;  %v492_v37 = vrot.slane %v468_v34, 7  ;;  %v469_v38 = vld [vmem:[%s1857_s12 + $0x58] sm:$0xff] }
  0x27   : > { %514 = vst [vmem:[#allocation2 + $0x68] sm:$0xfe] %v486_v23  ;;  %517 = vst [vmem:[#allocation2 + $0x80] sm:$0x1] %v486_v23  ;;  %v493_v41 = vrot.slane %v469_v38, 7  ;;  %s1628_s11 = sshll.u32 %s331_s27, 3 }
  0x28   : > { %515 = vst.msk [vmem:[#allocation2 + $0x70] sm:$0xfe] %vm426_vm1, %v487_v24  ;;  %519 = vst [vmem:[#allocation2 + $0x90] sm:$0xfe] %v488_v30  ;;  %s1964_s16 = scalar_lea.vmem %s2545_s1, %s1628_s11  ;;  %s2613_s13 = smov (!%p1930_p10, %s1653_s13), 7  ;;  %vm1452_vm5 = vcmask 310272  }
  0x29   : > { %518 = vst.msk [vmem:[#allocation2 + $0x88] sm:$0x1] %vm430_vm2, %v487_v24  ;;  %522 = vst [vmem:[#allocation2 + $0xa8] sm:$0x1] %v488_v30  ;;  %s1985_s29 = scalar_select %p405_p9, 0, 255 }
  0x2a   : > { %520 = vst [vmem:[#allocation2 + $0x98] sm:$0xfe] %v489_v31  ;;  %523 = vst [vmem:[#allocation2 + $0xb0] sm:$0x1] %v489_v31  ;;  %v2020_v62 = vld [vmem:[#allocation2 + $0x30] sm:$0xff]  ;;  %s2615_s13 = smov (!%p1930_p10, %s2613_s13), 7 }
  0x2b   : > { %521 = vst.msk [vmem:[#allocation2 + $0xa0] sm:$0xfe] %vm426_vm1, %v490_v32  ;;  %525 = vst [vmem:[#allocation2 + $0xc0] sm:$0xfe] %v491_v36  ;;  %v1701_v61 = vld [vmem:[%s1964_s16] sm:%s1985_s29]  ;;  %v632_v5 = vmul.f32 %v1898_v28, %v2020_v62  ;;  %v1704_v9 = vld [vmem:[%s1964_s16 + $0x8] sm:%s1985_s29]  ;;  %v587_v12 = vmul.f32 %v1886_v20, %v2020_v62  ;;  %v759_v13 = vmul.f32 %v1912_v35, %v2020_v62 }
  0x2c   : > { %524 = vst.msk [vmem:[#allocation2 + $0xb8] sm:$0x1] %vm430_vm2, %v490_v32  ;;  %528 = vst [vmem:[#allocation2 + $0xd8] sm:$0x1] %v491_v36  ;;  %v2022_v63 = vld [vmem:[#allocation2 + $0x48] sm:$0x3] }
  0x2d   : > { %526 = vst [vmem:[#allocation2 + $0xc8] sm:$0xfe] %v492_v37  ;;  %529 = vst [vmem:[#allocation2 + $0xe0] sm:$0x1] %v492_v37  ;;  %v2037_v4 = vld [vmem:[#allocation2 + $0x60] sm:$0xff]  ;;  %v418_v6 = vrot.slane %v1701_v61, 7  ;;  %v635_v7 = vmul.f32 %v1898_v28, %v2022_v63  ;;  %v762_v14 = vmul.f32 %v1912_v35, %v2022_v63 }
  0x2e   : > { %527 = vst.msk [vmem:[#allocation2 + $0xd0] sm:$0xfe] %vm426_vm1, %v493_v41  ;;  %2575 = vst [vmem:[#allocation4_spill] sm:$0xff] %v2022_v63  ;;  %v2052_v11 = vld [vmem:[#allocation2 + $0x78] sm:$0x3]  ;;  %v928_v15 = vmul.f32 %v1923_v40, %v2037_v4  ;;  %v419_v16 = vrot.slane %v1704_v9, 7  ;;  %v1054_v24 = vmul.f32 %v1951_v46, %v2037_v4  ;;  %v883_v37 = vmul.f32 %v1919_v39, %v2037_v4 }
  0x2f   : > { %530 = vst.msk [vmem:[#allocation2 + $0xe8] sm:$0x1] %vm430_vm2, %v493_v41  ;;  %2576 = vst [vmem:[#allocation5_spill] sm:$0xff] %v2037_v4  ;;  %v684_v10 = vrot.slane %v632_v5, 1  ;;  %v685_v17 = vrot.slane %v635_v7, 1  ;;  %v931_v18 = vmul.f32 %v1923_v40, %v2052_v11  ;;  %v1707_v19 = vld [vmem:[%s1964_s16 + $0x10] sm:%s1985_s29]  ;;  %v1057_v29 = vmul.f32 %v1951_v46, %v2052_v11 }
  0x30   : > { %2577 = vst [vmem:[#allocation6_spill] sm:$0xff] %v2052_v11  ;;  %424 = vst [vmem:[#allocation2] sm:$0xfe] %v418_v6  ;;  %v811_v21 = vrot.slane %v759_v13, 2  ;;  %v812_v22 = vrot.slane %v762_v14, 2  ;;  %v979_v23 = vrot.slane %v928_v15, 1 }
  0x31   : > { %428 = vst [vmem:[#allocation2 + $0x18] sm:$0x1] %v418_v6  ;;  %425 = vst [vmem:[#allocation2 + $0x8] sm:$0xfe] %v419_v16  ;;  %v420_v25 = vrot.slane %v1707_v19, 7  ;;  %s1657_s22 = smul.u32 3, %s2615_s13  ;;  %v686_v26 = vsel %vm674_vm3, %v684_v10, %v685_v17 }
  0x32   : > { %429 = vst [vmem:[#allocation2 + $0x20] sm:$0x1] %v419_v16  ;;  %v980_v27 = vrot.slane %v931_v18, 1  ;;  %v726_v30 = vadd.f32 %v686_v26, %v587_v12  ;;  %v813_v31 = vsel %vm801_vm4, %v811_v21, %v812_v22  ;;  %v1105_v32 = vrot.slane %v1054_v24, 2  ;;  %v2074_v33 = vld [vmem:[#allocation2 + $0x38] sm:$0xff]  ;;  %v2079_v34 = vld [vmem:[#allocation2 + $0x90] sm:$0xff] }
  0x33   : > { %2578 = vst [vmem:[#allocation7_spill] sm:$0xff] %v2074_v33  ;;  %427 = vst.msk [vmem:[#allocation2 + $0x10] sm:$0xfe] %vm426_vm1, %v420_v25  ;;  %s348_s30 = sadd.s32 %s1657_s22, %s1825_s25  ;;  %v2081_v36 = vld [vmem:[#allocation2 + $0xa8] sm:$0x3]  ;;  %v1106_v41 = vrot.slane %v1057_v29, 2  ;;  %v1222_v50 = vmul.f32 %v1988_v53, %v2079_v34  ;;  %v1348_v6 = vmul.f32 %v2025_v0, %v2079_v34  ;;  %v1177_v9 = vmul.f32 %v1970_v49, %v2079_v34 }
  0x34   : > { %431 = vst.msk [vmem:[#allocation2 + $0x28] sm:$0x1] %vm430_vm2, %v420_v25  ;;  %v981_v38 = vsel %vm674_vm3, %v979_v23, %v980_v27  ;;  %s1633_s13 = sshll.u32 %s348_s30, 3  ;;  %v853_v42 = vadd.f32 %v813_v31, %v726_v30  ;;  %v1225_v61 = vmul.f32 %v1988_v53, %v2081_v36  ;;  %v2092_v5 = vld [vmem:[#allocation2 + $0x50] sm:$0x3]  ;;  %v1351_v12 = vmul.f32 %v2025_v0, %v2081_v36  ;;  %v2112_v22 = vld [vmem:[#allocation2 + $0x68] sm:$0xff] }
  0x35   : > { %2579 = vst [vmem:[#allocation8_spill] sm:$0xff] %v2092_v5  ;;  %s350_s5 = scalar_lea.vmem %s2546_s2, %s1633_s13  ;;  %v1107_v7 = vsel %vm801_vm4, %v1105_v32, %v1106_v41  ;;  %v633_v13 = vmul.f32 %v1943_v44, %v2074_v33  ;;  %v1273_v15 = vrot.slane %v1222_v50, 1  ;;  %v588_v10 = vmul.f32 %v1939_v43, %v2074_v33  ;;  %2580 = vst [vmem:[#allocation9_spill] sm:$0xff] %v2112_v22 }
  0x36   : > { %s1709_s6 = scalar_select %p432_p11, 0, 255  ;;  %v895_v14 = vadd.f32 %v883_v37, %v853_v42  ;;  %v1274_v16 = vrot.slane %v1225_v61, 1  ;;  %v1399_v17 = vrot.slane %v1348_v6, 2  ;;  %v636_v18 = vmul.f32 %v1943_v44, %v2092_v5  ;;  %v2119_v61 = vld [vmem:[#allocation2 + $0x80] sm:$0x3] }
  0x37   : > { %v687_v19 = vrot.slane %v633_v13, 1  ;;  %v760_v21 = vmul.f32 %v1947_v45, %v2074_v33  ;;  %v1400_v26 = vrot.slane %v1351_v12, 2  ;;  %v763_v27 = vmul.f32 %v1947_v45, %v2092_v5  ;;  %2581 = vst [vmem:[#allocation10_spill] sm:$0xff] %v2119_v61  ;;  %v2233_v33 = vld [vmem:[#allocation2 + $0xd8] sm:$0x3] }
  0x38   : > { %v1710_v23 = vld [vmem:[%s350_s5] sm:%s1709_s6]  ;;  %v1021_v24 = vadd.f32 %v981_v38, %v895_v14  ;;  %v1275_v25 = vsel %vm674_vm3, %v1273_v15, %v1274_v16  ;;  %v1713_v30 = vld [vmem:[%s350_s5 + $0x8] sm:%s1709_s6]  ;;  %v688_v31 = vrot.slane %v636_v18, 1  ;;  %v884_v37 = vmul.f32 %v1955_v47, %v2112_v22 }
  0x39   : > { %v445_v29 = vrot.slane %v1710_v23, 7  ;;  %v814_v32 = vrot.slane %v760_v21, 2  ;;  %v446_v41 = vrot.slane %v1713_v30, 7  ;;  %v1716_v42 = vld [vmem:[%s350_s5 + $0x10] sm:%s1709_s6]  ;;  %v815_v6 = vrot.slane %v763_v27, 2 }
  0x3a   : > { %v1147_v50 = vadd.f32 %v1107_v7, %v1021_v24  ;;  %v929_v38 = vmul.f32 %v1959_v48, %v2112_v22  ;;  %v447_v12 = vrot.slane %v1716_v42, 7  ;;  %v689_v13 = vsel %vm674_vm3, %v687_v19, %v688_v31  ;;  %v2132_v19 = vld [vmem:[#allocation2 + $0x98] sm:$0xff]  ;;  %v2134_v23 = vld [vmem:[#allocation2 + $0xb0] sm:$0x3]  ;;  %v2155_v42 = vld [vmem:[#allocation2 + $0x40] sm:$0xff] }
  0x3b   : > { %452 = vst [vmem:[#allocation2 + $0xf0] sm:$0xfe] %v445_v29  ;;  %455 = vst [vmem:[#allocation2 + $0x108] sm:$0x1] %v445_v29  ;;  %v932_v14 = vmul.f32 %v1959_v48, %v2119_v61  ;;  %v1055_v15 = vmul.f32 %v1977_v51, %v2112_v22  ;;  %v1401_v16 = vsel %vm801_vm4, %v1399_v17, %v1400_v26 }
  0x3c   : > { %453 = vst [vmem:[#allocation2 + $0xf8] sm:$0xfe] %v446_v41  ;;  %456 = vst [vmem:[#allocation2 + $0x110] sm:$0x1] %v446_v41  ;;  %v1189_v7 = vadd.f32 %v1177_v9, %v1147_v50  ;;  %v727_v18 = vadd.f32 %v689_v13, %v588_v10  ;;  %v816_v21 = vsel %vm801_vm4, %v814_v32, %v815_v6  ;;  %v982_v24 = vrot.slane %v929_v38, 1 }
  0x3d   : > { %454 = vst.msk [vmem:[#allocation2 + $0x100] sm:$0xfe] %vm426_vm1, %v447_v12  ;;  %v983_v27 = vrot.slane %v932_v14, 1  ;;  %v1058_v29 = vmul.f32 %v1977_v51, %v2119_v61  ;;  %v1108_v9 = vrot.slane %v1055_v15, 2  ;;  %v1223_v10 = vmul.f32 %v1991_v54, %v2132_v19  ;;  %2582 = vst [vmem:[#allocation11_spill] sm:$0xff] %v2155_v42 }
  0x3e   : > { %457 = vst.msk [vmem:[#allocation2 + $0x118] sm:$0x1] %vm430_vm2, %v447_v12  ;;  %v1315_v30 = vadd.f32 %v1275_v25, %v1189_v7  ;;  %v854_v31 = vadd.f32 %v816_v21, %v727_v18  ;;  %v1226_v17 = vmul.f32 %v1991_v54, %v2134_v23  ;;  %v1178_v32 = vmul.f32 %v1981_v52, %v2132_v19  ;;  %v2157_v50 = vld [vmem:[#allocation2 + $0x58] sm:$0x3] }
  0x3f   : > { %v1109_v26 = vrot.slane %v1058_v29, 2  ;;  %v1349_v25 = vmul.f32 %v2028_v1, %v2132_v19  ;;  %v1352_v41 = vmul.f32 %v2028_v1, %v2134_v23  ;;  %2583 = vst [vmem:[#allocation12_spill] sm:$0xff] %v2157_v50  ;;  %v1276_v12 = vrot.slane %v1223_v10, 1  ;;  %v2176_v10 = vld [vmem:[#allocation2 + $0x88] sm:$0x3] }
  0x40   : > { %v1441_v6 = vadd.f32 %v1401_v16, %v1315_v30  ;;  %v896_v38 = vadd.f32 %v884_v37, %v854_v31  ;;  %v1277_v13 = vrot.slane %v1226_v17, 1  ;;  %v984_v14 = vsel %vm674_vm3, %v982_v24, %v983_v27  ;;  %v2168_v37 = vld [vmem:[#allocation2 + $0x70] sm:$0xff]  ;;  %2585 = vst [vmem:[#allocation14_spill] sm:$0xff] %v2176_v10 }
  0x41   : > { %v1110_v15 = vsel %vm801_vm4, %v1108_v9, %v1109_v26  ;;  %v1402_v7 = vrot.slane %v1349_v25, 2  ;;  %v1403_v18 = vrot.slane %v1352_v41, 2  ;;  %v589_v29 = vmul.f32 %v1995_v55, %v2155_v42  ;;  %2584 = vst [vmem:[#allocation13_spill] sm:$0xff] %v2168_v37 }
  0x42   : > { %1454 = vst [vmem:[%s2147_s8 + $0x18] sm:$0xff] %v1441_v6  ;;  %v1022_v21 = vadd.f32 %v984_v14, %v896_v38  ;;  %v634_v5 = vmul.f32 %v1999_v56, %v2155_v42  ;;  %v637_v16 = vmul.f32 %v1999_v56, %v2157_v50  ;;  %v1278_v30 = vsel %vm674_vm3, %v1276_v12, %v1277_v13 }
  0x43   : > { %v1404_v24 = vsel %vm801_vm4, %v1402_v7, %v1403_v18  ;;  %v761_v27 = vmul.f32 %v2003_v57, %v2155_v42  ;;  %v764_v9 = vmul.f32 %v2003_v57, %v2157_v50  ;;  %v930_v25 = vmul.f32 %v2011_v59, %v2168_v37  ;;  %v2190_v50 = vld [vmem:[#allocation2 + $0xb8] sm:$0x3] }
  0x44   : > { %v1148_v31 = vadd.f32 %v1110_v15, %v1022_v21  ;;  %v690_v17 = vrot.slane %v634_v5, 1  ;;  %v691_v26 = vrot.slane %v637_v16, 1  ;;  %v933_v38 = vmul.f32 %v2011_v59, %v2176_v10  ;;  %v2187_v5 = vld [vmem:[#allocation2 + $0xa0] sm:$0xff] }
  0x45   : > { %v817_v41 = vrot.slane %v761_v27, 2  ;;  %v818_v6 = vrot.slane %v764_v9, 2  ;;  %v1056_v12 = vmul.f32 %v2015_v60, %v2168_v37  ;;  %v985_v7 = vrot.slane %v930_v25, 1 }
  0x46   : > { %v1190_v13 = vadd.f32 %v1178_v32, %v1148_v31  ;;  %v692_v14 = vsel %vm674_vm3, %v690_v17, %v691_v26  ;;  %v1059_v15 = vmul.f32 %v2015_v60, %v2176_v10  ;;  %v986_v16 = vrot.slane %v933_v38, 1 }
  0x47   : > { %v728_v18 = vadd.f32 %v692_v14, %v589_v29  ;;  %v819_v21 = vsel %vm801_vm4, %v817_v41, %v818_v6  ;;  %v1111_v27 = vrot.slane %v1056_v12, 2  ;;  %v885_v32 = vmul.f32 %v2007_v58, %v2168_v37 }
  0x48   : > { %v1316_v9 = vadd.f32 %v1278_v30, %v1190_v13  ;;  %v1112_v31 = vrot.slane %v1059_v15, 2  ;;  %v1224_v17 = vmul.f32 %v2035_v3, %v2187_v5  ;;  %v1179_v25 = vmul.f32 %v2032_v2, %v2187_v5 }
  0x49   : > { %v855_v26 = vadd.f32 %v819_v21, %v728_v18  ;;  %v1227_v29 = vmul.f32 %v2035_v3, %v2190_v50  ;;  %v1350_v30 = vmul.f32 %v2048_v8, %v2187_v5  ;;  %v987_v6 = vsel %vm674_vm3, %v985_v7, %v986_v16 }
  0x4a   : > { %v1442_v41 = vadd.f32 %v1404_v24, %v1316_v9  ;;  %v1279_v38 = vrot.slane %v1224_v17, 1  ;;  %v1353_v12 = vmul.f32 %v2048_v8, %v2190_v50  ;;  %v1113_v14 = vsel %vm801_vm4, %v1111_v27, %v1112_v31 }
  0x4b   : > { %v897_v13 = vadd.f32 %v885_v32, %v855_v26  ;;  %v1280_v15 = vrot.slane %v1227_v29, 1  ;;  %v1405_v18 = vrot.slane %v1350_v30, 2  ;;  %v638_v42 = vmul.f32 %v1898_v28, %v2037_v4 }
  0x4c   : > { %1455 = vst [vmem:[%s2147_s8 + $0x20] sm:$0xff] %v1442_v41  ;;  %v1406_v21 = vrot.slane %v1353_v12, 2  ;;  %v641_v24 = vmul.f32 %v1898_v28, %v2052_v11  ;;  %v765_v7 = vmul.f32 %v1912_v35, %v2037_v4  ;;  %v590_v27 = vmul.f32 %v1886_v20, %v2037_v4 }
  0x4d   : > { %v1023_v16 = vadd.f32 %v987_v6, %v897_v13  ;;  %v1281_v9 = vsel %vm674_vm3, %v1279_v38, %v1280_v15  ;;  %v768_v32 = vmul.f32 %v1912_v35, %v2052_v11  ;;  %v693_v31 = vrot.slane %v638_v42, 1 }
  0x4e   : > { %v694_v17 = vrot.slane %v641_v24, 1  ;;  %v820_v26 = vrot.slane %v765_v7, 2  ;;  %v886_v29 = vmul.f32 %v1919_v39, %v2079_v34  ;;  %v934_v12 = vmul.f32 %v1923_v40, %v2079_v34  ;;  %v2230_v7 = vld [vmem:[#allocation2 + $0xc0] sm:$0xff] }
  0x4f   : > { %v1149_v30 = vadd.f32 %v1113_v14, %v1023_v16  ;;  %v821_v41 = vrot.slane %v768_v32, 2  ;;  %v937_v6 = vmul.f32 %v1923_v40, %v2081_v36  ;;  %v1407_v38 = vsel %vm801_vm4, %v1405_v18, %v1406_v21 }
  0x50   : > { %v695_v13 = vsel %vm674_vm3, %v693_v31, %v694_v17  ;;  %v1060_v42 = vmul.f32 %v1951_v46, %v2079_v34  ;;  %v1063_v15 = vmul.f32 %v1951_v46, %v2081_v36  ;;  %v988_v32 = vrot.slane %v934_v12, 1 }
  0x51   : > { %v1191_v24 = vadd.f32 %v1179_v25, %v1149_v30  ;;  %v729_v14 = vadd.f32 %v695_v13, %v590_v27  ;;  %v822_v16 = vsel %vm801_vm4, %v820_v26, %v821_v41  ;;  %v989_v11 = vrot.slane %v937_v6, 1 }
  0x52   : > { %v1114_v4 = vrot.slane %v1060_v42, 2  ;;  %v1115_v18 = vrot.slane %v1063_v15, 2  ;;  %v1228_v21 = vmul.f32 %v1988_v53, %v2230_v7  ;;  %v1231_v25 = vmul.f32 %v1988_v53, %v2233_v33 }
  0x53   : > { %v1317_v31 = vadd.f32 %v1281_v9, %v1191_v24  ;;  %v856_v17 = vadd.f32 %v822_v16, %v729_v14  ;;  %v1354_v27 = vmul.f32 %v2025_v0, %v2230_v7  ;;  %v990_v26 = vsel %vm674_vm3, %v988_v32, %v989_v11 }
  0x54   : > { %v1180_v30 = vmul.f32 %v1970_v49, %v2230_v7  ;;  %v1282_v41 = vrot.slane %v1228_v21, 1  ;;  %v1357_v12 = vmul.f32 %v2025_v0, %v2233_v33  ;;  %v1283_v9 = vrot.slane %v1231_v25, 1 }
  0x55   : > { %v1443_v6 = vadd.f32 %v1407_v38, %v1317_v31  ;;  %v898_v13 = vadd.f32 %v886_v29, %v856_v17  ;;  %v1408_v42 = vrot.slane %v1354_v27, 2  ;;  %v1116_v15 = vsel %vm801_vm4, %v1114_v4, %v1115_v18 }
  0x56   : > { %v1409_v24 = vrot.slane %v1357_v12, 2  ;;  %v639_v14 = vmul.f32 %v1943_v44, %v2112_v22  ;;  %v642_v11 = vmul.f32 %v1943_v44, %v2119_v61  ;;  %v591_v32 = vmul.f32 %v1939_v43, %v2112_v22 }
  0x57   : > { %1456 = vst.msk [vmem:[%s2147_s8 + $0x28] sm:$0xff] %vm1452_vm5, %v1443_v6  ;;  %v1024_v16 = vadd.f32 %v990_v26, %v898_v13  ;;  %v766_v29 = vmul.f32 %v1947_v45, %v2112_v22  ;;  %v769_v38 = vmul.f32 %v1947_v45, %v2119_v61  ;;  %v1284_v4 = vsel %vm674_vm3, %v1282_v41, %v1283_v9 }
  0x58   : > { %v1410_v18 = vsel %vm801_vm4, %v1408_v42, %v1409_v24  ;;  %v696_v21 = vrot.slane %v639_v14, 1  ;;  %v697_v31 = vrot.slane %v642_v11, 1  ;;  %v935_v26 = vmul.f32 %v1959_v48, %v2132_v19  ;;  %v2271_v14 = vld [vmem:[#allocation2 + $0xc8] sm:$0xff]  ;;  %v2273_v11 = vld [vmem:[#allocation2 + $0xe0] sm:$0x3] }
  0x59   : > { %v1150_v17 = vadd.f32 %v1116_v15, %v1024_v16  ;;  %v823_v25 = vrot.slane %v766_v29, 2  ;;  %v824_v27 = vrot.slane %v769_v38, 2  ;;  %v938_v6 = vmul.f32 %v1959_v48, %v2134_v23 }
  0x5a   : > { %v698_v12 = vsel %vm674_vm3, %v696_v21, %v697_v31  ;;  %v1061_v13 = vmul.f32 %v1977_v51, %v2132_v19  ;;  %v1064_v41 = vmul.f32 %v1977_v51, %v2134_v23  ;;  %v991_v24 = vrot.slane %v935_v26, 1 }
  0x5b   : > { %v1192_v9 = vadd.f32 %v1180_v30, %v1150_v17  ;;  %v730_v42 = vadd.f32 %v698_v12, %v591_v32  ;;  %v825_v15 = vsel %vm801_vm4, %v823_v25, %v824_v27  ;;  %v887_v16 = vmul.f32 %v1955_v47, %v2132_v19 }
  0x5c   : > { %v992_v29 = vrot.slane %v938_v6, 1  ;;  %v1117_v38 = vrot.slane %v1061_v13, 2  ;;  %v1118_v21 = vrot.slane %v1064_v41, 2  ;;  %v1229_v30 = vmul.f32 %v1991_v54, %v2271_v14 }
  0x5d   : > { %v1318_v31 = vadd.f32 %v1284_v4, %v1192_v9  ;;  %v857_v61 = vadd.f32 %v825_v15, %v730_v42  ;;  %v1232_v32 = vmul.f32 %v1991_v54, %v2273_v11  ;;  %v1181_v25 = vmul.f32 %v1981_v52, %v2271_v14 }
  0x5e   : > { %v993_v17 = vsel %vm674_vm3, %v991_v24, %v992_v29  ;;  %v1355_v27 = vmul.f32 %v2028_v1, %v2271_v14  ;;  %v1358_v26 = vmul.f32 %v2028_v1, %v2273_v11  ;;  %v1285_v6 = vrot.slane %v1229_v30, 1 }
  0x5f   : > { %v1444_v4 = vadd.f32 %v1410_v18, %v1318_v31  ;;  %v899_v12 = vadd.f32 %v887_v16, %v857_v61  ;;  %v1286_v13 = vrot.slane %v1232_v32, 1  ;;  %v1119_v41 = vsel %vm801_vm4, %v1117_v38, %v1118_v21 }
  0x60   : > { %v1411_v9 = vrot.slane %v1355_v27, 2  ;;  %v1412_v42 = vrot.slane %v1358_v26, 2  ;;  %v640_v15 = vmul.f32 %v1999_v56, %v2168_v37  ;;  %v592_v29 = vmul.f32 %v1995_v55, %v2168_v37 }
  0x61   : > { %1457 = vst [vmem:[%s2147_s8 + $0x30] sm:$0xff] %v1444_v4  ;;  %v1025_v24 = vadd.f32 %v993_v17, %v899_v12  ;;  %v643_v22 = vmul.f32 %v1999_v56, %v2176_v10  ;;  %v767_v61 = vmul.f32 %v2003_v57, %v2168_v37  ;;  %v1287_v18 = vsel %vm674_vm3, %v1285_v6, %v1286_v13 }
  0x62   : > { %v1413_v16 = vsel %vm801_vm4, %v1411_v9, %v1412_v42  ;;  %v699_v38 = vrot.slane %v640_v15, 1  ;;  %v770_v21 = vmul.f32 %v2003_v57, %v2176_v10  ;;  %v936_v17 = vmul.f32 %v2011_v59, %v2187_v5  ;;  %v2313_v9 = vld [vmem:[#allocation2 + $0xd0] sm:$0xff]  ;;  %v2315_v42 = vld [vmem:[#allocation2 + $0xe8] sm:$0x3] }
  0x63   : > { %v1151_v31 = vadd.f32 %v1119_v41, %v1025_v24  ;;  %v700_v30 = vrot.slane %v643_v22, 1  ;;  %v826_v32 = vrot.slane %v767_v61, 2  ;;  %v939_v26 = vmul.f32 %v2011_v59, %v2190_v50 }
  0x64   : > { %v827_v27 = vrot.slane %v770_v21, 2  ;;  %v1062_v4 = vmul.f32 %v2015_v60, %v2187_v5  ;;  %v1065_v12 = vmul.f32 %v2015_v60, %v2190_v50  ;;  %v888_v22 = vmul.f32 %v2007_v58, %v2187_v5 }
  0x65   : > { %v1193_v6 = vadd.f32 %v1181_v25, %v1151_v31  ;;  %v701_v13 = vsel %vm674_vm3, %v699_v38, %v700_v30  ;;  %v994_v41 = vrot.slane %v936_v17, 1  ;;  %v995_v61 = vrot.slane %v939_v26, 1 }
  0x66   : > { %v731_v15 = vadd.f32 %v701_v13, %v592_v29  ;;  %v828_v24 = vsel %vm801_vm4, %v826_v32, %v827_v27  ;;  %v1120_v21 = vrot.slane %v1062_v4, 2  ;;  %v1121_v37 = vrot.slane %v1065_v12, 2 }
  0x67   : > { %v1319_v10 = vadd.f32 %v1287_v18, %v1193_v6  ;;  %v1230_v25 = vmul.f32 %v2035_v3, %v2313_v9  ;;  %v1233_v38 = vmul.f32 %v2035_v3, %v2315_v42  ;;  %v1182_v30 = vmul.f32 %v2032_v2, %v2313_v9 }
  0x68   : > { %v858_v31 = vadd.f32 %v828_v24, %v731_v15  ;;  %v1356_v29 = vmul.f32 %v2048_v8, %v2313_v9  ;;  %v1359_v32 = vmul.f32 %v2048_v8, %v2315_v42  ;;  %v996_v18 = vsel %vm674_vm3, %v994_v41, %v995_v61 }
  0x69   : > { %v1445_v17 = vadd.f32 %v1413_v16, %v1319_v10  ;;  %v1288_v27 = vrot.slane %v1230_v25, 1  ;;  %v1289_v26 = vrot.slane %v1233_v38, 1  ;;  %v1122_v12 = vsel %vm801_vm4, %v1120_v21, %v1121_v37 }
  0x6a   : > { %v900_v4 = vadd.f32 %v888_v22, %v858_v31  ;;  %v1414_v6 = vrot.slane %v1356_v29, 2  ;;  %v1415_v13 = vrot.slane %v1359_v32, 2  ;;  %v593_v15 = vmul.f32 %v1886_v20, %v2079_v34  ;;  %v561_v29 = vld [vmem:[#allocation2 + $0xf0] sm:$0xff]  ;;  %v564_v32 = vld [vmem:[#allocation2 + $0x108] sm:$0x3] }
  0x6b   : > { %1458 = vst [vmem:[%s2147_s8 + $0x38] sm:$0xff] %v1445_v17  ;;  %v644_v24 = vmul.f32 %v1898_v28, %v2079_v34  ;;  %v647_v63 = vmul.f32 %v1898_v28, %v2081_v36  ;;  %v771_v10 = vmul.f32 %v1912_v35, %v2079_v34  ;;  %v1290_v22 = vsel %vm674_vm3, %v1288_v27, %v1289_v26 }
  0x6c   : > { %v1026_v16 = vadd.f32 %v996_v18, %v900_v4  ;;  %v1416_v37 = vsel %vm801_vm4, %v1414_v6, %v1415_v13  ;;  %v774_v41 = vmul.f32 %v1912_v35, %v2081_v36  ;;  %v940_v38 = vmul.f32 %v1923_v40, %v2230_v7 }
  0x6d   : > { %v702_v61 = vrot.slane %v644_v24, 1  ;;  %v703_v21 = vrot.slane %v647_v63, 1  ;;  %v829_v25 = vrot.slane %v771_v10, 2  ;;  %v943_v34 = vmul.f32 %v1923_v40, %v2233_v33 }
  0x6e   : > { %v1152_v31 = vadd.f32 %v1122_v12, %v1026_v16  ;;  %v830_v17 = vrot.slane %v774_v41, 2  ;;  %v1066_v18 = vmul.f32 %v1951_v46, %v2230_v7  ;;  %v889_v36 = vmul.f32 %v1919_v39, %v2230_v7 }
  0x6f   : > { %v704_v27 = vsel %vm674_vm3, %v702_v61, %v703_v21  ;;  %v997_v63 = vrot.slane %v940_v38, 1  ;;  %v1069_v26 = vmul.f32 %v1951_v46, %v2233_v33  ;;  %v998_v13 = vrot.slane %v943_v34, 1 }
  0x70   : > { %v1194_v4 = vadd.f32 %v1182_v30, %v1152_v31  ;;  %v732_v12 = vadd.f32 %v704_v27, %v593_v15  ;;  %v831_v6 = vsel %vm801_vm4, %v829_v25, %v830_v17  ;;  %v1123_v24 = vrot.slane %v1066_v18, 2 }
  0x71   : > { %v1124_v10 = vrot.slane %v1069_v26, 2  ;;  %v1234_v16 = vmul.f32 %v1988_v53, %v561_v29  ;;  %v1237_v41 = vmul.f32 %v1988_v53, %v564_v32  ;;  %v1183_v7 = vmul.f32 %v1970_v49, %v561_v29 }
  0x72   : > { %v1320_v40 = vadd.f32 %v1290_v22, %v1194_v4  ;;  %v859_v61 = vadd.f32 %v831_v6, %v732_v12  ;;  %v1360_v21 = vmul.f32 %v2025_v0, %v561_v29  ;;  %v999_v33 = vsel %vm674_vm3, %v997_v63, %v998_v13  ;;  %v562_v13 = vld [vmem:[#allocation2 + $0xf8] sm:$0xff] }
  0x73   : > { %v1291_v30 = vrot.slane %v1234_v16, 1  ;;  %v1292_v15 = vrot.slane %v1237_v41, 1  ;;  %v1363_v25 = vmul.f32 %v2025_v0, %v564_v32  ;;  %v1125_v17 = vsel %vm801_vm4, %v1123_v24, %v1124_v10  ;;  %v565_v41 = vld [vmem:[#allocation2 + $0x110] sm:$0x3] }
  0x74   : > { %v1446_v38 = vadd.f32 %v1416_v37, %v1320_v40  ;;  %v901_v31 = vadd.f32 %v889_v36, %v859_v61  ;;  %v1417_v34 = vrot.slane %v1360_v21, 2  ;;  %v594_v22 = vmul.f32 %v1939_v43, %v2132_v19 }
  0x75   : > { %v1293_v18 = vsel %vm674_vm3, %v1291_v30, %v1292_v15  ;;  %v645_v27 = vmul.f32 %v1943_v44, %v2132_v19  ;;  %v648_v29 = vmul.f32 %v1943_v44, %v2134_v23  ;;  %v1418_v32 = vrot.slane %v1363_v25, 2 }
  0x76   : > { %1459 = vst.msk [vmem:[%s2147_s8 + $0x40] sm:$0xff] %vm1452_vm5, %v1446_v38  ;;  %v1027_v63 = vadd.f32 %v999_v33, %v901_v31  ;;  %v772_v40 = vmul.f32 %v1947_v45, %v2132_v19  ;;  %v775_v37 = vmul.f32 %v1947_v45, %v2134_v23  ;;  %v890_v4 = vmul.f32 %v1955_v47, %v2271_v14 }
  0x77   : > { %v705_v36 = vrot.slane %v645_v27, 1  ;;  %v706_v26 = vrot.slane %v648_v29, 1  ;;  %v941_v12 = vmul.f32 %v1959_v48, %v2271_v14  ;;  %v944_v16 = vmul.f32 %v1959_v48, %v2273_v11 }
  0x78   : > { %v1153_v6 = vadd.f32 %v1125_v17, %v1027_v63  ;;  %v832_v24 = vrot.slane %v772_v40, 2  ;;  %v833_v10 = vrot.slane %v775_v37, 2  ;;  %v1067_v23 = vmul.f32 %v1977_v51, %v2271_v14 }
  0x79   : > { %v707_v19 = vsel %vm674_vm3, %v705_v36, %v706_v26  ;;  %v1000_v61 = vrot.slane %v941_v12, 1  ;;  %v1070_v21 = vmul.f32 %v1977_v51, %v2273_v11  ;;  %v1001_v25 = vrot.slane %v944_v16, 1 }
  0x7a   : > { %v1195_v33 = vadd.f32 %v1183_v7, %v1153_v6  ;;  %v733_v30 = vadd.f32 %v707_v19, %v594_v22  ;;  %v834_v15 = vsel %vm801_vm4, %v832_v24, %v833_v10  ;;  %v1419_v38 = vsel %vm801_vm4, %v1417_v34, %v1418_v32 }
  0x7b   : > { %v1126_v31 = vrot.slane %v1067_v23, 2  ;;  %v1127_v17 = vrot.slane %v1070_v21, 2  ;;  %v1235_v27 = vmul.f32 %v1991_v54, %v562_v13  ;;  %v1184_v40 = vmul.f32 %v1981_v52, %v562_v13 }
  0x7c   : > { %v1321_v29 = vadd.f32 %v1293_v18, %v1195_v33  ;;  %v860_v63 = vadd.f32 %v834_v15, %v733_v30  ;;  %v1238_v14 = vmul.f32 %v1991_v54, %v565_v41  ;;  %v1002_v11 = vsel %vm674_vm3, %v1000_v61, %v1001_v25  ;;  %v563_v25 = vld [vmem:[#allocation2 + $0x100] sm:$0xff] }
  0x7d   : > { %v1294_v7 = vrot.slane %v1235_v27, 1  ;;  %v1361_v22 = vmul.f32 %v2028_v1, %v562_v13  ;;  %v1364_v37 = vmul.f32 %v2028_v1, %v565_v41  ;;  %v1128_v32 = vsel %vm801_vm4, %v1126_v31, %v1127_v17 }
  0x7e   : > { %v1447_v36 = vadd.f32 %v1419_v38, %v1321_v29  ;;  %v902_v34 = vadd.f32 %v890_v4, %v860_v63  ;;  %v1295_v26 = vrot.slane %v1238_v14, 1  ;;  %v595_v18 = vmul.f32 %v1995_v55, %v2187_v5  ;;  %v566_v38 = vld [vmem:[#allocation2 + $0x118] sm:$0x3] }
  0x7f   : > { %v1420_v12 = vrot.slane %v1361_v22, 2  ;;  %v646_v6 = vmul.f32 %v1999_v56, %v2187_v5  ;;  %v649_v24 = vmul.f32 %v1999_v56, %v2190_v50  ;;  %v1421_v13 = vrot.slane %v1364_v37, 2 }
  0x80   : > { %1460 = vst [vmem:[%s2147_s8 + $0x48] sm:$0xff] %v1447_v36  ;;  %v1028_v10 = vadd.f32 %v1002_v11, %v902_v34  ;;  %v773_v16 = vmul.f32 %v2003_v57, %v2187_v5  ;;  %v776_v4 = vmul.f32 %v2003_v57, %v2190_v50  ;;  %v1296_v41 = vsel %vm674_vm3, %v1294_v7, %v1295_v26  ;;  %v531_v26 = vld [vmem:[#allocation2] sm:$0xff] }
  0x81   : > { %v708_v19 = vrot.slane %v646_v6, 1  ;;  %v709_v61 = vrot.slane %v649_v24, 1  ;;  %v891_v23 = vmul.f32 %v2007_v58, %v2313_v9  ;;  %v942_v15 = vmul.f32 %v2011_v59, %v2313_v9  ;;  %v534_v6 = vld [vmem:[#allocation2 + $0x18] sm:$0x3] }
  0x82   : > { %v1154_v21 = vadd.f32 %v1128_v32, %v1028_v10  ;;  %v835_v33 = vrot.slane %v773_v16, 2  ;;  %v836_v30 = vrot.slane %v776_v4, 2  ;;  %v945_v50 = vmul.f32 %v2011_v59, %v2315_v42 }
  0x83   : > { %v710_v5 = vsel %vm674_vm3, %v708_v19, %v709_v61  ;;  %v1068_v31 = vmul.f32 %v2015_v60, %v2313_v9  ;;  %v1071_v17 = vmul.f32 %v2015_v60, %v2315_v42  ;;  %v1003_v14 = vrot.slane %v942_v15, 1 }
  0x84   : > { %v1196_v27 = vadd.f32 %v1184_v40, %v1154_v21  ;;  %v734_v29 = vadd.f32 %v710_v5, %v595_v18  ;;  %v837_v63 = vsel %vm801_vm4, %v835_v33, %v836_v30  ;;  %v1422_v11 = vsel %vm801_vm4, %v1420_v12, %v1421_v13 }
  0x85   : > { %v1004_v7 = vrot.slane %v945_v50, 1  ;;  %v1129_v22 = vrot.slane %v1068_v31, 2  ;;  %v1130_v37 = vrot.slane %v1071_v17, 2  ;;  %v1236_v32 = vmul.f32 %v2035_v3, %v563_v25  ;;  %v2586_v17 = vld [vmem:[#allocation3_spill] sm:$0xff] }
  0x86   : > { %v1322_v36 = vadd.f32 %v1296_v41, %v1196_v27  ;;  %v861_v34 = vadd.f32 %v837_v63, %v734_v29  ;;  %v1239_v9 = vmul.f32 %v2035_v3, %v566_v38  ;;  %v1362_v40 = vmul.f32 %v2048_v8, %v563_v25  ;;  %v2587_v63 = vld [vmem:[#allocation4_spill] sm:$0xff] }
  0x87   : > { %v1005_v42 = vsel %vm674_vm3, %v1003_v14, %v1004_v7  ;;  %v1365_v18 = vmul.f32 %v2048_v8, %v566_v38  ;;  %v1297_v10 = vrot.slane %v1236_v32, 1  ;;  %v1131_v16 = vsel %vm801_vm4, %v1129_v22, %v1130_v37 }
  0x88   : > { %v1448_v24 = vadd.f32 %v1422_v11, %v1322_v36  ;;  %v903_v12 = vadd.f32 %v891_v23, %v861_v34  ;;  %v1298_v13 = vrot.slane %v1239_v9, 1  ;;  %v1185_v4 = vmul.f32 %v2032_v2, %v563_v25 }
  0x89   : > { %v1423_v41 = vrot.slane %v1362_v40, 2  ;;  %v626_v19 = vmul.f32 %v1898_v28, %v531_v26  ;;  %v1424_v21 = vrot.slane %v1365_v18, 2  ;;  %v629_v33 = vmul.f32 %v1898_v28, %v534_v6  ;;  %v2589_v18 = vld [vmem:[#allocation6_spill] sm:$0xff] }
  0x8a   : > { %1461 = vst [vmem:[%s2147_s8 + $0x50] sm:$0xff] %v1448_v24  ;;  %v1029_v61 = vadd.f32 %v1005_v42, %v903_v12  ;;  %v753_v30 = vmul.f32 %v1912_v35, %v531_v26  ;;  %v1299_v15 = vsel %vm674_vm3, %v1297_v10, %v1298_v13  ;;  %v584_v23 = vmul.f32 %v1886_v20, %v531_v26  ;;  %v2588_v42 = vld [vmem:[#allocation5_spill] sm:$0xff]  ;;  %v532_v13 = vld [vmem:[#allocation2 + $0x8] sm:$0xff] }
  0x8b   : > { %v675_v38 = vrot.slane %v626_v19, 1  ;;  %v756_v5 = vmul.f32 %v1912_v35, %v534_v6  ;;  %v676_v31 = vrot.slane %v629_v33, 1  ;;  %v922_v27 = vmul.f32 %v2586_v17, %v2020_v62 }
  0x8c   : > { %v1155_v50 = vadd.f32 %v1131_v16, %v1029_v61  ;;  %v802_v25 = vrot.slane %v753_v30, 2  ;;  %v925_v14 = vmul.f32 %v2586_v17, %v2587_v63  ;;  %v1048_v28 = vmul.f32 %v1951_v46, %v2020_v62  ;;  %v535_v16 = vld [vmem:[#allocation2 + $0x20] sm:$0x3] }
  0x8d   : > { %v803_v29 = vrot.slane %v756_v5, 2  ;;  %v1051_v11 = vmul.f32 %v1951_v46, %v2587_v63  ;;  %v1425_v7 = vsel %vm801_vm4, %v1423_v41, %v1424_v21  ;;  %v677_v35 = vsel %vm674_vm3, %v675_v38, %v676_v31  ;;  %v2591_v63 = vld [vmem:[#allocation8_spill] sm:$0xff] }
  0x8e   : > { %v1197_v20 = vadd.f32 %v1185_v4, %v1155_v50  ;;  %v970_v22 = vrot.slane %v922_v27, 1  ;;  %v723_v37 = vadd.f32 %v677_v35, %v584_v23  ;;  %v971_v34 = vrot.slane %v925_v14, 1 }
  0x8f   : > { %v804_v36 = vsel %vm801_vm4, %v802_v25, %v803_v29  ;;  %v1096_v32 = vrot.slane %v1048_v28, 2  ;;  %v1097_v26 = vrot.slane %v1051_v11, 2  ;;  %v1216_v40 = vmul.f32 %v1988_v53, %v2588_v42  ;;  %v2590_v25 = vld [vmem:[#allocation7_spill] sm:$0xff] }
  0x90   : > { %v1323_v9 = vadd.f32 %v1299_v15, %v1197_v20  ;;  %v1219_v46 = vmul.f32 %v1988_v53, %v2589_v18  ;;  %v850_v6 = vadd.f32 %v804_v36, %v723_v37  ;;  %v880_v24 = vmul.f32 %v1919_v39, %v2020_v62 }
  0x91   : > { %v1342_v12 = vmul.f32 %v2025_v0, %v2588_v42  ;;  %v1345_v10 = vmul.f32 %v2025_v0, %v2589_v18  ;;  %v972_v41 = vsel %vm674_vm3, %v970_v22, %v971_v34  ;;  %v1174_v19 = vmul.f32 %v1970_v49, %v2588_v42  ;;  %v2592_v34 = vld [vmem:[#allocation9_spill] sm:$0xff] }
  0x92   : > { %v1449_v4 = vadd.f32 %v1425_v7, %v1323_v9  ;;  %v892_v61 = vadd.f32 %v880_v24, %v850_v6  ;;  %v1098_v53 = vsel %vm801_vm4, %v1096_v32, %v1097_v26  ;;  %v1264_v21 = vrot.slane %v1216_v40, 1  ;;  %v2593_v32 = vld [vmem:[#allocation10_spill] sm:$0xff]  ;;  %v533_v18 = vld [vmem:[#allocation2 + $0x10] sm:$0xff] }
  0x93   : > { %v1265_v33 = vrot.slane %v1219_v46, 1  ;;  %v1390_v39 = vrot.slane %v1342_v12, 2  ;;  %v627_v62 = vmul.f32 %v1943_v44, %v532_v13  ;;  %v630_v0 = vmul.f32 %v1943_v44, %v535_v16  ;;  %v536_v46 = vld [vmem:[#allocation2 + $0x28] sm:$0x3] }
  0x94   : > { %1462 = vst.msk [vmem:[%s2147_s8 + $0x58] sm:$0xff] %vm1452_vm5, %v1449_v4  ;;  %v754_v30 = vmul.f32 %v1947_v45, %v532_v13  ;;  %v1018_v15 = vadd.f32 %v972_v41, %v892_v61  ;;  %v1391_v23 = vrot.slane %v1345_v10, 2  ;;  %v585_v38 = vmul.f32 %v1939_v43, %v532_v13 }
  0x95   : > { %v757_v49 = vmul.f32 %v1947_v45, %v535_v16  ;;  %v678_v5 = vrot.slane %v627_v62, 1  ;;  %v679_v50 = vrot.slane %v630_v0, 1  ;;  %v923_v17 = vmul.f32 %v1959_v48, %v2590_v25  ;;  %v2594_v0 = vld [vmem:[#allocation11_spill] sm:$0xff] }
  0x96   : > { %v805_v31 = vrot.slane %v754_v30, 2  ;;  %v1144_v27 = vadd.f32 %v1098_v53, %v1018_v15  ;;  %v926_v14 = vmul.f32 %v1959_v48, %v2591_v63  ;;  %v1049_v44 = vmul.f32 %v1977_v51, %v2590_v25 }
  0x97   : > { %v806_v29 = vrot.slane %v757_v49, 2  ;;  %v1266_v28 = vsel %vm674_vm3, %v1264_v21, %v1265_v33  ;;  %v680_v43 = vsel %vm674_vm3, %v678_v5, %v679_v50  ;;  %v973_v11 = vrot.slane %v923_v17, 1  ;;  %v2595_v49 = vld [vmem:[#allocation12_spill] sm:$0xff] }
  0x98   : > { %v1052_v45 = vmul.f32 %v1977_v51, %v2591_v63  ;;  %v1186_v20 = vadd.f32 %v1174_v19, %v1144_v27  ;;  %v724_v7 = vadd.f32 %v680_v43, %v585_v38  ;;  %v974_v22 = vrot.slane %v926_v14, 1 }
  0x99   : > { %v807_v35 = vsel %vm801_vm4, %v805_v31, %v806_v29  ;;  %v1099_v37 = vrot.slane %v1049_v44, 2  ;;  %v1217_v48 = vmul.f32 %v1991_v54, %v2592_v34  ;;  %v1220_v9 = vmul.f32 %v1991_v54, %v2593_v32 }
  0x9a   : > { %v1100_v36 = vrot.slane %v1052_v45, 2  ;;  %v1312_v26 = vadd.f32 %v1266_v28, %v1186_v20  ;;  %v851_v42 = vadd.f32 %v807_v35, %v724_v7  ;;  %v881_v40 = vmul.f32 %v1955_v47, %v2590_v25  ;;  %v2597_v45 = vld [vmem:[#allocation14_spill] sm:$0xff] }
  0x9b   : > { %v1343_v51 = vmul.f32 %v2028_v1, %v2592_v34  ;;  %v1392_v6 = vsel %vm801_vm4, %v1390_v39, %v1391_v23  ;;  %v975_v24 = vsel %vm674_vm3, %v973_v11, %v974_v22  ;;  %v1175_v12 = vmul.f32 %v1981_v52, %v2592_v34  ;;  %v2596_v11 = vld [vmem:[#allocation13_spill] sm:$0xff] }
  0x9c   : > { %v1346_v54 = vmul.f32 %v2028_v1, %v2593_v32  ;;  %v1438_v10 = vadd.f32 %v1392_v6, %v1312_v26  ;;  %v893_v13 = vadd.f32 %v881_v40, %v851_v42  ;;  %v1101_v47 = vsel %vm801_vm4, %v1099_v37, %v1100_v36 }
  0x9d   : > { %v1267_v16 = vrot.slane %v1217_v48, 1  ;;  %v1268_v4 = vrot.slane %v1220_v9, 1  ;;  %v1393_v41 = vrot.slane %v1343_v51, 2  ;;  %v628_v19 = vmul.f32 %v1999_v56, %v533_v18 }
  0x9e   : > { %v631_v61 = vmul.f32 %v1999_v56, %v536_v46  ;;  %1450 = vst [vmem:[%s2147_s8] sm:$0xff] %v1438_v10  ;;  %v1019_v53 = vadd.f32 %v975_v24, %v893_v13  ;;  %v586_v21 = vmul.f32 %v1995_v55, %v533_v18  ;;  %v755_v52 = vmul.f32 %v2003_v57, %v533_v18 }
  0x9f   : > { %v758_v33 = vmul.f32 %v2003_v57, %v536_v46  ;;  %v1394_v1 = vrot.slane %v1346_v54, 2  ;;  %v681_v39 = vrot.slane %v628_v19, 1  ;;  %v924_v30 = vmul.f32 %v2011_v59, %v2594_v0 }
  0xa0   : > { %v682_v62 = vrot.slane %v631_v61, 1  ;;  %v1145_v15 = vadd.f32 %v1101_v47, %v1019_v53  ;;  %v808_v23 = vrot.slane %v755_v52, 2  ;;  %v927_v56 = vmul.f32 %v2011_v59, %v2595_v49 }
  0xa1   : > { %v809_v38 = vrot.slane %v758_v33, 2  ;;  %v1050_v55 = vmul.f32 %v2015_v60, %v2594_v0  ;;  %v1053_v57 = vmul.f32 %v2015_v60, %v2595_v49  ;;  %v1269_v25 = vsel %vm674_vm3, %v1267_v16, %v1268_v4 }
  0xa2   : > { %v683_v5 = vsel %vm674_vm3, %v681_v39, %v682_v62  ;;  %v1187_v50 = vadd.f32 %v1175_v12, %v1145_v15  ;;  %v976_v27 = vrot.slane %v924_v30, 1  ;;  %v977_v29 = vrot.slane %v927_v56, 1 }
  0xa3   : > { %v725_v31 = vadd.f32 %v683_v5, %v586_v21  ;;  %v810_v17 = vsel %vm801_vm4, %v808_v23, %v809_v38  ;;  %v1395_v59 = vsel %vm801_vm4, %v1393_v41, %v1394_v1  ;;  %v882_v44 = vmul.f32 %v2007_v58, %v2594_v0 }
  0xa4   : > { %v1313_v63 = vadd.f32 %v1269_v25, %v1187_v50  ;;  %v1102_v28 = vrot.slane %v1050_v55, 2  ;;  %v1103_v43 = vrot.slane %v1053_v57, 2  ;;  %v1218_v60 = vmul.f32 %v2035_v3, %v2596_v11 }
  0xa5   : > { %v852_v14 = vadd.f32 %v810_v17, %v725_v31  ;;  %v1221_v20 = vmul.f32 %v2035_v3, %v2597_v45  ;;  %v978_v22 = vsel %vm674_vm3, %v976_v27, %v977_v29  ;;  %v1344_v37 = vmul.f32 %v2048_v8, %v2596_v11 }
  0xa6   : > { %v1439_v7 = vadd.f32 %v1395_v59, %v1313_v63  ;;  %v1347_v36 = vmul.f32 %v2048_v8, %v2597_v45  ;;  %v1104_v34 = vsel %vm801_vm4, %v1102_v28, %v1103_v43  ;;  %v1270_v48 = vrot.slane %v1218_v60, 1 }
  0xa7   : > { %v894_v35 = vadd.f32 %v882_v44, %v852_v14  ;;  %v1271_v32 = vrot.slane %v1221_v20, 1  ;;  %v1176_v3 = vmul.f32 %v2032_v2, %v2596_v11  ;;  %v1396_v26 = vrot.slane %v1344_v37, 2 }
  0xa8   : > { %1451 = vst [vmem:[%s2147_s8 + $0x8] sm:$0xff] %v1439_v7  ;;  %v1397_v42 = vrot.slane %v1347_v36, 2 }
  0xa9   : > { %v1020_v58 = vadd.f32 %v978_v22, %v894_v35  ;;  %v1272_v51 = vsel %vm674_vm3, %v1270_v48, %v1271_v32 }
  0xaa   : > { %v1398_v46 = vsel %vm801_vm4, %v1396_v26, %v1397_v42 }
  0xab   : > { %v1146_v9 = vadd.f32 %v1104_v34, %v1020_v58 }
  0xad   : > { %v1188_v40 = vadd.f32 %v1176_v3, %v1146_v9 }
  0xaf   : > { %v1314_v18 = vadd.f32 %v1272_v51, %v1188_v40 }
  0xb1   : > { %v1440_v6 = vadd.f32 %v1398_v46, %v1314_v18 }
  0xb3   : > { %1453 = vst.msk [vmem:[%s2147_s8 + $0x10] sm:$0xff] %vm1452_vm5, %v1440_v6 }
  0xb4 PF: > { %s14_s19 = sadd.s32 1, %s1755_s19   ;;  %s2598_s15 = smov %s1747_s17 }
  0xb5   : > { %p11_p12 = scmp.ge.s32.totalorder %s14_s19, 6   ;;  %s2599_s16 = smov %s1751_s18 }
  0xb6   : > { %s2600_s17 = smov %s2603_s20  ;;  %s2601_s18 = smov %s2607_s21 }
  0xb7   :  { %13 = sbr.rel (!%p11_p12) target bundleno = 3 (0x3), region = 93 }

// kernel: mdta_forward.5
= control target key start
LH: loop header
LB: loop body
LE: loop exit
PB: predicated region body
PF: predicated region fallthrough
CT: control target
= control target key end

     0   :  { %9 = vsyncpa [#allocation4], 0  ;;  %s2480_s0 = inlined_call_operand.vmem [shape: f32[2,64,294], index: 0, kind: input, shape index: {}]   ;;  %s2481_s1 = inlined_call_operand.vmem [shape: f32[2,49,49], index: 1, kind: input, shape index: {}]   ;;  %s2482_s2 = inlined_call_operand.vmem [shape: bf16[2,49,98], index: 2, kind: input, shape index: {}]   ;;  %s2483_s3 = inlined_call_operand.vmem [shape: f32[2], index: 3, kind: input, shape index: {}]   ;;  %s2484_s4 = inlined_call_operand.hbm [shape: f32[2,64,98], index: 4, kind: output, shape index: {}]  }
   0x1   :  { %10 = vsyncpa [#allocation3], 0 }
   0x2   :  { %12 = vsyncpa [#allocation3 + $0x1], 0  ;;  %s1897_s15 = smov 0   ;;  %s1899_s16 = smov 0  }
   0x3   :  { %s1901_s17 = smov 0   ;;  %s1903_s18 = smov 0  }
   0x4 LB: > { %s1918_s19 = sadd.s32 4294967295, %s1860_s18   ;;  %s1425_s20 = sadd.s32 4294967294, %s1860_s18   ;;  %s1860_s18 = sphi %s1903_s18, %s2491_s18   ;;  %s1856_s17 = sphi %s1901_s17, %s2490_s17   ;;  %s1852_s16 = sphi %s1899_s16, %s2489_s16   ;;  %s1848_s15 = sphi %s1897_s15, %s2488_s15  }
   0x5   : > { %s1922_s21 = sadd.s32 1, %s1860_s18   ;;  %s114_s22 = sadd.s32 1, %s1856_s17 }
   0x6   : > { %s111_s23 = ssub.s32 %s1860_s18, %s1922_s21  ;;  %p124_p0 = scmp.ne.s32.totalorder %s1856_s17, %s1852_s16 }
   0x7   : > { %p112_p1 = scmp.eq.s32.totalorder %s111_s23, 0  ;;  %p125_p2 = scmp.eq.s32.totalorder %s1918_s19, 1 }
   0x8   : > { %p130_p3 = scmp.ne.s32.totalorder %s1852_s16, %s1848_s15  ;;  %p131_p4 = scmp.eq.s32.totalorder %s1425_s20, 1 }
   0x9   : > { %s1933_s24 = scalar_select %p112_p1, %s1856_s17, %s114_s22  }
   0xa   : > { %p1935_p5 = por %p125_p2, %p124_p0  ;;  %p1939_p6 = por %p131_p4, %p130_p3 }
   0xb   : > { %p1426_p7 = scmp.ge.s32.totalorder %s1860_s18, 1  ;;  %p138_p8 = scmp.lt.s32.totalorder %s1860_s18, 3 }
   0xc   : > { %p1661_p9 = scmp.eq.s32.totalorder %s1918_s19, 0  ;;  %s157_s30 = sshll.u32 %s2483_s3, 4  ;;  %s158_s30 = int_to_ptr.vmem [resolvable:$true] %s157_s30 }
   0xd   : > { %p1946_p10 = pnand %p1426_p7, %p138_p8  ;;  %s1779_s5 = scalar_lea.vmem %s158_s30, 16 }
   0xe   : > { %p1780_p13 = scmp.ne.s32.totalorder %s158_s30, %s1779_s5  ;;  %p1787_p3 = scmp.lt.s32.totalorder %s158_s30, %s158_s30 }
   0xf   : > { %p1653_p11 = pneg %p1946_p10  ;;  %p1788_p4 = scmp.lt.s32.totalorder %s1779_s5, %s1779_s5 }
  0x11   : > { %p1654_p12 = pnand %p1661_p9, %p1653_p11  ;;  %p1789_p7 = por %p1788_p4, %p1787_p3 }
  0x13   : > { %p1781_p0 = pneg %p1654_p12 }
  0x15   : > { %p1782_p1 = pnand %p1781_p0, %p1780_p13 }
  0x17   : > { %p1783_p2 = pneg %p1782_p1 }
  0x19   : > { %p1790_p8 = pnand %p1789_p7, %p1783_p2 }
  0x1b   : > { %1793 = shalt.err (!%p1790_p8)
}
  0x1c   : > { %s1862_s6 = smov [#allocation2]   ;;  %178 = sbr.rel (%p1946_p10) target bundleno = 1356 (0x54c), region = 36 }
  0x1d   : > { %1656 = dma.vmem_to_smem (!%p1654_p12), %s158_s30, 16, %s1862_s6, [#allocation4]  }
  0x23   : > { %1839 = dma.done.wait (%p1661_p9), [#allocation4], 16  }
  0x24   : > { %1841 = vsyncadd (%p1661_p9), [#allocation4], 4294967280 }
  0x25   : > { %184 = sfence }
  0x26   : > { %p205_p11 = scmp.lt.s32.totalorder %s1918_s19, 1  ;;  %vm243_vm0 = vcmask 400384   ;;  %vm283_vm1 = vcmask 1048336   ;;  %vm699_vm2 = vcmask 802184   ;;  %vm305_vm3 = vcmask 154624   ;;  %s1863_s12 = smov 79  }
  0x27   : > { %vm731_vm4 = vcmask 556184   ;;  %s1864_s13 = smov 30   ;;  %s1865_s14 = smov 109   ;;  %vm406_vm5 = vcmask 244736   ;;  %vm415_vm6 = vcmask 523264   ;;  %vm519_vm7 = vcmask 393216  }
  0x28   : > { %s206_s7 = scalar_select %p205_p11, %s1918_s19, 1  ;;  %vm1017_vm8 = vcmask 89088   ;;  %vm1156_vm9 = vcmask 1040384   ;;  %vm1328_vm10 = vcmask 801792  }
  0x29   : > { %s1452_s20 = sld [smem:[#allocation2 + $0x1]]  ;;  %s492_s22 = sld [smem:[#allocation2]] }
  0x2a   : > { %s1646_s8 = smul.u32 192, %s206_s7  ;;  %s1869_s5 = smov [#allocation5]  }
  0x2b   : > { %s1798_s6 = sshll.u32 %s1869_s5, 4  ;;  %s1799_s6 = int_to_ptr.vmem [resolvable:$false] %s1798_s6 }
  0x2c   : > { %s1968_s11 = scalar_lea.vmem %s2480_s0, %s1646_s8  ;;  %s1800_s7 = scalar_lea.vmem %s1799_s6, 2048 }
  0x2d   : > { %v1971_v0 = vld [vmem:[%s1968_s11] sm:$0xff]  ;;  %v1974_v1 = vld [vmem:[%s1968_s11 + $0x18] sm:$0xff]  ;;  %v1977_v2 = vld [vmem:[%s1968_s11 + $0x30] sm:$0xff] }
  0x2e   : > { %v1980_v3 = vld [vmem:[%s1968_s11 + $0x48] sm:$0xff]  ;;  %v1983_v4 = vld [vmem:[%s1968_s11 + $0x60] sm:$0xff]  ;;  %v1986_v5 = vld [vmem:[%s1968_s11 + $0x78] sm:$0xff]  ;;  %v235_v8 = vmul.f32 %v1971_v0, %v1971_v0  ;;  %v236_v9 = vmul.f32 %v1974_v1, %v1974_v1  ;;  %v237_v10 = vmul.f32 %v1977_v2, %v1977_v2 }
  0x2f   : > { %v1989_v6 = vld [vmem:[%s1968_s11 + $0x90] sm:$0xff]  ;;  %v1992_v7 = vld [vmem:[%s1968_s11 + $0xa8] sm:$0xff]  ;;  %v238_v11 = vmul.f32 %v1980_v3, %v1980_v3  ;;  %v239_v12 = vmul.f32 %v1983_v4, %v1983_v4  ;;  %v240_v13 = vmul.f32 %v1986_v5, %v1986_v5  ;;  %v2034_v34 = vld [vmem:[%s1968_s11 + $0x20] sm:$0xff] }
  0x30   : > { %v241_v14 = vmul.f32 %v1989_v6, %v1989_v6  ;;  %v242_v15 = vmul.f32 %v1992_v7, %v1992_v7  ;;  %v245_v16 = vsel %vm243_vm0, %v236_v9, 0.0  ;;  %v247_v17 = vsel %vm243_vm0, %v237_v10, 0.0  ;;  %v2031_v33 = vld [vmem:[%s1968_s11 + $0x8] sm:$0xff]  ;;  %v2037_v35 = vld [vmem:[%s1968_s11 + $0x38] sm:$0xff]  ;;  %v2045_v44 = vld [vmem:[%s1968_s11 + $0x50] sm:$0xff] }
  0x31   : > { %v249_v18 = vsel %vm243_vm0, %v238_v11, 0.0  ;;  %v251_v19 = vsel %vm243_vm0, %v239_v12, 0.0  ;;  %v253_v20 = vsel %vm243_vm0, %v240_v13, 0.0  ;;  %v285_v23 = vsel %vm283_vm1, %v236_v9, 0.0  ;;  %v2056_v53 = vld [vmem:[%s1968_s11 + $0x68] sm:$0xff]  ;;  %v2059_v54 = vld [vmem:[%s1968_s11 + $0x80] sm:$0xff] }
  0x32   : > { %v2016_v21 = vsel %vm243_vm0, %v241_v14, 0.0  ;;  %v2019_v22 = vsel %vm243_vm0, %v242_v15, 0.0  ;;  %v287_v24 = vsel %vm283_vm1, %v237_v10, 0.0  ;;  %v289_v25 = vsel %vm283_vm1, %v238_v11, 0.0 }
  0x33   : > { %v700_v26 = vsel %vm699_vm2, %v235_v8, 0.0  ;;  %v701_v27 = vsel %vm699_vm2, %v236_v9, 0.0  ;;  %v703_v28 = vsel %vm699_vm2, %v237_v10, 0.0  ;;  %v291_v29 = vsel %vm283_vm1, %v239_v12, 0.0 }
  0x34   : > { %v293_v30 = vsel %vm283_vm1, %v240_v13, 0.0  ;;  %v295_v31 = vsel %vm283_vm1, %v241_v14, 0.0  ;;  %v702_v32 = vadd.f32 %v701_v27, %v700_v26  ;;  %v297_v36 = vsel %vm283_vm1, %v242_v15, 0.0  ;;  %v2080_v27 = vld [vmem:[%s1968_s11 + $0xb0] sm:$0xff] }
  0x35   : > { %v705_v37 = vsel %vm699_vm2, %v238_v11, 0.0  ;;  %v244_v38 = vsel %vm243_vm0, %v235_v8, 0.0  ;;  %v284_v39 = vsel %vm283_vm1, %v235_v8, 0.0  ;;  %v707_v41 = vsel %vm699_vm2, %v239_v12, 0.0 }
  0x36   : > { %v704_v40 = vadd.f32 %v703_v28, %v702_v32  ;;  %v246_v42 = vadd.f32 %v245_v16, %v244_v38  ;;  %v286_v43 = vadd.f32 %v285_v23, %v284_v39  ;;  %v709_v45 = vsel %vm699_vm2, %v240_v13, 0.0 }
  0x37   : > { %v275_v46 = vmul.f32 %v2031_v33, %v2031_v33  ;;  %v276_v47 = vmul.f32 %v2034_v34, %v2034_v34  ;;  %v277_v48 = vmul.f32 %v2037_v35, %v2037_v35  ;;  %v711_v50 = vsel %vm699_vm2, %v241_v14, 0.0  ;;  %v2073_v14 = vld [vmem:[%s1968_s11 + $0x98] sm:$0xff] }
  0x38   : > { %v706_v49 = vadd.f32 %v705_v37, %v704_v40  ;;  %v248_v51 = vadd.f32 %v247_v17, %v246_v42  ;;  %v288_v52 = vadd.f32 %v287_v24, %v286_v43  ;;  %v278_v55 = vmul.f32 %v2045_v44, %v2045_v44 }
  0x39   : > { %v306_v56 = vsel %vm305_vm3, %v275_v46, 0.0  ;;  %v307_v57 = vsel %vm305_vm3, %v276_v47, 0.0  ;;  %v309_v58 = vsel %vm305_vm3, %v277_v48, 0.0  ;;  %v713_v63 = vsel %vm699_vm2, %v242_v15, 0.0 }
  0x3a   : > { %v708_v59 = vadd.f32 %v707_v41, %v706_v49  ;;  %v250_v60 = vadd.f32 %v249_v18, %v248_v51  ;;  %v290_v61 = vadd.f32 %v289_v25, %v288_v52  ;;  %v308_v62 = vadd.f32 %v307_v57, %v306_v56 }
  0x3b   : > { %v279_v8 = vmul.f32 %v2056_v53, %v2056_v53  ;;  %v280_v9 = vmul.f32 %v2059_v54, %v2059_v54  ;;  %v311_v10 = vsel %vm305_vm3, %v278_v55, 0.0  ;;  %v732_v18 = vsel %vm731_vm4, %v275_v46, 0.0 }
  0x3c   : > { %v710_v11 = vadd.f32 %v709_v45, %v708_v59  ;;  %v252_v12 = vadd.f32 %v251_v19, %v250_v60  ;;  %v292_v13 = vadd.f32 %v291_v29, %v290_v61  ;;  %v310_v16 = vadd.f32 %v309_v58, %v308_v62 }
  0x3d   : > { %v313_v17 = vsel %vm305_vm3, %v279_v8, 0.0  ;;  %v733_v15 = vsel %vm731_vm4, %v276_v47, 0.0  ;;  %v735_v23 = vsel %vm731_vm4, %v277_v48, 0.0  ;;  %v281_v19 = vmul.f32 %v2073_v14, %v2073_v14 }
  0x3e   : > { %v712_v24 = vadd.f32 %v711_v50, %v710_v11  ;;  %v254_v25 = vadd.f32 %v253_v20, %v252_v12  ;;  %v294_v26 = vadd.f32 %v293_v30, %v292_v13  ;;  %v312_v28 = vadd.f32 %v311_v10, %v310_v16 }
  0x3f   : > { %v315_v29 = vsel %vm305_vm3, %v280_v9, 0.0  ;;  %v734_v32 = vadd.f32 %v733_v15, %v732_v18  ;;  %v737_v37 = vsel %vm731_vm4, %v278_v55, 0.0  ;;  %v282_v20 = vmul.f32 %v2080_v27, %v2080_v27 }
  0x40   : > { %v714_v38 = vadd.f32 %v713_v63, %v712_v24  ;;  %v256_v39 = vadd.f32 %v2016_v21, %v254_v25  ;;  %v296_v40 = vadd.f32 %v295_v31, %v294_v26  ;;  %v314_v41 = vadd.f32 %v313_v17, %v312_v28 }
  0x41   : > { %v317_v30 = vsel %vm305_vm3, %v281_v19, 0.0  ;;  %v736_v42 = vadd.f32 %v735_v23, %v734_v32  ;;  %v739_v43 = vsel %vm731_vm4, %v279_v8, 0.0  ;;  %v319_v49 = vsel %vm305_vm3, %v282_v20, 0.0 }
  0x42   : > { %v715_v45 = vrot.slane %v714_v38, 4  ;;  %v258_v46 = vadd.f32 %v2019_v22, %v256_v39  ;;  %v298_v47 = vadd.f32 %v297_v36, %v296_v40  ;;  %v316_v48 = vadd.f32 %v315_v29, %v314_v41 }
  0x43   : > { %v738_v50 = vadd.f32 %v737_v37, %v736_v42  ;;  %v741_v21 = vsel %vm731_vm4, %v280_v9, 0.0  ;;  %v743_v57 = vsel %vm731_vm4, %v281_v19, 0.0  ;;  %v745_v22 = vsel %vm731_vm4, %v282_v20, 0.0 }
  0x44   : > { %v716_v31 = vadd.f32 %v715_v45, %v714_v38  ;;  %v259_v51 = vrot.slane %v258_v46, 4  ;;  %v299_v52 = vrot.slane %v298_v47, 4  ;;  %v318_v55 = vadd.f32 %v317_v30, %v316_v48 }
  0x45   : > { %v740_v56 = vadd.f32 %v739_v43, %v738_v50 }
  0x46   : > { %v717_v58 = vrot.slane %v716_v31, 2  ;;  %v260_v59 = vadd.f32 %v259_v51, %v258_v46  ;;  %v300_v60 = vadd.f32 %v299_v52, %v298_v47  ;;  %v320_v61 = vadd.f32 %v319_v49, %v318_v55 }
  0x47   : > { %v742_v62 = vadd.f32 %v741_v21, %v740_v56 }
  0x48   : > { %v718_v36 = vadd.f32 %v717_v58, %v716_v31  ;;  %v261_v63 = vrot.slane %v260_v59, 2  ;;  %v301_v8 = vrot.slane %v300_v60, 2  ;;  %v321_v10 = vrot.slane %v320_v61, 4 }
  0x49   : > { %v744_v11 = vadd.f32 %v743_v57, %v742_v62 }
  0x4a   : > { %v719_v9 = vrot.slane %v718_v36, 1  ;;  %v262_v12 = vadd.f32 %v261_v63, %v260_v59  ;;  %v302_v13 = vadd.f32 %v301_v8, %v300_v60  ;;  %v322_v16 = vadd.f32 %v321_v10, %v320_v61 }
  0x4b   : > { %v746_v17 = vadd.f32 %v745_v22, %v744_v11 }
  0x4c   : > { %v720_v18 = vadd.f32 %v719_v9, %v718_v36  ;;  %v263_v15 = vrot.slane %v262_v12, 1  ;;  %v303_v23 = vrot.slane %v302_v13, 1  ;;  %v323_v24 = vrot.slane %v322_v16, 2 }
  0x4d   : > { %v747_v25 = vrot.slane %v746_v17, 4 }
  0x4e   : > { %v721_v26 = vmax.f32 %v720_v18, 1e-24  ;;  %v264_v28 = vadd.f32 %v263_v15, %v262_v12  ;;  %v304_v19 = vadd.f32 %v303_v23, %v302_v13  ;;  %v324_v29 = vadd.f32 %v323_v24, %v322_v16 }
  0x4f   : > { %v748_v32 = vadd.f32 %v747_v25, %v746_v17 }
  0x50   : > { %1713 = vrsqrt.f32 %v721_v26  ;;  %v265_v37 = vmax.f32 %v264_v28, 1e-24  ;;  %v327_v38 = vmax.f32 %v304_v19, 1e-24  ;;  %v325_v39 = vrot.slane %v324_v29, 1 }
  0x51   : > { %v749_v40 = vrot.slane %v748_v32, 2 }
  0x52   : > { %1715 = vrsqrt.f32 %v265_v37  ;;  %v326_v41 = vadd.f32 %v325_v39, %v324_v29 }
  0x53   : > { %1717 = vrsqrt.f32 %v327_v38  ;;  %v750_v20 = vadd.f32 %v749_v40, %v748_v32 }
  0x54   : > { %v328_v30 = vmax.f32 %v326_v41, 1e-24 }
  0x55   : > { %v751_v42 = vrot.slane %v750_v20, 1 }
  0x56   : > { %1719 = vrsqrt.f32 %v328_v30 }
  0x57   : > { %v752_v45 = vadd.f32 %v751_v42, %v750_v20 }
  0x59   : > { %v753_v58 = vmax.f32 %v752_v45, 1e-24 }
  0x5a   : > { %v1714_v43 = vpop.eup %1713 }
  0x5b   : > { %v723_v46 = vmul.f32 %v1714_v43, %v1971_v0  ;;  %v724_v47 = vmul.f32 %v1714_v43, %v1974_v1  ;;  %v725_v48 = vmul.f32 %v1714_v43, %v1977_v2  ;;  %v726_v49 = vmul.f32 %v1714_v43, %v1980_v3 }
  0x5c   : > { %v1716_v50 = vpop.eup %1715  ;;  %v727_v21 = vmul.f32 %v1714_v43, %v1983_v4  ;;  %v728_v31 = vmul.f32 %v1714_v43, %v1986_v5  ;;  %v729_v51 = vmul.f32 %v1714_v43, %v1989_v6  ;;  %v730_v52 = vmul.f32 %v1714_v43, %v1992_v7 }
  0x5d   : > { %v1718_v55 = vpop.eup %1717  ;;  %v763_v56 = vpack.c.bf16 %v724_v47, %v723_v46  ;;  %v764_v59 = vpack.c.bf16 %v726_v49, %v725_v48  ;;  %v2107_v36 = vmul.f32 %v1716_v50, %v1971_v0  ;;  %v2110_v63 = vmul.f32 %v1716_v50, %v1974_v1 }
  0x5e   : > { %v765_v57 = vpack.c.bf16 %v728_v31, %v727_v21  ;;  %v331_v60 = vmul.f32 %v1718_v55, %v1971_v0  ;;  %v333_v61 = vmul.f32 %v1718_v55, %v1974_v1  ;;  %v766_v22 = vpack.c.bf16 %v730_v52, %v729_v51 }
  0x5f   : > { %783 = vrot.lane.b32.xlu0 %v763_v56, %s1863_s12  ;;  %v335_v11 = vmul.f32 %v1718_v55, %v1977_v2  ;;  %1721 = vrsqrt.f32 %v753_v58  ;;  %v337_v12 = vmul.f32 %v1718_v55, %v1980_v3  ;;  %v347_v1 = vpack.c.bf16 %v2110_v63, %v2107_v36 }
  0x60   : > { %v1720_v62 = vpop.eup %1719  ;;  %787 = vrot.lane.b32.xlu1 %v765_v57, %s1863_s12  ;;  %v351_v9 = vpack.c.bf16 %v333_v61, %v331_v60  ;;  %v269_v17 = vmul.f32 %v1716_v50, %v1977_v2  ;;  %v270_v18 = vmul.f32 %v1716_v50, %v1980_v3  ;;  %v271_v15 = vmul.f32 %v1716_v50, %v1983_v4 }
  0x61   : > { %v332_v8 = vmul.f32 %v1720_v62, %v2031_v33  ;;  %v334_v10 = vmul.f32 %v1720_v62, %v2034_v34  ;;  %v336_v13 = vmul.f32 %v1720_v62, %v2037_v35  ;;  %v338_v16 = vmul.f32 %v1720_v62, %v2045_v44 }
  0x62   : > { %v272_v23 = vmul.f32 %v1716_v50, %v1986_v5  ;;  %v348_v24 = vpack.c.bf16 %v270_v18, %v269_v17  ;;  %v273_v25 = vmul.f32 %v1716_v50, %v1989_v6  ;;  %v274_v26 = vmul.f32 %v1716_v50, %v1992_v7 }
  0x63   : > { %785 = vrot.lane.b32.xlu0 %v764_v59, %s1863_s12  ;;  %v352_v0 = vpack.c.bf16 %v334_v10, %v332_v8  ;;  %v353_v28 = vpack.c.bf16 %v337_v12, %v335_v11  ;;  %v339_v19 = vmul.f32 %v1718_v55, %v1983_v4  ;;  %v341_v29 = vmul.f32 %v1718_v55, %v1986_v5 }
  0x64   : > { %789 = vrot.lane.b32.xlu1 %v766_v22, %s1863_s12  ;;  %v349_v2 = vpack.c.bf16 %v272_v23, %v271_v15  ;;  %v354_v3 = vpack.c.bf16 %v338_v16, %v336_v13  ;;  %v340_v32 = vmul.f32 %v1720_v62, %v2056_v53  ;;  %v342_v37 = vmul.f32 %v1720_v62, %v2059_v54 }
  0x65   : > { %v350_v38 = vpack.c.bf16 %v274_v26, %v273_v25  ;;  %v355_v39 = vpack.c.bf16 %v341_v29, %v339_v19  ;;  %v343_v40 = vmul.f32 %v1718_v55, %v1989_v6  ;;  %v345_v41 = vmul.f32 %v1718_v55, %v1992_v7 }
  0x66   : > { %v356_v4 = vpack.c.bf16 %v342_v37, %v340_v32  ;;  %v344_v5 = vmul.f32 %v1720_v62, %v2073_v14  ;;  %v346_v30 = vmul.f32 %v1720_v62, %v2080_v27 }
  0x67   : > { %390 = vrot.lane.b32.xlu0 %v351_v9, %s1864_s13  ;;  %v357_v42 = vpack.c.bf16 %v345_v41, %v343_v40  ;;  %v1443_v40 = vld [vmem:[%s2481_s1 + $0x48] sm:$0xff]  ;;  %v1441_v41 = vld [vmem:[%s2481_s1 + $0x38] sm:$0xff] }
  0x68   : > { %392 = vrot.lane.b32.xlu1 %v352_v0, %s1864_s13  ;;  %v358_v6 = vpack.c.bf16 %v346_v30, %v344_v5  ;;  %v1442_v30 = vld [vmem:[%s2481_s1 + $0x40] sm:$0xff] }
  0x69   : > { %v1722_v20 = vpop.eup %1721 }
  0x6a   : > { %v755_v43 = vmul.f32 %v1722_v20, %v2031_v33  ;;  %v756_v45 = vmul.f32 %v1722_v20, %v2034_v34  ;;  %v757_v7 = vmul.f32 %v1722_v20, %v2037_v35  ;;  %v758_v46 = vmul.f32 %v1722_v20, %v2045_v44 }
  0x6b   : > { %394 = vrot.lane.b32.xlu0 %v353_v28, %s1864_s13  ;;  %v759_v48 = vmul.f32 %v1722_v20, %v2056_v53  ;;  %v760_v49 = vmul.f32 %v1722_v20, %v2059_v54  ;;  %v761_v21 = vmul.f32 %v1722_v20, %v2073_v14  ;;  %v762_v31 = vmul.f32 %v1722_v20, %v2080_v27 }
  0x6c   : > { %396 = vrot.lane.b32.xlu1 %v354_v3, %s1864_s13  ;;  %v767_v47 = vpack.c.bf16 %v756_v45, %v755_v43  ;;  %v768_v50 = vpack.c.bf16 %v758_v46, %v757_v7  ;;  %v1444_v7 = vld [vmem:[%s2481_s1 + $0x50] sm:$0xff] }
  0x6d   : > { %v769_v51 = vpack.c.bf16 %v760_v49, %v759_v48  ;;  %v770_v52 = vpack.c.bf16 %v762_v31, %v761_v21 }
  0x6f   : > { %398 = vrot.lane.b32.xlu0 %v355_v39, %s1864_s13 }
  0x70   : > { %400 = vrot.lane.b32.xlu1 %v356_v4, %s1864_s13  ;;  %v359_v4 = vld [vmem:[%s2481_s1] sm:$0xff] }
  0x73   : > { %402 = vrot.lane.b32.xlu0 %v357_v42, %s1864_s13  ;;  %v904_v42 = vstv %s1452_s20 }
  0x74   : > { %404 = vrot.lane.b32.xlu1 %v358_v6, %s1864_s13  ;;  %s1866_s13 = smov 11  }
  0x77   : > { %815 = vrot.lane.b32.xlu0 %v767_v47, %s1865_s14 }
  0x78   : > { %817 = vrot.lane.b32.xlu1 %v768_v50, %s1865_s14  ;;  %v493_v50 = vstv %s492_s22  ;;  %s1485_s22 = sshll.u32 %s1918_s19, 10 }
  0x79   : > { %s2432_s29 = scalar_lea.hbm %s2484_s4, %s1485_s22 }
  0x7b   : > { %819 = vrot.lane.b32.xlu0 %v769_v51, %s1865_s14 }
  0x7c   : > { %821 = vrot.lane.b32.xlu1 %v770_v52, %s1865_s14  ;;  %s1867_s14 = smov 60  }
  0x99   : > { %366 = vxpose.xlu0.c.b16.start [1/4] (short) (narrow) %v347_v1, 64 }
  0x9d   : > { %367 = vxpose.xlu0.c.b16.cont [2/4] (short) (narrow) %v348_v24, 64 }
  0xa1   : > { %368 = vxpose.xlu0.c.b16.cont [3/4] (short) (narrow) %v349_v2, 64 }
  0xa5   : > { %369 = vxpose.xlu0.c.b16.end [4/4] (short) (narrow) %v350_v38, 64 }
  0xd1   : > { %v784_v55 = vpop.permute.xlu0 %783 }
  0xd2   : > { %795 = vxpose.xlu1.c.b16.start [1/4] (short) (narrow) %v784_v55, 64  ;;  %v788_v56 = vpop.permute.xlu1 %787  ;;  %v360_v55 = vld [vmem:[%s2481_s1 + $0x8] sm:$0xff] }
  0xd5   : > { %v786_v57 = vpop.permute.xlu0 %785 }
  0xd6   : > { %796 = vxpose.xlu1.c.b16.cont [2/4] (short) (narrow) %v786_v57, 64  ;;  %v790_v58 = vpop.permute.xlu1 %789 }
  0xd9   : > { %v391_v59 = vpop.permute.xlu0 %390 }
  0xda   : > { %797 = vxpose.xlu1.c.b16.cont [3/4] (short) (narrow) %v788_v56, 64  ;;  %v393_v60 = vpop.permute.xlu1 %392  ;;  %v1445_v56 = vld [vmem:[%s2481_s1 + $0x58] sm:$0xff] }
  0xdb   : > { %v407_v61 = vsel %vm406_vm5, %v391_v59, %v393_v60  ;;  %v361_v60 = vld [vmem:[%s2481_s1 + $0x10] sm:$0xff] }
  0xdc   : > { %1534 = vmatprep.subr.bf16.mxu0 %v407_v61 }
  0xdd   : > { %v395_v62 = vpop.permute.xlu0 %394  ;;  %1535 = vmatpush3.bf16.msra.mxu0 %v407_v61 }
  0xde   : > { %798 = vxpose.xlu1.c.b16.end [4/4] (short) (narrow) %v790_v58, 64  ;;  %v397_v22 = vpop.permute.xlu1 %396 }
  0xdf   : > { %v408_v36 = vsel %vm406_vm5, %v395_v62, %v397_v22 }
  0xe0   : > { %1536 = vmatprep.subr.bf16.mxu0 %v408_v36 }
  0xe1   : > { %v399_v63 = vpop.permute.xlu0 %398  ;;  %1537 = vmatpush3.bf16.msra.mxu0 %v408_v36 }
  0xe2   : > { %v401_v8 = vpop.permute.xlu1 %400 }
  0xe3   : > { %v409_v10 = vsel %vm406_vm5, %v399_v63, %v401_v8 }
  0xe4   : > { %1538 = vmatprep.subr.bf16.mxu0 %v409_v10 }
  0xe5   : > { %v403_v11 = vpop.permute.xlu0 %402  ;;  %1539 = vmatpush3.bf16.msra.mxu0 %v409_v10 }
  0xe6   : > { %v405_v9 = vpop.permute.xlu1 %404 }
  0xe7   : > { %v410_v12 = vsel %vm406_vm5, %v403_v11, %v405_v9  ;;  %v1446_v11 = vld [vmem:[%s2481_s1 + $0x60] sm:$0xff] }
  0xe8   : > { %1540 = vmatprep.subr.bf16.mxu0 %v410_v12 }
  0xe9   : > { %v816_v13 = vpop.permute.xlu0 %815  ;;  %1541 = vmatpush3.bf16.msra.mxu0 %v410_v12 }
  0xea   : > { %1566 = vmatprep.subr.bf16.mxu0 %v816_v13  ;;  %v818_v17 = vpop.permute.xlu1 %817 }
  0xed   : > { %v820_v16 = vpop.permute.xlu0 %819 }
  0xee   : > { %v822_v15 = vpop.permute.xlu1 %821 }
  0xff   : > { %v374_v0 = vpop.trf.xlu0 }
 0x100   : > { %1542 = vmatprep.mubr.msk.bf16.mxu0 %vm415_vm6, %v374_v0 }
 0x103   : > { %v375_v1 = vpop.trf.xlu0 }
 0x104   : > { %1543 = vmatmul.mubr.msk.bf16.vlgmr.msra.gmra.mrb[0].mxu0 %vm415_vm6, %v375_v1 }
 0x105   : > { %1567 = vmatpush3.bf16.msra.mxu0 %v816_v13 }
 0x106   : > { %1568 = vmatprep.subr.bf16.mxu0 %v818_v17 }
 0x107   : > { %v376_v18 = vpop.trf.xlu0 }
 0x108   : > { %1546 = vmatprep.mubr.msk.bf16.mxu0 %vm415_vm6, %v376_v18 }
 0x109   : > { %1569 = vmatpush3.bf16.msra.mxu0 %v818_v17 }
 0x10a   : > { %1570 = vmatprep.subr.bf16.mxu0 %v820_v16 }
 0x10b   : > { %v377_v23 = vpop.trf.xlu0 }
 0x10c   : > { %1547 = vmatmul.mubr.msk.bf16.gmra.mrb[4].mxu0 %vm415_vm6, %v377_v23 }
 0x10d   : > { %1571 = vmatpush3.bf16.msra.mxu0 %v820_v16  ;;  %v1447_v16 = vld [vmem:[%s2481_s1 + $0x68] sm:$0x1] }
 0x10e   : > { %1572 = vmatprep.subr.bf16.mxu0 %v822_v15 }
 0x111   : > { %1573 = vmatpush3.bf16.msra.mxu0 %v822_v15  ;;  %v362_v15 = vld [vmem:[%s2481_s1 + $0x18] sm:$0xff] }
 0x138   : > { %v803_v24 = vpop.trf.xlu1 }
 0x139   : > { %1574 = vmatprep.mubr.msk.bf16.mxu0 %vm415_vm6, %v803_v24 }
 0x13c   : > { %v804_v25 = vpop.trf.xlu1 }
 0x13d   : > { %1575 = vmatmul.mubr.msk.bf16.vlgmr.msra.gmra.mrb[8].mxu0 %vm415_vm6, %v804_v25  ;;  %v364_v25 = vld [vmem:[%s2481_s1 + $0x28] sm:$0xff] }
 0x140   : > { %v805_v26 = vpop.trf.xlu1 }
 0x141   : > { %1578 = vmatprep.mubr.msk.bf16.mxu0 %vm415_vm6, %v805_v26 }
 0x144   : > { %v806_v28 = vpop.trf.xlu1 }
 0x145   : > { %1579 = vmatmul.mubr.msk.bf16.gmra.mrb[12].mxu0 %vm415_vm6, %v806_v28 }
 0x1d7   : > { %v1544_v19 = vpop.f32.mrb[0].mxu0 }
 0x1d8   : > { %v462_v29 = vpop.f32.mrb[1].mxu0  ;;  %v471_v9 = vadd.f32 %v1544_v19, %v361_v60 }
 0x1d9   : > { %v1545_v2 = vpop.f32.mrb[2].mxu0  ;;  %v463_v47 = vadd.f32 %v462_v29, %v359_v4  ;;  %v363_v29 = vld [vmem:[%s2481_s1 + $0x20] sm:$0xff]  ;;  %v365_v4 = vld [vmem:[%s2481_s1 + $0x30] sm:$0x1] }
 0x1da   : > { %v465_v3 = vpop.f32.mrb[3].mxu0  ;;  %v2223_v24 = vmul.f32 %v493_v50, %v471_v9  ;;  %v474_v26 = vadd.f32 %v1545_v2, %v362_v15 }
 0x1db   : > { %v2197_v59 = vmul.f32 %v493_v50, %v463_v47  ;;  %v466_v62 = vadd.f32 %v465_v3, %v360_v55 }
 0x1dd   : > { %v501_v12 = vsel %vm243_vm0, %v2197_v59, -inf  ;;  %v495_v18 = vmul.f32 %v493_v50, %v466_v62 }
 0x1df   : > { %v2162_v32 = vpop.f32.mrb[4].mxu0  ;;  %v504_v28 = vsel %vm243_vm0, %v495_v18, -inf }
 0x1e0   : > { %v2164_v37 = vpop.f32.mrb[5].mxu0 }
 0x1e1   : > { %v1549_v38 = vpop.f32.mrb[6].mxu0 }
 0x1e2   : > { %v481_v39 = vpop.f32.mrb[7].mxu0  ;;  %v507_v38 = vsel %vm243_vm0, %v2223_v24, -inf }
 0x1e3   : > { %v482_v3 = vadd.f32 %v481_v39, %v364_v25 }
 0x210   : > { %v1576_v20 = vpop.f32.mrb[8].mxu0 }
 0x211   : > { %v873_v5 = vpop.f32.mrb[9].mxu0  ;;  %v882_v43 = vadd.f32 %v1576_v20, %v1443_v40  ;;  %v2241_v20 = vmul.f32 %v493_v50, %v474_v26 }
 0x212   : > { %v874_v45 = vadd.f32 %v1441_v41, %v873_v5  ;;  %v1577_v6 = vpop.f32.mrb[10].mxu0  ;;  %v479_v41 = vadd.f32 %v2164_v37, %v363_v29  ;;  %v2248_v5 = vmul.f32 %v493_v50, %v482_v3 }
 0x213   : > { %v876_v46 = vpop.f32.mrb[11].mxu0  ;;  %v885_v21 = vadd.f32 %v1577_v6, %v1444_v7  ;;  %v2187_v52 = vmul.f32 %v904_v42, %v882_v43  ;;  %v510_v37 = vsel %vm243_vm0, %v2241_v20, -inf }
 0x214   : > { %v877_v48 = vadd.f32 %v1442_v30, %v876_v46  ;;  %v2181_v49 = vmul.f32 %v904_v42, %v874_v45  ;;  %v487_v30 = vadd.f32 %v2162_v32, %v365_v4  ;;  %v516_v43 = vsel %vm243_vm0, %v2248_v5, -inf }
 0x215   : > { %v918_v63 = vsel %vm243_vm0, %v2187_v52, -inf  ;;  %v2204_v8 = vmul.f32 %v904_v42, %v885_v21 }
 0x216   : > { %v912_v31 = vsel %vm243_vm0, %v2181_v49, -inf  ;;  %v2185_v51 = vmul.f32 %v904_v42, %v877_v48  ;;  %v2259_v6 = vmul.f32 %v493_v50, %v487_v30 }
 0x217   : > { %913 = vmax.xlane.f32.xlu0 %v912_v31  ;;  %v921_v1 = vsel %vm243_vm0, %v2204_v8, -inf }
 0x218   : > { %v1580_v57 = vpop.f32.mrb[12].mxu0  ;;  %v915_v58 = vsel %vm243_vm0, %v2185_v51, -inf  ;;  %v520_v7 = vsel %vm519_vm7, %v2259_v6, -inf }
 0x219   : > { %v889_v61 = vpop.f32.mrb[13].mxu0  ;;  %916 = vmax.xlane.f32.xlu1 %v915_v58  ;;  %v898_v23 = vadd.f32 %v1580_v57, %v1447_v16 }
 0x21a   : > { %v890_v22 = vadd.f32 %v1445_v56, %v889_v61  ;;  %v1581_v36 = vpop.f32.mrb[14].mxu0 }
 0x21b   : > { %v892_v10 = vpop.f32.mrb[15].mxu0  ;;  %919 = vmax.xlane.f32.xlu0 %v918_v63  ;;  %v2236_v40 = vmul.f32 %v904_v42, %v898_v23 }
 0x21c   : > { %v2211_v13 = vmul.f32 %v904_v42, %v890_v22  ;;  %v893_v0 = vadd.f32 %v1446_v11, %v892_v10 }
 0x21d   : > { %502 = vmax.xlane.f32.xlu1 %v501_v12  ;;  %v930_v39 = vsel %vm519_vm7, %v2236_v40, -inf }
 0x21e   : > { %v924_v17 = vsel %vm243_vm0, %v2211_v13, -inf  ;;  %v2229_v19 = vmul.f32 %v904_v42, %v893_v0  ;;  %v2253_v42 = vmul.f32 %v493_v50, %v479_v41 }
 0x21f   : > { %922 = vmax.xlane.f32.xlu0 %v921_v1 }
 0x220   : > { %v927_v2 = vsel %vm243_vm0, %v2229_v19, -inf  ;;  %v513_v45 = vsel %vm243_vm0, %v2253_v42, -inf }
 0x221   : > { %925 = vmax.xlane.f32.xlu1 %v924_v17 }
 0x223   : > { %505 = vmax.xlane.f32.xlu0 %v504_v28 }
 0x225   : > { %508 = vmax.xlane.f32.xlu1 %v507_v38 }
 0x227   : > { %928 = vmax.xlane.f32.xlu0 %v927_v2 }
 0x229   : > { %931 = vmax.xlane.f32.xlu1 %v930_v39 }
 0x22b   : > { %511 = vmax.xlane.f32.xlu0 %v510_v37 }
 0x22d   : > { %517 = vmax.xlane.f32.xlu1 %v516_v43 }
 0x22f   : > { %514 = vmax.xlane.f32.xlu0 %v513_v45 }
 0x233   : > { %521 = vmax.xlane.f32.xlu0 %v520_v7 }
 0x2a4   : > { %v914_v32 = vpop.xlane.xlu0 %913 }
 0x2a5   : > { %v933_v46 = vsub.f32 %v2181_v49, %v914_v32 }
 0x2a6   : > { %v917_v47 = vpop.xlane.xlu1 %916 }
 0x2a7   : > { %v940_v48 = vmul.f32 1.442695, %v933_v46  ;;  %v934_v21 = vsub.f32 %v2185_v51, %v917_v47 }
 0x2a8   : > { %v920_v31 = vpop.xlane.xlu0 %919 }
 0x2a9   : > { %1723 = vpow2.f32 %v940_v48  ;;  %v942_v55 = vmul.f32 1.442695, %v934_v21  ;;  %v935_v56 = vsub.f32 %v2187_v52, %v920_v31 }
 0x2aa   : > { %v503_v57 = vpop.xlane.xlu1 %502 }
 0x2ab   : > { %1725 = vpow2.f32 %v942_v55  ;;  %v944_v50 = vmul.f32 1.442695, %v935_v56  ;;  %v523_v58 = vsub.f32 %v2197_v59, %v503_v57 }
 0x2ac   : > { %v923_v60 = vpop.xlane.xlu0 %922 }
 0x2ad   : > { %1727 = vpow2.f32 %v944_v50  ;;  %v530_v61 = vmul.f32 1.442695, %v523_v58  ;;  %v936_v62 = vsub.f32 %v2204_v8, %v923_v60 }
 0x2ae   : > { %v926_v49 = vpop.xlane.xlu1 %925 }
 0x2af   : > { %1729 = vpow2.f32 %v530_v61  ;;  %v946_v22 = vmul.f32 1.442695, %v936_v62  ;;  %v937_v51 = vsub.f32 %v2211_v13, %v926_v49  ;;  %v579_v49 = vpack.c.bf16 %v2034_v34, %v2031_v33 }
 0x2b0   : > { %v506_v36 = vpop.xlane.xlu0 %505  ;;  %v581_v33 = vpack.c.bf16 %v2059_v54, %v2056_v53 }
 0x2b1   : > { %1731 = vpow2.f32 %v946_v22  ;;  %v524_v63 = vsub.f32 %v495_v18, %v506_v36  ;;  %v948_v59 = vmul.f32 1.442695, %v937_v51  ;;  %v580_v22 = vpack.c.bf16 %v2045_v44, %v2037_v35  ;;  %v213_v51 = vld [vmem:[%s1968_s11 + $0x10] sm:$0xff]  ;;  %v216_v36 = vld [vmem:[%s1968_s11 + $0x28] sm:$0xff] }
 0x2b2   : > { %v509_v10 = vpop.xlane.xlu1 %508  ;;  %v582_v35 = vpack.c.bf16 %v2080_v27, %v2073_v14 }
 0x2b3   : > { %v2269_v52 = vpop.eup %1723  ;;  %v532_v11 = vmul.f32 1.442695, %v524_v63  ;;  %v525_v9 = vsub.f32 %v2223_v24, %v509_v10  ;;  %v219_v63 = vld [vmem:[%s1968_s11 + $0x40] sm:$0xff]  ;;  %v222_v10 = vld [vmem:[%s1968_s11 + $0x58] sm:$0xff] }
 0x2b4   : > { %v929_v12 = vpop.xlane.xlu0 %928  ;;  %v954_v16 = vsel %vm243_vm0, %v2269_v52, 0.0 }
 0x2b5   : > { %v2274_v8 = vpop.eup %1725  ;;  %1733 = vpow2.f32 %v532_v11  ;;  %v534_v0 = vmul.f32 1.442695, %v525_v9  ;;  %v938_v13 = vsub.f32 %v2229_v19, %v929_v12  ;;  %955 = vadd.xlane.f32.xlu1 %v954_v16  ;;  %v989_v11 = vpack.c.bf16 %v216_v36, %v213_v51  ;;  %v228_v12 = vld [vmem:[%s1968_s11 + $0x88] sm:$0xff]  ;;  %v231_v16 = vld [vmem:[%s1968_s11 + $0xa0] sm:$0xff] }
 0x2b6   : > { %v932_v1 = vpop.xlane.xlu1 %931  ;;  %v957_v17 = vsel %vm243_vm0, %v2274_v8, 0.0  ;;  %v990_v9 = vpack.c.bf16 %v222_v10, %v219_v63 }
 0x2b7   : > { %v2279_v18 = vpop.eup %1727  ;;  %1735 = vpow2.f32 %v534_v0  ;;  %v950_v15 = vmul.f32 1.442695, %v938_v13  ;;  %v939_v23 = vsub.f32 %v2236_v40, %v932_v1  ;;  %958 = vadd.xlane.f32.xlu0 %v957_v17  ;;  %v234_v0 = vld [vmem:[%s1968_s11 + $0xb8] sm:$0xff] }
 0x2b8   : > { %1737 = vpow2.f32 %v948_v59  ;;  %v512_v24 = vpop.xlane.xlu0 %511  ;;  %v960_v25 = vsel %vm243_vm0, %v2279_v18, 0.0  ;;  %v225_v59 = vld [vmem:[%s1968_s11 + $0x70] sm:$0xff]  ;;  %v992_v44 = vpack.c.bf16 %v234_v0, %v231_v16 }
 0x2b9   : > { %v2284_v26 = vpop.eup %1729  ;;  %1739 = vpow2.f32 %v950_v15  ;;  %v952_v28 = vmul.f32 1.442695, %v939_v23  ;;  %v526_v19 = vsub.f32 %v2241_v20, %v512_v24  ;;  %961 = vadd.xlane.f32.xlu1 %v960_v25  ;;  %v991_v34 = vpack.c.bf16 %v228_v12, %v225_v59 }
 0x2ba   : > { %v518_v29 = vpop.xlane.xlu1 %517  ;;  %v544_v2 = vsel %vm243_vm0, %v2284_v26, 0.0 }
 0x2bb   : > { %v2287_v3 = vpop.eup %1731  ;;  %v536_v38 = vmul.f32 1.442695, %v526_v19  ;;  %v528_v41 = vsub.f32 %v2248_v5, %v518_v29  ;;  %1741 = vpow2.f32 %v952_v28 }
 0x2bc   : > { %v515_v40 = vpop.xlane.xlu0 %514  ;;  %v963_v4 = vsel %vm243_vm0, %v2287_v3, 0.0 }
 0x2bd   : > { %1743 = vpow2.f32 %v536_v38  ;;  %v540_v39 = vmul.f32 1.442695, %v528_v41  ;;  %v527_v30 = vsub.f32 %v2253_v42, %v515_v40  ;;  %545 = vadd.xlane.f32.xlu1 %v544_v2  ;;  %964 = vadd.xlane.f32.xlu0 %v963_v4 }
 0x2bf   : > { %v2295_v20 = vpop.eup %1733  ;;  %v538_v37 = vmul.f32 1.442695, %v527_v30  ;;  %1745 = vpow2.f32 %v540_v39 }
 0x2c0   : > { %v522_v43 = vpop.xlane.xlu0 %521  ;;  %v547_v5 = vsel %vm243_vm0, %v2295_v20, 0.0 }
 0x2c1   : > { %v2299_v45 = vpop.eup %1735  ;;  %1747 = vpow2.f32 %v538_v37  ;;  %v529_v7 = vsub.f32 %v2259_v6, %v522_v43  ;;  %548 = vadd.xlane.f32.xlu0 %v547_v5 }
 0x2c2   : > { %v2302_v32 = vpop.eup %1737  ;;  %v550_v42 = vsel %vm243_vm0, %v2299_v45, 0.0 }
 0x2c3   : > { %v2306_v46 = vpop.eup %1739  ;;  %v542_v47 = vmul.f32 1.442695, %v529_v7  ;;  %551 = vadd.xlane.f32.xlu1 %v550_v42  ;;  %v966_v6 = vsel %vm243_vm0, %v2302_v32, 0.0 }
 0x2c4   : > { %v969_v48 = vsel %vm243_vm0, %v2306_v46, 0.0 }
 0x2c5   : > { %1749 = vpow2.f32 %v542_v47  ;;  %970 = vadd.xlane.f32.xlu0 %v969_v48  ;;  %v2310_v21 = vpop.eup %1741 }
 0x2c6   : > { %v972_v57 = vsel %vm519_vm7, %v2310_v21, 0.0 }
 0x2c7   : > { %v2314_v31 = vpop.eup %1743  ;;  %967 = vadd.xlane.f32.xlu1 %v966_v6 }
 0x2c8   : > { %v553_v55 = vsel %vm243_vm0, %v2314_v31, 0.0 }
 0x2c9   : > { %554 = vadd.xlane.f32.xlu0 %v553_v55  ;;  %v2318_v56 = vpop.eup %1745 }
 0x2ca   : > { %v559_v60 = vsel %vm243_vm0, %v2318_v56, 0.0 }
 0x2cb   : > { %v2322_v50 = vpop.eup %1747  ;;  %973 = vadd.xlane.f32.xlu1 %v972_v57 }
 0x2cc   : > { %v556_v58 = vsel %vm243_vm0, %v2322_v50, 0.0 }
 0x2cd   : > { %557 = vadd.xlane.f32.xlu0 %v556_v58 }
 0x2cf   : > { %v2328_v61 = vpop.eup %1749  ;;  %560 = vadd.xlane.f32.xlu1 %v559_v60 }
 0x2d0   : > { %v562_v62 = vsel %vm519_vm7, %v2328_v61, 0.0 }
 0x2d1   : > { %563 = vadd.xlane.f32.xlu0 %v562_v62 }
 0x2e0   : > { %1001 = vrot.lane.b32.xlu1 %v579_v49, %s1866_s13 }
 0x2e4   : > { %1005 = vrot.lane.b32.xlu1 %v580_v22, %s1866_s13 }
 0x2e7   : > { %1003 = vrot.lane.b32.xlu0 %v989_v11, %s1866_s13 }
 0x2e8   : > { %1007 = vrot.lane.b32.xlu1 %v990_v9, %s1866_s13 }
 0x2eb   : > { %1009 = vrot.lane.b32.xlu0 %v581_v33, %s1866_s13 }
 0x2ec   : > { %1011 = vrot.lane.b32.xlu1 %v991_v34, %s1866_s13 }
 0x2ef   : > { %1013 = vrot.lane.b32.xlu0 %v582_v35, %s1866_s13 }
 0x2f0   : > { %1015 = vrot.lane.b32.xlu1 %v992_v44, %s1866_s13 }
 0x2f3   : > { %591 = vrot.lane.b32.xlu0 %v579_v49, %s1867_s14 }
 0x2f4   : > { %593 = vrot.lane.b32.xlu1 %v580_v22, %s1867_s14 }
 0x2f7   : > { %595 = vrot.lane.b32.xlu0 %v581_v33, %s1867_s14 }
 0x2f8   : > { %597 = vrot.lane.b32.xlu1 %v582_v35, %s1867_s14  ;;  %s202_s14 = sand.u32 1, %s1852_s16  }
 0x2f9   : > { %s1431_s11 = sshll.u32 %s202_s14, 6  ;;  %s2439_s19 = scalar_lea.sflag [#allocation3], %s202_s14 }
 0x2fa   : > { %s204_s20 = scalar_lea.vmem [#allocation5], %s1431_s11 }
 0x2fb   : > { %s1351_s23 = sshll.u32 %s204_s20, 4  ;;  %s2434_s23 = int_to_ptr.vmem [resolvable:$true] %s1351_s23 }
 0x2fc   : > { %s1794_s30 = scalar_lea.vmem %s2434_s23, 1024  ;;  %p1801_p13 = scmp.lt.s32.totalorder %s2434_s23, %s1799_s6 }
 0x2fd   : > { %p1795_p9 = scmp.ne.s32.totalorder %s2434_s23, %s1794_s30  ;;  %p1802_p0 = scmp.lt.s32.totalorder %s1800_s7, %s1794_s30 }
 0x2ff   : > { %p1796_p10 = pnand %p1795_p9, %p1935_p5  ;;  %p1803_p1 = por %p1802_p0, %p1801_p13 }
 0x301   : > { %p1797_p12 = pneg %p1796_p10 }
 0x303   : > { %p1804_p2 = pnand %p1803_p1, %p1797_p12 }
 0x342   : > { %v956_v13 = vpop.xlane.xlu1 %955 }
 0x343   : > { %1751 = vrcp.f32 %v956_v13 }
 0x344   : > { %v959_v53 = vpop.xlane.xlu0 %958 }
 0x345   : > { %1753 = vrcp.f32 %v959_v53 }
 0x346   : > { %v962_v54 = vpop.xlane.xlu1 %961 }
 0x347   : > { %1755 = vrcp.f32 %v962_v54 }
 0x34a   : > { %v546_v1 = vpop.xlane.xlu1 %545  ;;  %v965_v17 = vpop.xlane.xlu0 %964 }
 0x34b   : > { %1757 = vrcp.f32 %v965_v17 }
 0x34c   : > { %1759 = vrcp.f32 %v546_v1 }
 0x34d   : > { %v1752_v15 = vpop.eup %1751 }
 0x34e   : > { %v549_v14 = vpop.xlane.xlu0 %548  ;;  %v982_v24 = vmul.f32 %v1752_v15, %v2269_v52 }
 0x34f   : > { %v1754_v27 = vpop.eup %1753  ;;  %1761 = vrcp.f32 %v549_v14 }
 0x350   : > { %v552_v23 = vpop.xlane.xlu1 %551  ;;  %v983_v25 = vmul.f32 %v1754_v27, %v2274_v8 }
 0x351   : > { %v1756_v29 = vpop.eup %1755 }
 0x352   : > { %v971_v28 = vpop.xlane.xlu0 %970  ;;  %v993_v19 = vpack.c.bf16 %v983_v25, %v982_v24  ;;  %v984_v52 = vmul.f32 %v1756_v29, %v2279_v18  ;;  %v1706_v25 = vld [vmem:[%s2482_s2 + $0x24] sm:$0xff]   ;;  %v1708_v29 = vld [vmem:[%s2482_s2 + $0x34] ss:$0 sps:$4 sm:$0x11]  }
 0x353   : > { %1763 = vrcp.f32 %v971_v28  ;;  %v1707_v28 = vld [vmem:[%s2482_s2 + $0x2c] sm:$0xff]  }
 0x354   : > { %1765 = vrcp.f32 %v552_v23  ;;  %v968_v38 = vpop.xlane.xlu1 %967  ;;  %1642 = vmatprep.subr.msk.bf16.mxu0 %vm243_vm0, %v993_v19  ;;  %v1035_v41 = vsel %vm243_vm0, %v993_v19, 0 }
 0x355   : > { %1767 = vrcp.f32 %v968_v38  ;;  %1583 = vmatpush3.bf16.xpose.msra.mxu0 %v1035_v41  ;;  %v1758_v40 = vpop.eup %1757  ;;  %v1868_v38 = vmov 0  }
 0x356   : > { %v555_v2 = vpop.xlane.xlu0 %554  ;;  %v1760_v4 = vpop.eup %1759  ;;  %v985_v8 = vmul.f32 %v1758_v40, %v2287_v3  ;;  %v1158_v41 = vsel %vm1156_vm9, 65535, %v1868_v38 }
 0x357   : > { %1769 = vrcp.f32 %v555_v2  ;;  %v572_v5 = vmul.f32 %v1760_v4, %v2284_v26  ;;  %v1160_v40 = vand.u32 %v1708_v29, %v1158_v41  ;;  %v1709_v2 = vld [vmem:[%s2482_s2] sm:$0xff]  }
 0x358   : > { %v974_v39 = vpop.xlane.xlu1 %973  ;;  %v994_v37 = vpack.c.bf16 %v985_v8, %v984_v52 }
 0x359   : > { %v1762_v30 = vpop.eup %1761  ;;  %1771 = vrcp.f32 %v974_v39 }
 0x35a   : > { %v558_v43 = vpop.xlane.xlu0 %557  ;;  %v573_v7 = vmul.f32 %v1762_v30, %v2295_v20  ;;  %1643 = vmatprep.subr.msk.bf16.mxu0 %vm243_vm0, %v994_v37  ;;  %v1038_v47 = vsel %vm243_vm0, %v994_v37, 0 }
 0x35b   : > { %1773 = vrcp.f32 %v558_v43  ;;  %v1710_v43 = vld [vmem:[%s2482_s2 + $0x8] sm:$0xff]  }
 0x35c   : > { %v561_v42 = vpop.xlane.xlu1 %560  ;;  %v583_v48 = vpack.c.bf16 %v573_v7, %v572_v5 }
 0x35d   : > { %v1764_v6 = vpop.eup %1763  ;;  %1775 = vrcp.f32 %v561_v42  ;;  %1585 = vmatpush3.bf16.xpose.msra.mxu0 %v1038_v47  ;;  %v1711_v42 = vld [vmem:[%s2482_s2 + $0x10] sm:$0xff]   ;;  %v1712_v47 = vld [vmem:[%s2482_s2 + $0x18] ss:$0 sps:$4 sm:$0x11]  }
 0x35e   : > { %v1766_v18 = vpop.eup %1765  ;;  %1638 = vmatprep.subr.msk.bf16.mxu1 %vm243_vm0, %v583_v48  ;;  %v564_v3 = vpop.xlane.xlu0 %563  ;;  %v612_v55 = vsel %vm243_vm0, %v583_v48, 0  ;;  %v987_v20 = vmul.f32 %v1764_v6, %v2306_v46 }
 0x35f   : > { %v1768_v57 = vpop.eup %1767  ;;  %1777 = vrcp.f32 %v564_v3  ;;  %1551 = vmatpush3.bf16.xpose.msra.mxu1 %v612_v55  ;;  %v574_v49 = vmul.f32 %v1766_v18, %v2299_v45 }
 0x360   : > { %v986_v26 = vmul.f32 %v1768_v57, %v2302_v32  ;;  %v1002_v58 = vpop.permute.xlu1 %1001 }
 0x361   : > { %v1770_v60 = vpop.eup %1769 }
 0x362   : > { %v995_v62 = vpack.c.bf16 %v987_v20, %v986_v26  ;;  %v575_v22 = vmul.f32 %v1770_v60, %v2314_v31  ;;  %v1004_v51 = vpop.permute.xlu0 %1003  ;;  %v1261_v60 = vand.u32 %v1712_v47, %v1158_v41 }
 0x363   : > { %v1772_v36 = vpop.eup %1771  ;;  %v1018_v63 = vsel %vm1017_vm8, %v1002_v58, %v1004_v51 }
 0x364   : > { %1644 = vmatprep.subr.msk.bf16.mxu0 %vm243_vm0, %v995_v62  ;;  %v1041_v10 = vsel %vm243_vm0, %v995_v62, 0  ;;  %v584_v11 = vpack.c.bf16 %v575_v22, %v574_v49  ;;  %v988_v32 = vmul.f32 %v1772_v36, %v2310_v21  ;;  %1590 = vmatprep.mubr.msk.bf16.mxu0 %vm243_vm0, %v1018_v63  ;;  %v1006_v9 = vpop.permute.xlu1 %1005 }
 0x365   : > { %v1774_v46 = vpop.eup %1773  ;;  %1587 = vmatpush3.bf16.xpose.msra.mxu0 %v1041_v10 }
 0x366   : > { %1639 = vmatprep.subr.msk.bf16.mxu1 %vm243_vm0, %v584_v11  ;;  %v615_v45 = vsel %vm243_vm0, %v584_v11, 0  ;;  %v996_v31 = vpack.c.bf16 %v988_v32, %v988_v32  ;;  %v1010_v59 = vpop.permute.xlu0 %1009  ;;  %v576_v33 = vmul.f32 %v1774_v46, %v2322_v50 }
 0x367   : > { %v1776_v12 = vpop.eup %1775  ;;  %1553 = vmatpush3.bf16.xpose.msra.mxu1 %v615_v45 }
 0x368   : > { %1645 = vmatprep.subr.msk.bf16.mxu0 %vm243_vm0, %v996_v31  ;;  %v577_v34 = vmul.f32 %v1776_v12, %v2318_v56  ;;  %v1008_v44 = vpop.permute.xlu1 %1007  ;;  %v1044_v13 = vsel %vm243_vm0, %v996_v31, 0 }
 0x369   : > { %v1778_v21 = vpop.eup %1777  ;;  %v1019_v50 = vsel %vm1017_vm8, %v1006_v9, %v1008_v44 }
 0x36a   : > { %v585_v16 = vpack.c.bf16 %v577_v34, %v576_v33  ;;  %v578_v0 = vmul.f32 %v1778_v21, %v2328_v61  ;;  %v1014_v35 = vpop.permute.xlu0 %1013  ;;  %v1705_v61 = vld [vmem:[%s2482_s2 + $0x1c] sm:$0xff]  }
 0x36c   : > { %1640 = vmatprep.subr.msk.bf16.mxu1 %vm243_vm0, %v585_v16  ;;  %v618_v53 = vsel %vm243_vm0, %v585_v16, 0  ;;  %v586_v54 = vpack.c.bf16 %v578_v0, %v578_v0  ;;  %v1012_v17 = vpop.permute.xlu1 %1011 }
 0x36d   : > { %1589 = vmatpush3.bf16.xpose.msra.mxu0 %v1044_v13  ;;  %v1020_v56 = vsel %vm1017_vm8, %v1010_v59, %v1012_v17 }
 0x36e   : > { %v592_v1 = vpop.permute.xlu0 %591  ;;  %v621_v15 = vsel %vm243_vm0, %v586_v54, 0 }
 0x36f   : > { %1555 = vmatpush3.bf16.xpose.msra.mxu1 %v618_v53  ;;  %1558 = vmatprep.mubr.msk.bf16.mxu1 %vm243_vm0, %v592_v1 }
 0x370   : > { %1641 = vmatprep.subr.msk.bf16.mxu1 %vm243_vm0, %v586_v54  ;;  %v1016_v14 = vpop.permute.xlu1 %1015 }
 0x371   : > { %v1021_v27 = vsel %vm1017_vm8, %v1014_v35, %v1016_v14 }
 0x372   : > { %v596_v24 = vpop.permute.xlu0 %595 }
 0x374   : > { %1591 = vmatmul.mubr.msk.bf16.vlgmr.msra.gmra.mrb[16].mxu0 %vm243_vm0, %v1019_v50  ;;  %v594_v23 = vpop.permute.xlu1 %593 }
 0x375   : > { %1594 = vmatprep.mubr.msk.bf16.mxu0 %vm243_vm0, %v1020_v56 }
 0x377   : > { %1557 = vmatpush3.bf16.xpose.msra.mxu1 %v621_v15 }
 0x378   : > { %1598 = vmatprep.subr.bf16.mxu1 %v1705_v61  ;;  %v598_v19 = vpop.permute.xlu1 %597 }
 0x37c   : > { %1595 = vmatmul.mubr.msk.bf16.gmra.mrb[20].mxu0 %vm243_vm0, %v1021_v27 }
 0x37e   : > { %1559 = vmatmul.mubr.msk.bf16.vlgmr.msra.gmra.mrb[0].mxu1 %vm243_vm0, %v594_v23 }
 0x37f   : > { %1562 = vmatprep.mubr.msk.bf16.mxu1 %vm243_vm0, %v596_v24  ;;  %1599 = vmatpush3.bf16.msra.mxu1 %v1705_v61 }
 0x380   : > { %1600 = vmatprep.subr.bf16.mxu1 %v1706_v25 }
 0x383   : > { %1601 = vmatpush3.bf16.msra.mxu1 %v1706_v25 }
 0x384   : > { %1602 = vmatprep.subr.bf16.mxu1 %v1707_v28 }
 0x386   : > { %1563 = vmatmul.mubr.msk.bf16.gmra.mrb[4].mxu1 %vm243_vm0, %v598_v19 }
 0x387   : > { %1603 = vmatpush3.bf16.msra.mxu1 %v1707_v28 }
 0x388   : > { %1604 = vmatprep.subr.bf16.mxu1 %v1160_v40 }
 0x38b   : > { %1605 = vmatpush3.bf16.msra.mxu1 %v1160_v40 }
 0x38c   : > { %1614 = vmatprep.subr.bf16.mxu1 %v1709_v2 }
 0x447   : > { %v1592_v4 = vpop.f32.mrb[16].mxu0 }
 0x448   : > { %v1080_v52 = vpop.f32.mrb[17].mxu0 }
 0x449   : > { %v1593_v8 = vpop.f32.mrb[18].mxu0 }
 0x44a   : > { %v1112_v39 = vpack.c.bf16 %v1593_v8, %v1592_v4  ;;  %v1083_v30 = vpop.f32.mrb[19].mxu0 }
 0x44b   : > { %v1111_v37 = vpack.c.bf16 %v1083_v30, %v1080_v52 }
 0x44d   : > { %1606 = vmatprep.mubr.msk.bf16.mxu1 %vm243_vm0, %v1111_v37 }
 0x44e   : > { %1607 = vmatmul.mubr.msk.bf16.vlgmr.msra.gmra.mrb[8].mxu1 %vm243_vm0, %v1112_v39 }
 0x44f   : > { %1615 = vmatpush3.bf16.msra.mxu1 %v1709_v2  ;;  %v1596_v5 = vpop.f32.mrb[20].mxu0 }
 0x450   : > { %v1096_v7 = vpop.f32.mrb[21].mxu0  ;;  %1616 = vmatprep.subr.bf16.mxu1 %v1710_v43 }
 0x451   : > { %v1597_v48 = vpop.f32.mrb[22].mxu0  ;;  %v1560_v6 = vpop.f32.mrb[0].mxu1 }
 0x452   : > { %v1114_v18 = vpack.c.bf16 %v1597_v48, %v1596_v5  ;;  %v1099_v3 = vpop.f32.mrb[23].mxu0  ;;  %v657_v55 = vpop.f32.mrb[1].mxu1 }
 0x453   : > { %v1113_v57 = vpack.c.bf16 %v1099_v3, %v1096_v7  ;;  %1617 = vmatpush3.bf16.msra.mxu1 %v1710_v43  ;;  %v1561_v26 = vpop.f32.mrb[2].mxu1 }
 0x454   : > { %1618 = vmatprep.subr.bf16.mxu1 %v1711_v42  ;;  %v689_v20 = vpack.c.bf16 %v1561_v26, %v1560_v6  ;;  %v660_v58 = vpop.f32.mrb[3].mxu1 }
 0x455   : > { %1610 = vmatprep.mubr.msk.bf16.mxu1 %vm243_vm0, %v1113_v57  ;;  %v688_v62 = vpack.c.bf16 %v660_v58, %v657_v55 }
 0x456   : > { %1611 = vmatmul.mubr.msk.bf16.gmra.mrb[12].mxu1 %vm243_vm0, %v1114_v18 }
 0x457   : > { %1619 = vmatpush3.bf16.msra.mxu1 %v1711_v42  ;;  %1622 = vmatprep.mubr.msk.bf16.mxu1 %vm243_vm0, %v688_v62 }
 0x458   : > { %1620 = vmatprep.subr.bf16.mxu1 %v1261_v60 }
 0x459   : > { %v1564_v49 = vpop.f32.mrb[4].mxu1 }
 0x45a   : > { %v673_v22 = vpop.f32.mrb[5].mxu1 }
 0x45b   : > { %1621 = vmatpush3.bf16.msra.mxu1 %v1261_v60  ;;  %v1565_v51 = vpop.f32.mrb[6].mxu1 }
 0x45c   : > { %v691_v36 = vpack.c.bf16 %v1565_v51, %v1564_v49  ;;  %v676_v63 = vpop.f32.mrb[7].mxu1 }
 0x45d   : > { %v690_v10 = vpack.c.bf16 %v676_v63, %v673_v22 }
 0x45e   : > { %1623 = vmatmul.mubr.msk.bf16.vlgmr.msra.gmra.mrb[8].mxu1 %vm243_vm0, %v689_v20 }
 0x45f   : > { %1626 = vmatprep.mubr.msk.bf16.mxu1 %vm243_vm0, %v690_v10 }
 0x466   : > { %1627 = vmatmul.mubr.msk.bf16.gmra.mrb[12].mxu1 %vm243_vm0, %v691_v36 }
 0x531   : > { %v1624_v11 = vpop.f32.mrb[8].mxu1 }
 0x532   : > { %1331 = vst.msk [vmem:[%s204_s20 + $0x10] sm:$0xff] %vm1328_vm10, %v1624_v11  ;;  %v1297_v32 = vpop.f32.mrb[9].mxu1 }
 0x533   : > { %1329 = vst.msk [vmem:[%s204_s20] sm:$0xff] %vm1328_vm10, %v1297_v32  ;;  %v1625_v46 = vpop.f32.mrb[10].mxu1 }
 0x534   : > { %1332 = vst.msk [vmem:[%s204_s20 + $0x18] sm:$0xff] %vm1328_vm10, %v1625_v46  ;;  %v1300_v9 = vpop.f32.mrb[11].mxu1 }
 0x535   : > { %1330 = vst.msk [vmem:[%s204_s20 + $0x8] sm:$0xff] %vm1328_vm10, %v1300_v9 }
 0x539   : > { %v1628_v45 = vpop.f32.mrb[12].mxu1 }
 0x53a   : > { %1335 = vst.msk [vmem:[%s204_s20 + $0x30] sm:$0xff] %vm1328_vm10, %v1628_v45  ;;  %v1313_v31 = vpop.f32.mrb[13].mxu1 }
 0x53b   : > { %1333 = vst.msk [vmem:[%s204_s20 + $0x20] sm:$0xff] %vm1328_vm10, %v1313_v31  ;;  %v1629_v59 = vpop.f32.mrb[14].mxu1 }
 0x53c   : > { %1336 = vst.msk [vmem:[%s204_s20 + $0x38] sm:$0xff] %vm1328_vm10, %v1629_v59  ;;  %v1316_v12 = vpop.f32.mrb[15].mxu1 }
 0x53d   : > { %1334 = vst.msk [vmem:[%s204_s20 + $0x28] sm:$0xff] %vm1328_vm10, %v1316_v12 }
 0x53e   : > { %1807 = shalt.err (!%p1804_p2)
}
 0x53f   : > { %s1808_s8 = scalar_lea.hbm %s2432_s29, 1024  ;;  %s1812_s12 = scalar_lea.hbm %s2484_s4, 2048 }
 0x540   : > { %p1809_p3 = scmp.ne.s32.totalorder %s2432_s29, %s1808_s8  ;;  %p1813_p8 = scmp.lt.u32.totalorder %s2432_s29, %s2484_s4 }
 0x541   : > { %p1814_p11 = scmp.lt.u32.totalorder %s1812_s12, %s1808_s8  ;;  %p1816_p10 = scmp.lt.u32.totalorder %s1808_s8, %s2432_s29 }
 0x542   : > { %p1810_p4 = pnand %p1809_p3, %p1935_p5 }
 0x543   : > { %p1815_p9 = por %p1814_p11, %p1813_p8 }
 0x544   : > { %p1811_p7 = pneg %p1810_p4 }
 0x545   : > { %p1817_p12 = por %p1816_p10, %p1815_p9 }
 0x547   : > { %p1818_p13 = pnand %p1817_p12, %p1811_p7 }
 0x549   : > { %1821 = shalt.err (!%p1818_p13)
}
 0x54a   : > { %s1870_s11 = smov 128   ;;  %s1871_s20 = smov 8  }
 0x54b   : > { %1651 = dma.vmem_to_hbm [thread:$0]  (%p1935_p5), %s2434_s23, 1024, %s2432_s29, %s2439_s19, %s1870_s11, %s1870_s11, %s1871_s20  }
 0x54c PF: > { %p1663_p0 = scmp.ge.s32.totalorder %s1860_s18, 2  ;;  %s1366_s22 = sand.u32 1, %s1848_s15  }
 0x54d   : > { %s1367_s27 = scalar_lea.sflag [#allocation3], %s1366_s22 }
 0x54e   : > { %p1658_p1 = pnand %p1663_p0, %p1939_p6 }
 0x550   : > { %1843 = dma.done.wait (!%p1658_p1), %s1367_s27, 1024  }
 0x551   : > { %1845 = vsyncadd (!%p1658_p1), %s1367_s27, 4294966272  ;;  %p15_p2 = scmp.ge.s32.totalorder %s1922_s21, 4   ;;  %s2488_s15 = smov %s1852_s16 }
 0x552   : > { %s2489_s16 = smov %s1856_s17  ;;  %s2490_s17 = smov %s1933_s24 }
 0x553   : > { %s2491_s18 = smov %s1922_s21  ;;  %17 = sbr.rel (!%p15_p2) target bundleno = 4 (0x4), region = 78 }
 0x55a   :  { %1372 = vsyncpa [#allocation3], 1 }
 0x55b   :  { %1374 = vsyncpa [#allocation3 + $0x1], 1 }
 0x55c   :  { %1375 = vsyncpa [#allocation4], 1 }
 0x55d   :  { %1377 = vsyncpa [#allocation4 + $0x1], 1 }

</bundles_post_ra>
